<compile_context>
chip_gen: v7x
topology: tpu7x:2x2x1
jax: 0.10.0
libtpu: 0.0.40
codegen_flags: <defaults>
</compile_context>

<pallas_src>
import functools

import jax
import jax.numpy as jnp
from jax import lax
from jax.experimental import pallas as pl
from jax.experimental.pallas import tpu as pltpu

C_IN = 3          # RGB input channels
C4 = 4            # channel dim padded to 4 for pair-aligned bf16 sublane stores
C_FEAT = 128      # stands in for resnet.fc.in_features (2048 in the real model)
EMBED = 32        # embed_size
KH = KW = 3
BN_EPS = 1e-5


def _encoder_kernel(x_ref, wc_ref, m_ref, we_ref, g_ref, b_ref, o_ref, p_scr,
                    *, NTAP, Wp, NCOLS):
    """Fused: 3x3 'same' conv (+bias, taps gathered in-kernel) + ReLU + GAP + Linear + BN1d."""
    K_PAD = p_scr.shape[0]

    # Rows >= NTAP of the patch scratch: row NTAP is the conv-bias "ones" row, the rest are
    # exact zeros (they multiply zero weight columns).  Single pair-aligned store; rows
    # 0..NTAP-1 are fully overwritten by the gather below, so no full memset is needed.
    r = lax.broadcasted_iota(jnp.int32, (K_PAD - NTAP, NCOLS), 0)
    p_scr[NTAP:, :] = jnp.where(r == 0, 1.0, 0.0).astype(p_scr.dtype)

    # Gather the 9 conv taps.  Per-image segments are 128-lane aligned in the wrapper, so
    # each tap (di, dj) is ONE contiguous, statically lane-shifted copy covering all images;
    # destination rows start at multiples of 4 (bf16 pair-aligned, unmasked stores).  The
    # junk columns this produces (w >= W, tail padding) are masked out of the GAP below.
    for di in range(KH):
        for dj in range(KW):
            t = di * KW + dj
            s = di * Wp + dj
            p_scr[t * C4:(t + 1) * C4, :] = x_ref[:, s:s + NCOLS]

    # Conv + bias as one lane-dense bf16 MXU matmul (C_FEAT, K_PAD) @ (K_PAD, NCOLS) with
    # f32 accumulation (bias rides on the "ones" contraction row), then ReLU.
    y = jnp.maximum(
        jnp.dot(wc_ref[...], p_scr[...], preferred_element_type=jnp.float32), 0.0)

    # Global average pool as an MXU-natural masked matmul: contraction is y's lane axis /
    # mask's sublane axis, so no relayout/transpose of the (C_FEAT, NCOLS) f32 y is emitted.
    # The mask zeroes junk/padding columns and carries the 1/(H*W) scale.
    featsT = jnp.dot(y, m_ref[...], preferred_element_type=jnp.float32)      # (C_FEAT, B)

    # nn.Linear(embed): bias dropped (it cancels exactly under training-mode BatchNorm).
    zT = jnp.dot(we_ref[...], featsT, preferred_element_type=jnp.float32)    # (EMBED, B)

    # nn.BatchNorm1d, training mode (biased batch variance), computed in the transposed
    # (EMBED, B) space; a single tiny (EMBED, B) -> (B, EMBED) transpose at the very end.
    mu = jnp.mean(zT, axis=1, keepdims=True)
    zc = zT - mu
    var = jnp.mean(zc * zc, axis=1, keepdims=True)
    zn = (zc * lax.rsqrt(var + BN_EPS)).T                                    # (B, EMBED)
    o_ref[...] = zn * g_ref[...] + b_ref[...]


@jax.jit
def encoder_cnn_forward(images, params):
    B, C, H, W = images.shape
    Wp = W + 2                              # padded row width for the 'same' 3x3 conv
    Hp = H + 3                              # top pad 1, bottom pad 2 (tap shifts stay in-image)
    L = Hp * Wp                             # flattened padded image length
    NPB = H * Wp                            # flat output positions per image (w >= W are junk)
    LPAD = ((L + 127) // 128) * 128         # 128-lane aligned per-image segment
    NCOLS = B * LPAD                        # gather / conv-matmul lane width
    TAIL = 128                              # slack so every tap slice [s, s+NCOLS) is in bounds
    NTAP = KH * KW * C4                     # 36 gathered contraction rows
    K_PAD = ((NTAP + 1 + 15) // 16) * 16    # + bias "ones" row, padded to bf16 sublane tile

    # ---- wrapper-side layout plumbing (plain JAX on a small tensor) ----
    xpad = jnp.pad(images, ((0, 0), (0, C4 - C), (1, 2), (1, 1)))            # (B, 4, Hp, Wp)
    xflat = jnp.pad(xpad.reshape(B, C4, L), ((0, 0), (0, 0), (0, LPAD - L))) # (B, 4, LPAD)
    xflat = jnp.transpose(xflat, (1, 0, 2)).reshape(C4, NCOLS)               # channel-major
    xflat = jnp.pad(xflat, ((0, 0), (0, TAIL))).astype(jnp.bfloat16)         # (4, NCOLS+TAIL)

    # conv weight -> (C_FEAT, K_PAD): column (di*KW+dj)*4 + c; column NTAP carries conv_b
    # (multiplied by the in-kernel ones row); remaining columns are zero padding.
    wc = jnp.transpose(params["conv_w"], (0, 2, 3, 1))                       # (C_FEAT,3,3,C)
    wc = jnp.pad(wc, ((0, 0), (0, 0), (0, 0), (0, C4 - C))).reshape(C_FEAT, NTAP)
    wc = jnp.concatenate([wc, params["conv_b"].reshape(C_FEAT, 1)], axis=1)
    wc = jnp.pad(wc, ((0, 0), (0, K_PAD - NTAP - 1))).astype(jnp.bfloat16)   # (C_FEAT, K_PAD)

    # GAP mask in the MXU-natural (NCOLS, B) orientation: selects image b's valid spatial
    # columns and folds in the 1/(H*W) average.  (At real scale, build per-tile/in-kernel.)
    n = jnp.arange(NCOLS)
    pos = n % LPAD
    valid = (pos < NPB) & ((pos % Wp) < W)
    mT = jnp.where(valid[:, None] & ((n[:, None] // LPAD) == jnp.arange(B)[None, :]),
                   1.0 / (H * W), 0.0).astype(jnp.float32)                   # (NCOLS, B)

    we = params["embed_w"].astype(jnp.float32)                               # (EMBED, C_FEAT)
    gamma = params["bn_gamma"].reshape(1, EMBED).astype(jnp.float32)
    beta = params["bn_beta"].reshape(1, EMBED).astype(jnp.float32)

    kernel = functools.partial(_encoder_kernel, NTAP=NTAP, Wp=Wp, NCOLS=NCOLS)
    return pl.pallas_call(
        kernel,
        out_shape=jax.ShapeDtypeStruct((B, EMBED), jnp.float32),
        grid_spec=pltpu.PrefetchScalarGridSpec(
            num_scalar_prefetch=0,
            grid=(1,),
            in_specs=[
                pl.BlockSpec((C4, NCOLS + TAIL), lambda i: (0, 0)),
                pl.BlockSpec((C_FEAT, K_PAD), lambda i: (0, 0)),
                pl.BlockSpec((NCOLS, B), lambda i: (0, 0)),
                pl.BlockSpec((EMBED, C_FEAT), lambda i: (0, 0)),
                pl.BlockSpec((1, EMBED), lambda i: (0, 0)),
                pl.BlockSpec((1, EMBED), lambda i: (0, 0)),
            ],
            out_specs=pl.BlockSpec((B, EMBED), lambda i: (0, 0)),
            scratch_shapes=[pltpu.VMEM((K_PAD, NCOLS), jnp.bfloat16)],
        ),
        compiler_params=pltpu.CompilerParams(
            dimension_semantics=("arbitrary",)),
    )(xflat, wc, mT, we, gamma, beta)


def init_params(key):
    ks = jax.random.split(key, 6)
    return {
        # stand-in backbone conv (PyTorch conv layout: C_out, C_in, KH, KW)
        "conv_w": 0.05 * jax.random.normal(ks[0], (C_FEAT, C_IN, KH, KW), jnp.float32),
        "conv_b": 0.1 * jax.random.normal(ks[1], (C_FEAT,), jnp.float32),
        # nn.Linear(resnet.fc.in_features, embed_size): weight (out, in)
        "embed_w": 0.05 * jax.random.normal(ks[2], (EMBED, C_FEAT), jnp.float32),
        "embed_b": 0.1 * jax.random.normal(ks[3], (EMBED,), jnp.float32),
        # nn.BatchNorm1d(embed_size); randomized affine so the test exercises it
        "bn_gamma": 1.0 + 0.1 * jax.random.normal(ks[4], (EMBED,), jnp.float32),
        "bn_beta": 0.1 * jax.random.normal(ks[5], (EMBED,), jnp.float32),
    }


def _reference(images, params, *, bf16_conv_operands=False):
    """Independent pure-JAX reference (lax conv, full f32 math).  With
    bf16_conv_operands=True the conv inputs/weights/bias are quantized exactly as the
    kernel quantizes them, so the comparison isolates kernel layout/accumulation bugs."""
    hi = lax.Precision.HIGHEST
    x = images.astype(jnp.float32)
    wc, bc = params["conv_w"], params["conv_b"]
    if bf16_conv_operands:
        x = x.astype(jnp.bfloat16).astype(jnp.float32)
        wc = wc.astype(jnp.bfloat16).astype(jnp.float32)
        bc = bc.astype(jnp.bfloat16).astype(jnp.float32)
    y = lax.conv_general_dilated(
        x, wc, window_strides=(1, 1), padding="SAME",
        dimension_numbers=("NCHW", "OIHW", "NCHW"), precision=hi)
    y = jnp.maximum(y + bc[None, :, None, None], 0.0)
    f = jnp.mean(y, axis=(2, 3))                                  # global avg pool
    z = jnp.dot(f, params["embed_w"].T, precision=hi) + params["embed_b"]
    mu = z.mean(axis=0, keepdims=True)
    var = jnp.mean((z - mu) ** 2, axis=0, keepdims=True)          # biased (train mode)
    return (z - mu) / jnp.sqrt(var + BN_EPS) * params["bn_gamma"] + params["bn_beta"]


if __name__ == "__main__":
    key = jax.random.PRNGKey(0)
    pkey, xkey, okey = jax.random.split(key, 3)
    params = init_params(pkey)

    B, H, W = 4, 16, 16
    # Per-image offsets keep the cross-batch feature variance healthy so the
    # training-mode BatchNorm comparison is numerically well-conditioned.
    images = (0.5 * jax.random.normal(xkey, (B, C_IN, H, W), jnp.float32)
              + jax.random.normal(okey, (B, 1, 1, 1), jnp.float32))

    out = jax.block_until_ready(encoder_cnn_forward(images, params))
    assert out.shape == (B, EMBED), out.shape

    # Tight check: same bf16-quantized conv operands, independent f32 reference.
    ref_q = _reference(images, params, bf16_conv_operands=True)
    # Loose check vs. unquantized module math (bound = bf16 quantization error, amplified
    # by the BatchNorm 1/std; the embed bias is kept in the reference and must cancel
    # exactly under training-mode BN, which this also verifies).
    ref_f = _reference(images, params, bf16_conv_operands=False)

    err_q = float(jnp.max(jnp.abs(out - ref_q)))
    err_f = float(jnp.max(jnp.abs(out - ref_f)))
    assert jnp.allclose(out, ref_q, rtol=5e-3, atol=5e-3), err_q
    assert jnp.allclose(out, ref_f, rtol=5e-2, atol=5e-2), err_f
    print("KERNEL_OK")
</pallas_src>

<mosaic_0001>
module attributes {stable_mosaic.version = 11 : i64} {
  func.func @_encoder_kernel(%arg0: i32, %arg1: memref<4x1664xbf16, #tpu.memory_space<vmem>>, %arg2: memref<128x48xbf16, #tpu.memory_space<vmem>>, %arg3: memref<1536x4xf32, #tpu.memory_space<vmem>>, %arg4: memref<32x128xf32, #tpu.memory_space<vmem>>, %arg5: memref<1x32xf32, #tpu.memory_space<vmem>>, %arg6: memref<1x32xf32, #tpu.memory_space<vmem>>, %arg7: memref<4x32xf32, #tpu.memory_space<vmem>>, %arg8: memref<48x1536xbf16, #tpu.memory_space<vmem>>) attributes {dimension_semantics = [#tpu.dimension_semantics<arbitrary>], iteration_bounds = array<i64: 1>, scalar_prefetch = 0 : i64, scratch_operands = 1 : i64, tpu.core_type = #tpu.core_type<tc>, window_params = [{pipeline_mode = #tpu.pipeline_mode<synchronous>, transform_indices = @transform_0, window_bounds = array<i64: 4, 1664>}, {pipeline_mode = #tpu.pipeline_mode<synchronous>, transform_indices = @transform_1, window_bounds = array<i64: 128, 48>}, {pipeline_mode = #tpu.pipeline_mode<synchronous>, transform_indices = @transform_2, window_bounds = array<i64: 1536, 4>}, {pipeline_mode = #tpu.pipeline_mode<synchronous>, transform_indices = @transform_3, window_bounds = array<i64: 32, 128>}, {pipeline_mode = #tpu.pipeline_mode<synchronous>, transform_indices = @transform_4, window_bounds = array<i64: 1, 32>}, {pipeline_mode = #tpu.pipeline_mode<synchronous>, transform_indices = @transform_5, window_bounds = array<i64: 1, 32>}, {pipeline_mode = #tpu.pipeline_mode<synchronous>, transform_indices = @transform_6, window_bounds = array<i64: 4, 32>}]} {
    %0 = tpu.iota {dimensions = array<i32: 0>} : vector<12x1536xi32>
    %c0_i32 = arith.constant 0 : i32
    %1 = vector.broadcast %c0_i32 : i32 to vector<12x1536xi32>
    %2 = arith.cmpi eq, %0, %1 : vector<12x1536xi32>
    %cst = arith.constant 1.000000e+00 : f32
    %cst_0 = arith.constant 0.000000e+00 : f32
    %3 = vector.broadcast %cst : f32 to vector<12x1536xf32>
    %4 = vector.broadcast %cst_0 : f32 to vector<12x1536xf32>
    %5 = arith.select %2, %3, %4 : vector<12x1536xi1>, vector<12x1536xf32>
    %6 = arith.truncf %5 : vector<12x1536xf32> to vector<12x1536xbf16>
    %c36 = arith.constant 36 : index
    %c0 = arith.constant 0 : index
    %7 = vector.load %arg8[%c36, %c0] : memref<48x1536xbf16, #tpu.memory_space<vmem>>, vector<12x1536xbf16>
    tpu.vector_store %arg8[%c36, %c0], %6 {strides = array<i32>} : memref<48x1536xbf16, #tpu.memory_space<vmem>>, vector<12x1536xbf16>,
    %c0_1 = arith.constant 0 : index
    %c0_2 = arith.constant 0 : index
    %8 = vector.load %arg1[%c0_1, %c0_2] : memref<4x1664xbf16, #tpu.memory_space<vmem>>, vector<4x1536xbf16>
    %c0_3 = arith.constant 0 : index
    %c0_4 = arith.constant 0 : index
    %9 = vector.load %arg8[%c0_3, %c0_4] : memref<48x1536xbf16, #tpu.memory_space<vmem>>, vector<4x1536xbf16>
    tpu.vector_store %arg8[%c0_3, %c0_4], %8 {strides = array<i32>} : memref<48x1536xbf16, #tpu.memory_space<vmem>>, vector<4x1536xbf16>,
    %c0_5 = arith.constant 0 : index
    %c1 = arith.constant 1 : index
    %10 = vector.load %arg1[%c0_5, %c1] : memref<4x1664xbf16, #tpu.memory_space<vmem>>, vector<4x1536xbf16>
    %c4 = arith.constant 4 : index
    %c0_6 = arith.constant 0 : index
    %11 = vector.load %arg8[%c4, %c0_6] : memref<48x1536xbf16, #tpu.memory_space<vmem>>, vector<4x1536xbf16>
    tpu.vector_store %arg8[%c4, %c0_6], %10 {strides = array<i32>} : memref<48x1536xbf16, #tpu.memory_space<vmem>>, vector<4x1536xbf16>,
    %c0_7 = arith.constant 0 : index
    %c2 = arith.constant 2 : index
    %12 = vector.load %arg1[%c0_7, %c2] : memref<4x1664xbf16, #tpu.memory_space<vmem>>, vector<4x1536xbf16>
    %c8 = arith.constant 8 : index
    %c0_8 = arith.constant 0 : index
    %13 = vector.load %arg8[%c8, %c0_8] : memref<48x1536xbf16, #tpu.memory_space<vmem>>, vector<4x1536xbf16>
    tpu.vector_store %arg8[%c8, %c0_8], %12 {strides = array<i32>} : memref<48x1536xbf16, #tpu.memory_space<vmem>>, vector<4x1536xbf16>,
    %c0_9 = arith.constant 0 : index
    %c18 = arith.constant 18 : index
    %14 = vector.load %arg1[%c0_9, %c18] : memref<4x1664xbf16, #tpu.memory_space<vmem>>, vector<4x1536xbf16>
    %c12 = arith.constant 12 : index
    %c0_10 = arith.constant 0 : index
    %15 = vector.load %arg8[%c12, %c0_10] : memref<48x1536xbf16, #tpu.memory_space<vmem>>, vector<4x1536xbf16>
    tpu.vector_store %arg8[%c12, %c0_10], %14 {strides = array<i32>} : memref<48x1536xbf16, #tpu.memory_space<vmem>>, vector<4x1536xbf16>,
    %c0_11 = arith.constant 0 : index
    %c19 = arith.constant 19 : index
    %16 = vector.load %arg1[%c0_11, %c19] : memref<4x1664xbf16, #tpu.memory_space<vmem>>, vector<4x1536xbf16>
    %c16 = arith.constant 16 : index
    %c0_12 = arith.constant 0 : index
    %17 = vector.load %arg8[%c16, %c0_12] : memref<48x1536xbf16, #tpu.memory_space<vmem>>, vector<4x1536xbf16>
    tpu.vector_store %arg8[%c16, %c0_12], %16 {strides = array<i32>} : memref<48x1536xbf16, #tpu.memory_space<vmem>>, vector<4x1536xbf16>,
    %c0_13 = arith.constant 0 : index
    %c20 = arith.constant 20 : index
    %18 = vector.load %arg1[%c0_13, %c20] : memref<4x1664xbf16, #tpu.memory_space<vmem>>, vector<4x1536xbf16>
    %c20_14 = arith.constant 20 : index
    %c0_15 = arith.constant 0 : index
    %19 = vector.load %arg8[%c20_14, %c0_15] : memref<48x1536xbf16, #tpu.memory_space<vmem>>, vector<4x1536xbf16>
    tpu.vector_store %arg8[%c20_14, %c0_15], %18 {strides = array<i32>} : memref<48x1536xbf16, #tpu.memory_space<vmem>>, vector<4x1536xbf16>,
    %c0_16 = arith.constant 0 : index
    %c36_17 = arith.constant 36 : index
    %20 = vector.load %arg1[%c0_16, %c36_17] : memref<4x1664xbf16, #tpu.memory_space<vmem>>, vector<4x1536xbf16>
    %c24 = arith.constant 24 : index
    %c0_18 = arith.constant 0 : index
    %21 = vector.load %arg8[%c24, %c0_18] : memref<48x1536xbf16, #tpu.memory_space<vmem>>, vector<4x1536xbf16>
    tpu.vector_store %arg8[%c24, %c0_18], %20 {strides = array<i32>} : memref<48x1536xbf16, #tpu.memory_space<vmem>>, vector<4x1536xbf16>,
    %c0_19 = arith.constant 0 : index
    %c37 = arith.constant 37 : index
    %22 = vector.load %arg1[%c0_19, %c37] : memref<4x1664xbf16, #tpu.memory_space<vmem>>, vector<4x1536xbf16>
    %c28 = arith.constant 28 : index
    %c0_20 = arith.constant 0 : index
    %23 = vector.load %arg8[%c28, %c0_20] : memref<48x1536xbf16, #tpu.memory_space<vmem>>, vector<4x1536xbf16>
    tpu.vector_store %arg8[%c28, %c0_20], %22 {strides = array<i32>} : memref<48x1536xbf16, #tpu.memory_space<vmem>>, vector<4x1536xbf16>,
    %c0_21 = arith.constant 0 : index
    %c38 = arith.constant 38 : index
    %24 = vector.load %arg1[%c0_21, %c38] : memref<4x1664xbf16, #tpu.memory_space<vmem>>, vector<4x1536xbf16>
    %c32 = arith.constant 32 : index
    %c0_22 = arith.constant 0 : index
    %25 = vector.load %arg8[%c32, %c0_22] : memref<48x1536xbf16, #tpu.memory_space<vmem>>, vector<4x1536xbf16>
    tpu.vector_store %arg8[%c32, %c0_22], %24 {strides = array<i32>} : memref<48x1536xbf16, #tpu.memory_space<vmem>>, vector<4x1536xbf16>,
    %c0_23 = arith.constant 0 : index
    %c0_24 = arith.constant 0 : index
    %26 = vector.load %arg2[%c0_23, %c0_24] : memref<128x48xbf16, #tpu.memory_space<vmem>>, vector<128x48xbf16>
    %c0_25 = arith.constant 0 : index
    %c0_26 = arith.constant 0 : index
    %27 = vector.load %arg8[%c0_25, %c0_26] : memref<48x1536xbf16, #tpu.memory_space<vmem>>, vector<48x1536xbf16>
    %cst_27 = arith.constant dense<0.000000e+00> : vector<128x1536xf32>
    %28 = tpu.matmul %26, %27, %cst_27 {dimension_numbers = #tpu.dot_dimension_numbers<[1], [0], [0], [1], [0, 0, 1, 1], [], []>} : vector<128x48xbf16>, vector<48x1536xbf16>, vector<128x1536xf32> -> vector<128x1536xf32>
    %cst_28 = arith.constant 0.000000e+00 : f32
    %29 = vector.broadcast %cst_28 : f32 to vector<128x1536xf32>
    %30 = arith.maximumf %28, %29 : vector<128x1536xf32>
    %c0_29 = arith.constant 0 : index
    %c0_30 = arith.constant 0 : index
    %31 = vector.load %arg3[%c0_29, %c0_30] : memref<1536x4xf32, #tpu.memory_space<vmem>>, vector<1536x4xf32>
    %cst_31 = arith.constant dense<0.000000e+00> : vector<128x4xf32>
    %32 = tpu.matmul %30, %31, %cst_31 {dimension_numbers = #tpu.dot_dimension_numbers<[1], [0], [0], [1], [0, 0, 1, 1], [], []>} : vector<128x1536xf32>, vector<1536x4xf32>, vector<128x4xf32> -> vector<128x4xf32>
    %c0_32 = arith.constant 0 : index
    %c0_33 = arith.constant 0 : index
    %33 = vector.load %arg4[%c0_32, %c0_33] : memref<32x128xf32, #tpu.memory_space<vmem>>, vector<32x128xf32>
    %cst_34 = arith.constant dense<0.000000e+00> : vector<32x4xf32>
    %34 = tpu.matmul %33, %32, %cst_34 {dimension_numbers = #tpu.dot_dimension_numbers<[1], [0], [0], [1], [0, 0, 1, 1], [], []>} : vector<32x128xf32>, vector<128x4xf32>, vector<32x4xf32> -> vector<32x4xf32>
    %cst_35 = arith.constant dense<0.000000e+00> : vector<32xf32>
    %35 = vector.multi_reduction <add>, %34, %cst_35 [1] : vector<32x4xf32> to vector<32xf32>
    %36 = vector.shape_cast %35 : vector<32xf32> to vector<32x1xf32>
    %cst_36 = arith.constant 4.000000e+00 : f32
    %37 = vector.broadcast %cst_36 : f32 to vector<32x1xf32>
    %38 = arith.divf %36, %37 : vector<32x1xf32>
    %39 = vector.broadcast %38 : vector<32x1xf32> to vector<32x4xf32>
    %40 = arith.subf %34, %39 : vector<32x4xf32>
    %41 = arith.mulf %40, %40 : vector<32x4xf32>
    %cst_37 = arith.constant dense<0.000000e+00> : vector<32xf32>
    %42 = vector.multi_reduction <add>, %41, %cst_37 [1] : vector<32x4xf32> to vector<32xf32>
    %43 = vector.shape_cast %42 : vector<32xf32> to vector<32x1xf32>
    %cst_38 = arith.constant 4.000000e+00 : f32
    %44 = vector.broadcast %cst_38 : f32 to vector<32x1xf32>
    %45 = arith.divf %43, %44 : vector<32x1xf32>
    %cst_39 = arith.constant 9.99999974E-6 : f32
    %46 = vector.broadcast %cst_39 : f32 to vector<32x1xf32>
    %47 = arith.addf %45, %46 : vector<32x1xf32>
    %48 = math.rsqrt %47 : vector<32x1xf32>
    %49 = vector.broadcast %48 : vector<32x1xf32> to vector<32x4xf32>
    %50 = arith.mulf %40, %49 : vector<32x4xf32>
    %51 = tpu.transpose %50, [1, 0] : vector<32x4xf32> -> vector<4x32xf32>
    %c0_40 = arith.constant 0 : index
    %c0_41 = arith.constant 0 : index
    %52 = vector.load %arg5[%c0_40, %c0_41] : memref<1x32xf32, #tpu.memory_space<vmem>>, vector<1x32xf32>
    %53 = vector.broadcast %52 : vector<1x32xf32> to vector<4x32xf32>
    %54 = arith.mulf %51, %53 : vector<4x32xf32>
    %c0_42 = arith.constant 0 : index
    %c0_43 = arith.constant 0 : index
    %55 = vector.load %arg6[%c0_42, %c0_43] : memref<1x32xf32, #tpu.memory_space<vmem>>, vector<1x32xf32>
    %56 = vector.broadcast %55 : vector<1x32xf32> to vector<4x32xf32>
    %57 = arith.addf %54, %56 : vector<4x32xf32>
    %c0_44 = arith.constant 0 : index
    %c0_45 = arith.constant 0 : index
    %58 = vector.load %arg7[%c0_44, %c0_45] : memref<4x32xf32, #tpu.memory_space<vmem>>, vector<4x32xf32>
    tpu.vector_store %arg7[%c0_44, %c0_45], %57 {strides = array<i32>} : memref<4x32xf32, #tpu.memory_space<vmem>>, vector<4x32xf32>,
    return
  }
  func.func @transform_0(%arg0: i32) -> (i32, i32) {
    %c0_i32 = arith.constant 0 : i32
    %c0_i32_0 = arith.constant 0 : i32
    %c0_i32_1 = arith.constant 0 : i32
    return %c0_i32, %c0_i32_0 : i32, i32
  }
  func.func @transform_1(%arg0: i32) -> (i32, i32) {
    %c0_i32 = arith.constant 0 : i32
    %c0_i32_0 = arith.constant 0 : i32
    %c0_i32_1 = arith.constant 0 : i32
    return %c0_i32, %c0_i32_0 : i32, i32
  }
  func.func @transform_2(%arg0: i32) -> (i32, i32) {
    %c0_i32 = arith.constant 0 : i32
    %c0_i32_0 = arith.constant 0 : i32
    %c0_i32_1 = arith.constant 0 : i32
    return %c0_i32, %c0_i32_0 : i32, i32
  }
  func.func @transform_3(%arg0: i32) -> (i32, i32) {
    %c0_i32 = arith.constant 0 : i32
    %c0_i32_0 = arith.constant 0 : i32
    %c0_i32_1 = arith.constant 0 : i32
    return %c0_i32, %c0_i32_0 : i32, i32
  }
  func.func @transform_4(%arg0: i32) -> (i32, i32) {
    %c0_i32 = arith.constant 0 : i32
    %c0_i32_0 = arith.constant 0 : i32
    %c0_i32_1 = arith.constant 0 : i32
    return %c0_i32, %c0_i32_0 : i32, i32
  }
  func.func @transform_5(%arg0: i32) -> (i32, i32) {
    %c0_i32 = arith.constant 0 : i32
    %c0_i32_0 = arith.constant 0 : i32
    %c0_i32_1 = arith.constant 0 : i32
    return %c0_i32, %c0_i32_0 : i32, i32
  }
  func.func @transform_6(%arg0: i32) -> (i32, i32) {
    %c0_i32 = arith.constant 0 : i32
    %c0_i32_0 = arith.constant 0 : i32
    %c0_i32_1 = arith.constant 0 : i32
    return %c0_i32, %c0_i32_0 : i32, i32
  }
}

</mosaic_0001>

<bundles_post_ra>
// kernel: encoder_cnn_forward.1
= control target key start
LH: loop header
LB: loop body
LE: loop exit
PB: predicated region body
PF: predicated region fallthrough
CT: control target
= control target key end

     0   :  { %v25_v0 = vlaneseq  ;;  %v4332_v3 = vmov 1983009808   ;;  %s4333_s25 = smov 126   ;;  %s4334_s26 = smov 127   ;;  %s5740_s0 = inlined_call_operand.vmem [shape: bf16[4,1664], index: 0, kind: input, shape index: {}]   ;;  %s5741_s1 = inlined_call_operand.vmem [shape: bf16[128,48], index: 1, kind: input, shape index: {}]   ;;  %s5742_s2 = inlined_call_operand.vmem [shape: f32[1536,4], index: 2, kind: input, shape index: {}]   ;;  %s5743_s3 = inlined_call_operand.vmem [shape: f32[32,128], index: 3, kind: input, shape index: {}]   ;;  %s5744_s4 = inlined_call_operand.vmem [shape: f32[1,32], index: 4, kind: input, shape index: {}]   ;;  %s5745_s5 = inlined_call_operand.vmem [shape: f32[1,32], index: 5, kind: input, shape index: {}]   ;;  %s5746_s6 = inlined_call_operand.hbm [shape: f32[4,32], index: 6, kind: output, shape index: {}]  }
   0x1   :  { %v259_v1 = vld [vmem:[%s5740_s0] sm:$0xff]  ;;  %v130_v2 = vld [vmem:[%s5740_s0 + $0x8] sm:$0xff]  ;;  %v56_v4 = vunpack.c.l.s4 %v4332_v3 }
   0x2   :  { %v267_v5 = vcombine.high %v259_v1, %v259_v1  ;;  %3425 = vst.sshfl [vmem:[#allocation2] sm:$0x3 pattern:$0x76325410] %v259_v1  ;;  %v4385_v6 = vshrl.u32 %v25_v0, 7  ;;  %v4387_v7 = vcombine.high %v130_v2, %v130_v2  ;;  %v137_v10 = vcombine.low %v259_v1, %v259_v1 }
   0x3   :  { %3427 = vst.sshfl [vmem:[#allocation2 + $0x20] sm:$0x3 pattern:$0x76325410] %v130_v2  ;;  %v57_v8 = vunpack.c.0.s8 %v56_v4 }
   0x4   :  { %3426 = vst.sshfl [vmem:[#allocation2 + $0x10] sm:$0x3 pattern:$0x76325410] %v267_v5 }
   0x5   :  { %3428 = vst.sshfl [vmem:[#allocation2 + $0x30] sm:$0x3 pattern:$0x76325410] %v4387_v7  ;;  %v4391_v9 = vsub.s32 %v57_v8, %v4385_v6 }
   0x7   :  { %v4394_v11 = vrot.slane %v259_v1, %v4391_v9  ;;  %v4397_v12 = vrot.slane %v267_v5, %v4391_v9  ;;  %v144_v13 = vrot.slane %v137_v10, %v4391_v9 }
   0x9   :  { %328 = vrot.lane.b32.xlu1 %v4394_v11, %s4333_s25  ;;  %200 = vrot.lane.b32.xlu0 %v4394_v11, %s4334_s26  ;;  %v283_v14 = vcombine.low %v4397_v12, %v4397_v12 }
   0xa   :  { %11 = vsyncpa [#allocation4], 0  ;;  %v282_v15 = vcombine.low %v4394_v11, %v4394_v11  ;;  %s4335_s27 = smov 110   ;;  %v152_v16 = vcombine.high %v144_v13, %v144_v13  ;;  %v69_v17 = vcombine.high %v4394_v11, %v4394_v11  ;;  %v412_v18 = vcombine.low %v144_v13, %v144_v13  ;;  %s4336_s28 = smov 109   ;;  %v4500_v34 = vld [vmem:[%s5740_s0 + $0x10] sm:$0xff] }
   0xb   :  { %v154_v19 = vcombine.low %v130_v2, %v130_v2  ;;  %v70_v20 = vcombine.high %v4397_v12, %v4397_v12  ;;  %v4424_v22 = vrot.slane %v130_v2, %v4391_v9  ;;  %s4337_s29 = smov 108   ;;  %s4338_s30 = smov 92   ;;  %vm28_vm0 = vcmp.eq.s32.totalorder %v4385_v6, 0  ;;  %v50_v0 = vld [vmem:[%s5740_s0 + $0x10] sm:$0xff] }
   0xc   :  { %118 = vst [vmem:[#allocation2 + $0x8] sm:$0x3] %v69_v17  ;;  %s4339_s7 = smov 91   ;;  %v4340_v25 = vmov 0.0   ;;  %s4341_s8 = smov 90   ;;  %v4342_v29 = vmov 0   ;;  %v4489_v32 = vrot.slane %v4387_v7, %v4391_v9  ;;  %v171_v35 = vcombine.low %v4500_v34, %v4500_v34 }
   0xd   :  { %330 = vrot.lane.b32.xlu1 %v283_v14, %s4333_s25  ;;  %459 = vrot.lane.b32.xlu0 %v144_v13, %s4335_s27  ;;  %v4421_v21 = vrot.slane %v154_v19, %v4391_v9  ;;  %120 = vst [vmem:[#allocation2 + $0x18] sm:$0x3] %v70_v20  ;;  %v4432_v23 = vcombine.low %v4424_v22, %v4424_v22  ;;  %v30_v26 = vsel %vm28_vm0, 1.0, %v4340_v25  ;;  %vm352_vm1 = vcmask 1031168   ;;  %s4343_s17 = smov [#allocation3]  }
   0xe   :  { %v32_v27 = vpack.c.bf16 %v4340_v25, %v30_v26  ;;  %1318 = vmatprep.mubr.bf16.mxu0 %v4342_v29  ;;  %1431 = vmatprep.mubr.bf16.mxu1 %v4342_v29  ;;  %v4480_v30 = vcombine.high %v4424_v22, %v4424_v22  ;;  %v300_v33 = vcombine.low %v4489_v32, %v4489_v32  ;;  %vm483_vm2 = vcmask 900096   ;;  %v4288_v19 = vld [vmem:[%s5740_s0 + $0x18] ss:$0 sps:$4 sm:$0x33]   ;;  %s3417_s18 = sshll.u32 %s4343_s17, 4  ;;  %s3418_s18 = int_to_ptr.vmem [resolvable:$true] %s3417_s18 }
   0xf   :  { %v429_v24 = vcombine.low %v4421_v21, %v4421_v21  ;;  %v169_v31 = vcombine.high %v4421_v21, %v4421_v21  ;;  %v4509_v36 = vcombine.high %v4489_v32, %v4489_v32  ;;  %v4516_v37 = vrot.slane %v171_v35, %v4391_v9  ;;  %3429 = vst.sshfl [vmem:[#allocation2 + $0x40] sm:$0x3 pattern:$0x76325410] %v50_v0  ;;  %s4308_s19 = scalar_lea.vmem %s3418_s18, 64  ;;  %p4313_p1 = scmp.lt.s32.totalorder %s3418_s18, %s3418_s18 }
  0x10   :  { %v34_v28 = vrot.slane %v32_v27, 6  ;;  %122 = vst [vmem:[#allocation2 + $0x28] sm:$0x3] %v4480_v30  ;;  %v4520_v38 = vrot.slane %v4500_v34, %v4391_v9  ;;  %vm222_vm3 = vcmask 1039360   ;;  %v1082_v63 = vcombine.high %v4500_v34, %v4500_v34  ;;  %p4309_p0 = scmp.ne.s32.totalorder %s3418_s18, %s4308_s19  ;;  %p4314_p2 = scmp.lt.s32.totalorder %s4308_s19, %s4308_s19 }
  0x11   :  { %461 = vrot.lane.b32.xlu1 %v282_v15, %s4335_s27  ;;  %198 = vrot.lane.b32.xlu0 %v152_v16, %s4334_s26  ;;  %124 = vst [vmem:[#allocation2 + $0x38] sm:$0x3] %v4509_v36  ;;  %v446_v40 = vcombine.low %v4516_v37, %v4516_v37  ;;  %v95_v1 = vrot.slane %v50_v0, %v4391_v9  ;;  %vm612_vm4 = vcmask 891904   ;;  %vm742_vm5 = vcmask 883712  }
  0x12   :  { %37 = vst [vmem:[#allocation2 + $0xc8] sm:$0xfc] %v34_v28  ;;  %36 = vst [vmem:[#allocation2 + $0xc0] sm:$0xfc] %v34_v28  ;;  %v4529_v39 = vcombine.low %v4520_v38, %v4520_v38  ;;  %v4602_v8 = vcombine.high %v4516_v37, %v4516_v37  ;;  %v4605_v10 = vrot.slane %v1082_v63, %v4391_v9  ;;  %vm872_vm6 = vcmask 752640   ;;  %p4315_p3 = por %p4314_p2, %p4313_p1 }
  0x13   :  { %38 = vst [vmem:[#allocation2 + $0xd0] sm:$0xfc] %v34_v28  ;;  %39 = vst [vmem:[#allocation2 + $0xd8] sm:$0xfc] %v34_v28  ;;  %v103_v7 = vcombine.high %v95_v1, %v95_v1  ;;  %v195_v26 = vrot.slane %v4288_v19, %v4391_v9  ;;  %v4636_v27 = vcombine.high %v4520_v38, %v4520_v38  ;;  %vm1003_vm7 = vcmask 744448  }
  0x14   :  { %40 = vst [vmem:[#allocation2 + $0xe0] sm:$0xfc] %v34_v28  ;;  %41 = vst [vmem:[#allocation2 + $0xe8] sm:$0xfc] %v34_v28  ;;  %vm1132_vm8 = vcmask 736256   ;;  %vm1261_vm9 = vcmask 392192   ;;  %p4316_p4 = pnand %p4315_p3, %p4309_p0 }
  0x15   :  { %326 = vrot.lane.b32.xlu1 %v282_v15, %s4333_s25  ;;  %196 = vrot.lane.b32.xlu0 %v144_v13, %s4334_s26  ;;  %42 = vst [vmem:[#allocation2 + $0xf0] sm:$0xfc] %v34_v28  ;;  %43 = vst [vmem:[#allocation2 + $0xf8] sm:$0xfc] %v34_v28  ;;  %vm3307_vm10 = vcmask 31744   ;;  %vm3409_vm11 = vcmask 257024  }
  0x16   :  { %44 = vst [vmem:[#allocation2 + $0x100] sm:$0xfc] %v34_v28  ;;  %45 = vst [vmem:[#allocation2 + $0x108] sm:$0xfc] %v34_v28 }
  0x17   :  { %46 = vst [vmem:[#allocation2 + $0x110] sm:$0xfc] %v34_v28  ;;  %47 = vst [vmem:[#allocation2 + $0x118] sm:$0xfc] %v34_v28 }
  0x18   :  { %126 = vst [vmem:[#allocation2 + $0x48] sm:$0x3] %v103_v7  ;;  %v4289_v28 = vld [vmem:[%s5740_s0 + $0x18] ss:$0 sps:$4 sm:$0x33]  }
  0x19   :  { %202 = vrot.lane.b32.xlu1 %v69_v17, %s4334_s26  ;;  %457 = vrot.lane.b32.xlu0 %v412_v18, %s4335_s27 }
  0x1d   :  { %332 = vrot.lane.b32.xlu1 %v4397_v12, %s4333_s25  ;;  %204 = vrot.lane.b32.xlu0 %v4421_v21, %s4334_s26 }
  0x21   :  { %463 = vrot.lane.b32.xlu1 %v4394_v11, %s4335_s27  ;;  %334 = vrot.lane.b32.xlu0 %v4432_v23, %s4333_s25 }
  0x25   :  { %588 = vrot.lane.b32.xlu1 %v69_v17, %s4336_s28  ;;  %465 = vrot.lane.b32.xlu0 %v429_v24, %s4335_s27 }
  0x29   :  { %718 = vrot.lane.b32.xlu1 %v152_v16, %s4337_s29  ;;  %590 = vrot.lane.b32.xlu0 %v4397_v12, %s4336_s28 }
  0x2d   :  { %848 = vrot.lane.b32.xlu1 %v4394_v11, %s4338_s30  ;;  %720 = vrot.lane.b32.xlu0 %v4394_v11, %s4337_s29 }
  0x31   :  { %979 = vrot.lane.b32.xlu1 %v144_v13, %s4339_s7  ;;  %850 = vrot.lane.b32.xlu0 %v283_v14, %s4338_s30  ;;  %v4617_v14 = vcombine.low %v4605_v10, %v4605_v10 }
  0x35   :  { %586 = vrot.lane.b32.xlu1 %v4394_v11, %s4336_s28  ;;  %981 = vrot.lane.b32.xlu0 %v282_v15, %s4339_s7 }
  0x39   :  { %846 = vrot.lane.b32.xlu1 %v282_v15, %s4338_s30  ;;  %716 = vrot.lane.b32.xlu0 %v144_v13, %s4337_s29 }
  0x3d   :  { %592 = vrot.lane.b32.xlu1 %v70_v20, %s4336_s28  ;;  %977 = vrot.lane.b32.xlu0 %v412_v18, %s4339_s7  ;;  %v88_v18 = vcombine.high %v50_v0, %v50_v0 }
  0x3f   :  { %3430 = vst.sshfl [vmem:[#allocation2 + $0x50] sm:$0x3 pattern:$0x76325410] %v88_v18 }
  0x41   :  { %722 = vrot.lane.b32.xlu1 %v69_v17, %s4337_s29  ;;  %594 = vrot.lane.b32.xlu0 %v4424_v22, %s4336_s28 }
  0x45   :  { %852 = vrot.lane.b32.xlu1 %v4397_v12, %s4338_s30  ;;  %724 = vrot.lane.b32.xlu0 %v4421_v21, %s4337_s29 }
  0x49   :  { %983 = vrot.lane.b32.xlu1 %v4394_v11, %s4339_s7  ;;  %854 = vrot.lane.b32.xlu0 %v4432_v23, %s4338_s30 }
  0x4d   :  { %1108 = vrot.lane.b32.xlu1 %v69_v17, %s4341_s8  ;;  %985 = vrot.lane.b32.xlu0 %v429_v24, %s4339_s7 }
  0x51   :  { %1106 = vrot.lane.b32.xlu1 %v4394_v11, %s4341_s8  ;;  %1110 = vrot.lane.b32.xlu0 %v4397_v12, %s4341_s8 }
  0x55   :  { %1114 = vrot.lane.b32.xlu1 %v4424_v22, %s4341_s8  ;;  %1112 = vrot.lane.b32.xlu0 %v70_v20, %s4341_s8  ;;  %v102_v20 = vrot.slane %v88_v18, %v4391_v9 }
  0x57   :  { %v104_v25 = vcombine.high %v102_v20, %v102_v20 }
  0x59   :  { %208 = vrot.lane.b32.xlu1 %v4424_v22, %s4334_s26  ;;  %206 = vrot.lane.b32.xlu0 %v169_v31, %s4334_s26  ;;  %128 = vst [vmem:[#allocation2 + $0x58] sm:$0x3] %v104_v25 }
  0x5d   :  { %338 = vrot.lane.b32.xlu1 %v300_v33, %s4333_s25  ;;  %336 = vrot.lane.b32.xlu0 %v4424_v22, %s4333_s25 }
  0x61   :  { %469 = vrot.lane.b32.xlu1 %v4432_v23, %s4335_s27  ;;  %467 = vrot.lane.b32.xlu0 %v4421_v21, %s4335_s27 }
  0x65   :  { %212 = vrot.lane.b32.xlu1 %v4516_v37, %s4334_s26  ;;  %210 = vrot.lane.b32.xlu0 %v4480_v30, %s4334_s26 }
  0x69   :  { %342 = vrot.lane.b32.xlu1 %v4529_v39, %s4333_s25  ;;  %340 = vrot.lane.b32.xlu0 %v4489_v32, %s4333_s25 }
  0x6d   :  { %473 = vrot.lane.b32.xlu1 %v446_v40, %s4335_s27  ;;  %471 = vrot.lane.b32.xlu0 %v4424_v22, %s4335_s27 }
  0x71   :  { %598 = vrot.lane.b32.xlu1 %v4489_v32, %s4336_s28  ;;  %596 = vrot.lane.b32.xlu0 %v4480_v30, %s4336_s28 }
  0x75   :  { %728 = vrot.lane.b32.xlu1 %v4424_v22, %s4337_s29  ;;  %726 = vrot.lane.b32.xlu0 %v169_v31, %s4337_s29  ;;  %v4644_v31 = vld.sshfl [vmem:[%s5740_s0 + $0x18] sm:$0x3 pattern:$0x76325410] }
  0x76   :  { %v4652_v35 = vcombine.low %v4644_v31, %v4644_v31 }
  0x79   :  { %858 = vrot.lane.b32.xlu1 %v300_v33, %s4338_s30  ;;  %856 = vrot.lane.b32.xlu0 %v4424_v22, %s4338_s30 }
  0x7b   :  { %v329_v41 = vpop.permute.xlu1 %328  ;;  %v201_v42 = vpop.permute.xlu0 %200 }
  0x7d   :  { %989 = vrot.lane.b32.xlu1 %v4432_v23, %s4339_s7  ;;  %987 = vrot.lane.b32.xlu0 %v4421_v21, %s4339_s7 }
  0x7f   :  { %v331_v43 = vpop.permute.xlu1 %330  ;;  %v460_v44 = vpop.permute.xlu0 %459 }
  0x80   :  { %v354_v45 = vsel %vm352_vm1, %v329_v41, %v331_v43 }
  0x81   :  { %378 = vst [vmem:[#allocation2 + $0x8] sm:$0x30] %v354_v45  ;;  %602 = vrot.lane.b32.xlu1 %v4520_v38, %s4336_s28  ;;  %600 = vrot.lane.b32.xlu0 %v4509_v36, %s4336_s28 }
  0x83   :  { %v462_v46 = vpop.permute.xlu1 %461  ;;  %v199_v47 = vpop.permute.xlu0 %198 }
  0x84   :  { %v485_v48 = vsel %vm483_vm2, %v460_v44, %v462_v46  ;;  %v224_v49 = vsel %vm222_vm3, %v199_v47, %v201_v42 }
  0x85   :  { %509 = vst [vmem:[#allocation2 + $0x8] sm:$0xc0] %v485_v48  ;;  %248 = vst [vmem:[#allocation2 + $0x8] sm:$0xc] %v224_v49  ;;  %732 = vrot.lane.b32.xlu1 %v4516_v37, %s4337_s29  ;;  %730 = vrot.lane.b32.xlu0 %v4480_v30, %s4337_s29 }
  0x87   :  { %v327_v50 = vpop.permute.xlu1 %326  ;;  %v197_v51 = vpop.permute.xlu0 %196 }
  0x88   :  { %v353_v52 = vsel %vm352_vm1, %v327_v50, %v329_v41  ;;  %v223_v53 = vsel %vm222_vm3, %v197_v51, %v199_v47 }
  0x89   :  { %377 = vst [vmem:[#allocation2] sm:$0x30] %v353_v52  ;;  %247 = vst [vmem:[#allocation2] sm:$0xc] %v223_v53  ;;  %862 = vrot.lane.b32.xlu1 %v4529_v39, %s4338_s30  ;;  %860 = vrot.lane.b32.xlu0 %v4489_v32, %s4338_s30 }
  0x8b   :  { %v203_v54 = vpop.permute.xlu1 %202  ;;  %v458_v55 = vpop.permute.xlu0 %457 }
  0x8c   :  { %v225_v56 = vsel %vm222_vm3, %v201_v42, %v203_v54  ;;  %v484_v57 = vsel %vm483_vm2, %v458_v55, %v460_v44  ;;  %v1186_v58 = vld [vmem:[#allocation2 + $0x8] sm:$0xff] }
  0x8d   :  { %249 = vst [vmem:[#allocation2 + $0x10] sm:$0xc] %v225_v56  ;;  %508 = vst [vmem:[#allocation2] sm:$0xc0] %v484_v57  ;;  %993 = vrot.lane.b32.xlu1 %v446_v40, %s4339_s7  ;;  %991 = vrot.lane.b32.xlu0 %v4424_v22, %s4339_s7 }
  0x8e   :  { %1286 = vmatprep.subr.bf16.mxu0 %v1186_v58 }
  0x8f   :  { %v333_v59 = vpop.permute.xlu1 %332  ;;  %v4576_v60 = vpop.permute.xlu0 %204 }
  0x90   :  { %v355_v61 = vsel %vm352_vm1, %v331_v43, %v333_v59  ;;  %v226_v62 = vsel %vm222_vm3, %v203_v54, %v4576_v60 }
  0x91   :  { %379 = vst [vmem:[#allocation2 + $0x10] sm:$0x30] %v355_v61  ;;  %250 = vst [vmem:[#allocation2 + $0x18] sm:$0xc] %v226_v62  ;;  %1118 = vrot.lane.b32.xlu1 %v4489_v32, %s4341_s8  ;;  %1116 = vrot.lane.b32.xlu0 %v4480_v30, %s4341_s8 }
  0x93   :  { %v464_v2 = vpop.permute.xlu1 %463  ;;  %v4591_v3 = vpop.permute.xlu0 %334 }
  0x94   :  { %v486_v4 = vsel %vm483_vm2, %v462_v46, %v464_v2  ;;  %v356_v5 = vsel %vm352_vm1, %v333_v59, %v4591_v3  ;;  %v1185_v6 = vld [vmem:[#allocation2] sm:$0xff] }
  0x95   :  { %510 = vst [vmem:[#allocation2 + $0x10] sm:$0xc0] %v486_v4  ;;  %380 = vst [vmem:[#allocation2 + $0x18] sm:$0x30] %v356_v5  ;;  %1122 = vrot.lane.b32.xlu1 %v4520_v38, %s4341_s8  ;;  %1120 = vrot.lane.b32.xlu0 %v4509_v36, %s4341_s8  ;;  %v455_v36 = vrot.slane %v4289_v28, %v4391_v9  ;;  %v4701_v5 = vcombine.high %v4605_v10, %v4605_v10 }
  0x96   :  { %1287 = vmatpush1.bf16.msra.mxu0 %v1185_v6  ;;  %v4290_v6 = vld [vmem:[%s5740_s0 + $0x18] ss:$0 sps:$4 sm:$0x33]  }
  0x97   :  { %v589_v11 = vpop.permute.xlu1 %588  ;;  %v4607_v12 = vpop.permute.xlu0 %465  ;;  %v456_v44 = vcombine.low %v455_v36, %v455_v36 }
  0x98   :  { %v487_v13 = vsel %vm483_vm2, %v464_v2, %v4607_v12 }
  0x99   :  { %511 = vst [vmem:[#allocation2 + $0x18] sm:$0xc0] %v487_v13  ;;  %216 = vrot.lane.b32.xlu1 %v4520_v38, %s4334_s26  ;;  %214 = vrot.lane.b32.xlu0 %v4602_v8, %s4334_s26 }
  0x9b   :  { %v719_v15 = vpop.permute.xlu1 %718  ;;  %v591_v16 = vpop.permute.xlu0 %590 }
  0x9c   :  { %v614_v17 = vsel %vm612_vm4, %v589_v11, %v591_v16  ;;  %v1187_v30 = vld [vmem:[#allocation2 + $0x10] sm:$0xff] }
  0x9d   :  { %638 = vst [vmem:[#allocation2 + $0x68] sm:$0x3] %v614_v17  ;;  %346 = vrot.lane.b32.xlu1 %v4617_v14, %s4333_s25  ;;  %344 = vrot.lane.b32.xlu0 %v4520_v38, %s4333_s25 }
  0x9f   :  { %v849_v21 = vpop.permute.xlu1 %848  ;;  %v721_v22 = vpop.permute.xlu0 %720 }
  0xa0   :  { %v744_v23 = vsel %vm742_vm5, %v719_v15, %v721_v22  ;;  %v1188_v24 = vld [vmem:[#allocation2 + $0x18] sm:$0xff] }
  0xa1   :  { %768 = vst [vmem:[#allocation2 + $0x68] sm:$0xc] %v744_v23  ;;  %477 = vrot.lane.b32.xlu1 %v4529_v39, %s4335_s27  ;;  %475 = vrot.lane.b32.xlu0 %v4516_v37, %s4335_s27 }
  0xa2   :  { %1399 = vmatprep.subr.bf16.mxu1 %v1188_v24 }
  0xa3   :  { %1400 = vmatpush1.bf16.msra.mxu1 %v1187_v30  ;;  %v980_v32 = vpop.permute.xlu1 %979  ;;  %v851_v33 = vpop.permute.xlu0 %850 }
  0xa4   :  { %v874_v34 = vsel %vm872_vm6, %v849_v21, %v851_v33 }
  0xa5   :  { %898 = vst [vmem:[#allocation2 + $0x68] sm:$0x30] %v874_v34  ;;  %220 = vrot.lane.b32.xlu1 %v195_v26, %s4334_s26  ;;  %218 = vrot.lane.b32.xlu0 %v4636_v27, %s4334_s26 }
  0xa7   :  { %v587_v40 = vpop.permute.xlu1 %586  ;;  %v982_v41 = vpop.permute.xlu0 %981 }
  0xa8   :  { %v613_v42 = vsel %vm612_vm4, %v587_v40, %v589_v11  ;;  %v1005_v43 = vsel %vm1003_vm7, %v980_v32, %v982_v41 }
  0xa9   :  { %637 = vst [vmem:[#allocation2 + $0x60] sm:$0x3] %v613_v42  ;;  %1029 = vst [vmem:[#allocation2 + $0x68] sm:$0xc0] %v1005_v43  ;;  %350 = vrot.lane.b32.xlu1 %v4652_v35, %s4333_s25  ;;  %348 = vrot.lane.b32.xlu0 %v4605_v10, %s4333_s25 }
  0xab   :  { %v847_v45 = vpop.permute.xlu1 %846  ;;  %v717_v46 = vpop.permute.xlu0 %716 }
  0xac   :  { %v873_v47 = vsel %vm872_vm6, %v847_v45, %v849_v21  ;;  %v743_v48 = vsel %vm742_vm5, %v717_v46, %v719_v15 }
  0xad   :  { %897 = vst [vmem:[#allocation2 + $0x60] sm:$0x30] %v873_v47  ;;  %767 = vst [vmem:[#allocation2 + $0x60] sm:$0xc] %v743_v48  ;;  %481 = vrot.lane.b32.xlu1 %v456_v44, %s4335_s27  ;;  %479 = vrot.lane.b32.xlu0 %v4520_v38, %s4335_s27 }
  0xaf   :  { %v593_v49 = vpop.permute.xlu1 %592  ;;  %v978_v50 = vpop.permute.xlu0 %977 }
  0xb0   :  { %v615_v51 = vsel %vm612_vm4, %v591_v16, %v593_v49  ;;  %v1004_v52 = vsel %vm1003_vm7, %v978_v50, %v980_v32  ;;  %v1198_v53 = vld [vmem:[#allocation2 + $0x68] sm:$0xff] }
  0xb1   :  { %639 = vst [vmem:[#allocation2 + $0x70] sm:$0x3] %v615_v51  ;;  %1028 = vst [vmem:[#allocation2 + $0x60] sm:$0xc0] %v1004_v52  ;;  %606 = vrot.lane.b32.xlu1 %v4605_v10, %s4336_s28  ;;  %604 = vrot.lane.b32.xlu0 %v4636_v27, %s4336_s28  ;;  %v4787_v51 = vld [vmem:[%s5741_s1 + $0x10] sm:$0xff]  }
  0xb2   :  { %1288 = vmatprep.subr.bf16.mxu0 %v1198_v53 }
  0xb3   :  { %v723_v54 = vpop.permute.xlu1 %722  ;;  %v4672_v55 = vpop.permute.xlu0 %594 }
  0xb4   :  { %v745_v56 = vsel %vm742_vm5, %v721_v22, %v723_v54  ;;  %v616_v57 = vsel %vm612_vm4, %v593_v49, %v4672_v55 }
  0xb5   :  { %769 = vst [vmem:[#allocation2 + $0x70] sm:$0xc] %v745_v56  ;;  %640 = vst [vmem:[#allocation2 + $0x78] sm:$0x3] %v616_v57  ;;  %736 = vrot.lane.b32.xlu1 %v4520_v38, %s4337_s29  ;;  %734 = vrot.lane.b32.xlu0 %v4602_v8, %s4337_s29 }
  0xb7   :  { %v853_v58 = vpop.permute.xlu1 %852  ;;  %v4681_v59 = vpop.permute.xlu0 %724 }
  0xb8   :  { %v875_v61 = vsel %vm872_vm6, %v851_v33, %v853_v58  ;;  %v746_v62 = vsel %vm742_vm5, %v723_v54, %v4681_v59  ;;  %v1197_v63 = vld [vmem:[#allocation2 + $0x60] sm:$0xff] }
  0xb9   :  { %899 = vst [vmem:[#allocation2 + $0x70] sm:$0x30] %v875_v61  ;;  %770 = vst [vmem:[#allocation2 + $0x78] sm:$0xc] %v746_v62  ;;  %866 = vrot.lane.b32.xlu1 %v4617_v14, %s4338_s30  ;;  %864 = vrot.lane.b32.xlu0 %v4520_v38, %s4338_s30  ;;  %v4742_v33 = vld [vmem:[%s5741_s1] sm:$0xff]  }
  0xba   :  { %1289 = vmatpush1.bf16.msra.mxu0 %v1197_v63  ;;  %v4806_v63 = vld [vmem:[%s5741_s1 + $0x18] sm:$0xff]  }
  0xbb   :  { %v984_v0 = vpop.permute.xlu1 %983  ;;  %v4690_v1 = vpop.permute.xlu0 %854 }
  0xbc   :  { %v1006_v2 = vsel %vm1003_vm7, %v982_v41, %v984_v0  ;;  %v876_v4 = vsel %vm872_vm6, %v853_v58, %v4690_v1 }
  0xbd   :  { %1030 = vst [vmem:[#allocation2 + $0x70] sm:$0xc0] %v1006_v2  ;;  %900 = vst [vmem:[#allocation2 + $0x78] sm:$0x30] %v876_v4  ;;  %997 = vrot.lane.b32.xlu1 %v4529_v39, %s4339_s7  ;;  %995 = vrot.lane.b32.xlu0 %v4516_v37, %s4339_s7  ;;  %v715_v37 = vrot.slane %v4290_v6, %v4391_v9 }
  0xbe   :  { %v4291_v39 = vld [vmem:[%s5740_s0 + $0x18] ss:$0 sps:$4 sm:$0x33]  }
  0xbf   :  { %v1109_v7 = vpop.permute.xlu1 %1108  ;;  %v4706_v8 = vpop.permute.xlu0 %985  ;;  %v975_v17 = vrot.slane %v4291_v39, %v4391_v9  ;;  %v4823_v39 = vld [vmem:[%s5741_s1 + $0x20] sm:$0xff]  }
  0xc0   :  { %v1007_v11 = vsel %vm1003_vm7, %v984_v0, %v4706_v8 }
  0xc1   :  { %1031 = vst [vmem:[#allocation2 + $0x78] sm:$0xc0] %v1007_v11  ;;  %610 = vrot.lane.b32.xlu1 %v4644_v31, %s4336_s28  ;;  %608 = vrot.lane.b32.xlu0 %v4701_v5, %s4336_s28  ;;  %v976_v23 = vcombine.low %v975_v17, %v975_v17 }
  0xc3   :  { %v1107_v13 = vpop.permute.xlu1 %1106  ;;  %v1111_v14 = vpop.permute.xlu0 %1110 }
  0xc4   :  { %v1133_v15 = vsel %vm1132_vm8, %v1107_v13, %v1109_v7  ;;  %v1134_v16 = vsel %vm1132_vm8, %v1109_v7, %v1111_v14  ;;  %v1199_v9 = vld [vmem:[#allocation2 + $0x70] sm:$0xff] }
  0xc5   :  { %1157 = vst [vmem:[#allocation2 + $0xc0] sm:$0x3] %v1133_v15  ;;  %1158 = vst [vmem:[#allocation2 + $0xc8] sm:$0x3] %v1134_v16  ;;  %740 = vrot.lane.b32.xlu1 %v715_v37, %s4337_s29  ;;  %738 = vrot.lane.b32.xlu0 %v4636_v27, %s4337_s29 }
  0xc7   :  { %v4724_v18 = vpop.permute.xlu1 %1114  ;;  %v1113_v19 = vpop.permute.xlu0 %1112 }
  0xc8   :  { %v1135_v20 = vsel %vm1132_vm8, %v1111_v14, %v1113_v19  ;;  %v1136_v21 = vsel %vm1132_vm8, %v1113_v19, %v4724_v18  ;;  %v1200_v22 = vld [vmem:[#allocation2 + $0x78] sm:$0xff] }
  0xc9   :  { %1159 = vst [vmem:[#allocation2 + $0xd0] sm:$0x3] %v1135_v20  ;;  %1160 = vst [vmem:[#allocation2 + $0xd8] sm:$0x3] %v1136_v21  ;;  %870 = vrot.lane.b32.xlu1 %v4652_v35, %s4338_s30  ;;  %868 = vrot.lane.b32.xlu0 %v4605_v10, %s4338_s30 }
  0xca   :  { %1401 = vmatprep.subr.bf16.mxu1 %v1200_v22 }
  0xcb   :  { %1402 = vmatpush1.bf16.msra.mxu1 %v1199_v9  ;;  %v209_v24 = vpop.permute.xlu1 %208  ;;  %v207_v25 = vpop.permute.xlu0 %206 }
  0xcc   :  { %v227_v26 = vsel %vm222_vm3, %v4576_v60, %v207_v25  ;;  %v228_v28 = vsel %vm222_vm3, %v207_v25, %v209_v24  ;;  %v1210_v30 = vld [vmem:[#allocation2 + $0xc8] sm:$0xff]  ;;  %v1209_v32 = vld [vmem:[#allocation2 + $0xc0] sm:$0xff] }
  0xcd   :  { %251 = vst [vmem:[#allocation2 + $0x20] sm:$0xc] %v227_v26  ;;  %252 = vst [vmem:[#allocation2 + $0x28] sm:$0xc] %v228_v28  ;;  %1001 = vrot.lane.b32.xlu1 %v976_v23, %s4339_s7  ;;  %999 = vrot.lane.b32.xlu0 %v4520_v38, %s4339_s7 }
  0xce   :  { %1290 = vmatprep.subr.bf16.mxu0 %v1210_v30 }
  0xcf   :  { %1291 = vmatpush1.bf16.msra.mxu0 %v1209_v32  ;;  %v339_v34 = vpop.permute.xlu1 %338  ;;  %v337_v60 = vpop.permute.xlu0 %336 }
  0xd0   :  { %v357_v35 = vsel %vm352_vm1, %v4591_v3, %v337_v60  ;;  %v358_v36 = vsel %vm352_vm1, %v337_v60, %v339_v34  ;;  %v1212_v40 = vld [vmem:[#allocation2 + $0xd8] sm:$0xff]  ;;  %v1211_v41 = vld [vmem:[#allocation2 + $0xd0] sm:$0xff] }
  0xd1   :  { %381 = vst [vmem:[#allocation2 + $0x20] sm:$0x30] %v357_v35  ;;  %382 = vst [vmem:[#allocation2 + $0x28] sm:$0x30] %v358_v36  ;;  %1126 = vrot.lane.b32.xlu1 %v4605_v10, %s4341_s8  ;;  %1124 = vrot.lane.b32.xlu0 %v4636_v27, %s4341_s8  ;;  %v4766_v10 = vld [vmem:[%s5741_s1 + $0x8] sm:$0xff]  }
  0xd2   :  { %3443 = vmatmul.mubr.msk.bf16.vlgmr.msra.gmra.mrb[0].mxu0 %vm1261_vm9, %v4742_v33  ;;  %1403 = vmatprep.subr.bf16.mxu1 %v1212_v40 }
  0xd3   :  { %1404 = vmatpush1.bf16.msra.mxu1 %v1211_v41  ;;  %v470_v38 = vpop.permute.xlu1 %469  ;;  %v468_v42 = vpop.permute.xlu0 %467  ;;  %1328 = vmatprep.mubr.bf16.mxu0 %v4342_v29 }
  0xd4   :  { %v488_v3 = vsel %vm483_vm2, %v4607_v12, %v468_v42  ;;  %v489_v43 = vsel %vm483_vm2, %v468_v42, %v470_v38 }
  0xd5   :  { %512 = vst [vmem:[#allocation2 + $0x20] sm:$0xc0] %v488_v3  ;;  %513 = vst [vmem:[#allocation2 + $0x28] sm:$0xc0] %v489_v43  ;;  %1130 = vrot.lane.b32.xlu1 %v4644_v31, %s4341_s8  ;;  %1128 = vrot.lane.b32.xlu0 %v4701_v5, %s4341_s8  ;;  %v4882_v43 = vld [vmem:[%s5741_s1 + $0x38] sm:$0xff]  }
  0xd6   :  { %3451 = vmatmul.mubr.msk.bf16.vlgmr.msra.gmra.mrb[0].mxu1 %vm1261_vm9, %v4742_v33 }
  0xd7   :  { %v4768_v27 = vpop.permute.xlu1 %212  ;;  %v211_v12 = vpop.permute.xlu0 %210  ;;  %1441 = vmatprep.mubr.bf16.mxu1 %v4342_v29 }
  0xd8   :  { %v229_v44 = vsel %vm222_vm3, %v209_v24, %v211_v12  ;;  %v230_v31 = vsel %vm222_vm3, %v211_v12, %v4768_v27 }
  0xd9   :  { %253 = vst [vmem:[#allocation2 + $0x30] sm:$0xc] %v229_v44  ;;  %254 = vst [vmem:[#allocation2 + $0x38] sm:$0xc] %v230_v31 }
  0xda   :  { %3444 = vmatmul.mubr.msk.bf16.gmra.mrb[4].mxu0 %vm1261_vm9, %v4766_v10 }
  0xdb   :  { %v4776_v45 = vpop.permute.xlu1 %342  ;;  %v341_v46 = vpop.permute.xlu0 %340  ;;  %1338 = vmatprep.mubr.bf16.mxu0 %v4342_v29 }
  0xdc   :  { %v359_v47 = vsel %vm352_vm1, %v339_v34, %v341_v46  ;;  %v360_v48 = vsel %vm352_vm1, %v341_v46, %v4776_v45  ;;  %v1190_v49 = vld [vmem:[#allocation2 + $0x28] sm:$0xff]  ;;  %v1189_v50 = vld [vmem:[#allocation2 + $0x20] sm:$0xff]  ;;  %v4863_v34 = vld [vmem:[%s5741_s1 + $0x30] sm:$0xff]  }
  0xdd   :  { %383 = vst [vmem:[#allocation2 + $0x30] sm:$0x30] %v359_v47  ;;  %384 = vst [vmem:[#allocation2 + $0x38] sm:$0x30] %v360_v48  ;;  %1512 = vmatprep.subr.bf16.mxu0 %v1190_v49 }
  0xde   :  { %3452 = vmatmul.mubr.msk.bf16.gmra.mrb[4].mxu1 %vm1261_vm9, %v4766_v10  ;;  %1513 = vmatpush1.bf16.msra.mxu0 %v1189_v50 }
  0xdf   :  { %v4789_v52 = vpop.permute.xlu1 %473  ;;  %v472_v53 = vpop.permute.xlu0 %471  ;;  %1451 = vmatprep.mubr.bf16.mxu1 %v4342_v29 }
  0xe0   :  { %v490_v54 = vsel %vm483_vm2, %v470_v38, %v472_v53  ;;  %v491_v56 = vsel %vm483_vm2, %v472_v53, %v4789_v52 }
  0xe1   :  { %514 = vst [vmem:[#allocation2 + $0x30] sm:$0xc0] %v490_v54  ;;  %515 = vst [vmem:[#allocation2 + $0x38] sm:$0xc0] %v491_v56 }
  0xe2   :  { %3445 = vmatmul.mubr.msk.bf16.gmra.mrb[8].mxu0 %vm1261_vm9, %v4787_v51 }
  0xe3   :  { %v599_v57 = vpop.permute.xlu1 %598  ;;  %v597_v58 = vpop.permute.xlu0 %596  ;;  %1348 = vmatprep.mubr.bf16.mxu0 %v4342_v29 }
  0xe4   :  { %v617_v61 = vsel %vm612_vm4, %v4672_v55, %v597_v58  ;;  %v618_v62 = vsel %vm612_vm4, %v597_v58, %v599_v57 }
  0xe5   :  { %641 = vst [vmem:[#allocation2 + $0x80] sm:$0x3] %v617_v61  ;;  %642 = vst [vmem:[#allocation2 + $0x88] sm:$0x3] %v618_v62 }
  0xe6   :  { %3453 = vmatmul.mubr.msk.bf16.gmra.mrb[8].mxu1 %vm1261_vm9, %v4787_v51 }
  0xe7   :  { %v729_v0 = vpop.permute.xlu1 %728  ;;  %v727_v2 = vpop.permute.xlu0 %726  ;;  %1461 = vmatprep.mubr.bf16.mxu1 %v4342_v29 }
  0xe8   :  { %v747_v4 = vsel %vm742_vm5, %v4681_v59, %v727_v2  ;;  %v748_v55 = vsel %vm742_vm5, %v727_v2, %v729_v0  ;;  %v1192_v5 = vld [vmem:[#allocation2 + $0x38] sm:$0xff]  ;;  %v1191_v6 = vld [vmem:[#allocation2 + $0x30] sm:$0xff] }
  0xe9   :  { %771 = vst [vmem:[#allocation2 + $0x80] sm:$0xc] %v747_v4  ;;  %772 = vst [vmem:[#allocation2 + $0x88] sm:$0xc] %v748_v55  ;;  %1625 = vmatprep.subr.bf16.mxu1 %v1192_v5 }
  0xea   :  { %3446 = vmatmul.mubr.msk.bf16.gmra.mrb[12].mxu0 %vm1261_vm9, %v4806_v63  ;;  %1626 = vmatpush1.bf16.msra.mxu1 %v1191_v6 }
  0xeb   :  { %v859_v7 = vpop.permute.xlu1 %858  ;;  %v857_v11 = vpop.permute.xlu0 %856  ;;  %1358 = vmatprep.mubr.bf16.mxu0 %v4342_v29 }
  0xec   :  { %v877_v37 = vsel %vm872_vm6, %v4690_v1, %v857_v11  ;;  %v878_v59 = vsel %vm872_vm6, %v857_v11, %v859_v7 }
  0xed   :  { %901 = vst [vmem:[#allocation2 + $0x80] sm:$0x30] %v877_v37  ;;  %902 = vst [vmem:[#allocation2 + $0x88] sm:$0x30] %v878_v59 }
  0xee   :  { %3454 = vmatmul.mubr.msk.bf16.gmra.mrb[12].mxu1 %vm1261_vm9, %v4806_v63 }
  0xef   :  { %v990_v13 = vpop.permute.xlu1 %989  ;;  %v988_v14 = vpop.permute.xlu0 %987  ;;  %1471 = vmatprep.mubr.bf16.mxu1 %v4342_v29 }
  0xf0   :  { %v1008_v15 = vsel %vm1003_vm7, %v4706_v8, %v988_v14  ;;  %v1009_v1 = vsel %vm1003_vm7, %v988_v14, %v990_v13  ;;  %v4842_v8 = vld [vmem:[%s5741_s1 + $0x28] sm:$0xff]  }
  0xf1   :  { %1032 = vst [vmem:[#allocation2 + $0x80] sm:$0xc0] %v1008_v15  ;;  %1033 = vst [vmem:[#allocation2 + $0x88] sm:$0xc0] %v1009_v1 }
  0xf2   :  { %3447 = vmatmul.mubr.msk.bf16.gmra.mrb[16].mxu0 %vm1261_vm9, %v4823_v39 }
  0xf3   :  { %v4831_v16 = vpop.permute.xlu1 %602  ;;  %v601_v17 = vpop.permute.xlu0 %600  ;;  %1368 = vmatprep.mubr.bf16.mxu0 %v4342_v29 }
  0xf4   :  { %v619_v19 = vsel %vm612_vm4, %v599_v57, %v601_v17  ;;  %v620_v20 = vsel %vm612_vm4, %v601_v17, %v4831_v16 }
  0xf5   :  { %643 = vst [vmem:[#allocation2 + $0x90] sm:$0x3] %v619_v19  ;;  %644 = vst [vmem:[#allocation2 + $0x98] sm:$0x3] %v620_v20 }
  0xf6   :  { %3455 = vmatmul.mubr.msk.bf16.gmra.mrb[16].mxu1 %vm1261_vm9, %v4823_v39 }
  0xf7   :  { %v4844_v21 = vpop.permute.xlu1 %732  ;;  %v731_v22 = vpop.permute.xlu0 %730  ;;  %1481 = vmatprep.mubr.bf16.mxu1 %v4342_v29 }
  0xf8   :  { %v749_v23 = vsel %vm742_vm5, %v729_v0, %v731_v22  ;;  %v750_v9 = vsel %vm742_vm5, %v731_v22, %v4844_v21  ;;  %v1202_v24 = vld [vmem:[#allocation2 + $0x88] sm:$0xff]  ;;  %v1201_v25 = vld [vmem:[#allocation2 + $0x80] sm:$0xff] }
  0xf9   :  { %773 = vst [vmem:[#allocation2 + $0x90] sm:$0xc] %v749_v23  ;;  %774 = vst [vmem:[#allocation2 + $0x98] sm:$0xc] %v750_v9  ;;  %1514 = vmatprep.subr.bf16.mxu0 %v1202_v24 }
  0xfa   :  { %3448 = vmatmul.mubr.msk.bf16.gmra.mrb[20].mxu0 %vm1261_vm9, %v4842_v8 }
  0xfb   :  { %1515 = vmatpush1.bf16.msra.mxu0 %v1201_v25  ;;  %v4852_v26 = vpop.permute.xlu1 %862  ;;  %v861_v28 = vpop.permute.xlu0 %860  ;;  %1378 = vmatprep.mubr.bf16.mxu0 %v4342_v29 }
  0xfc   :  { %v879_v30 = vsel %vm872_vm6, %v859_v7, %v861_v28  ;;  %v880_v32 = vsel %vm872_vm6, %v861_v28, %v4852_v26 }
  0xfd   :  { %903 = vst [vmem:[#allocation2 + $0x90] sm:$0x30] %v879_v30  ;;  %904 = vst [vmem:[#allocation2 + $0x98] sm:$0x30] %v880_v32 }
  0xfe   :  { %3456 = vmatmul.mubr.msk.bf16.gmra.mrb[20].mxu1 %vm1261_vm9, %v4842_v8 }
  0xff   :  { %v4865_v60 = vpop.permute.xlu1 %993  ;;  %v992_v35 = vpop.permute.xlu0 %991  ;;  %1491 = vmatprep.mubr.bf16.mxu1 %v4342_v29 }
 0x100   :  { %v1010_v36 = vsel %vm1003_vm7, %v990_v13, %v992_v35  ;;  %v1011_v40 = vsel %vm1003_vm7, %v992_v35, %v4865_v60 }
 0x101   :  { %1034 = vst [vmem:[#allocation2 + $0x90] sm:$0xc0] %v1010_v36  ;;  %1035 = vst [vmem:[#allocation2 + $0x98] sm:$0xc0] %v1011_v40 }
 0x102   :  { %3449 = vmatmul.mubr.msk.bf16.gmra.mrb[24].mxu0 %vm1261_vm9, %v4863_v34 }
 0x103   :  { %v1119_v41 = vpop.permute.xlu1 %1118  ;;  %v1117_v38 = vpop.permute.xlu0 %1116  ;;  %1388 = vmatprep.mubr.bf16.mxu0 %v4342_v29 }
 0x104   :  { %v1137_v42 = vsel %vm1132_vm8, %v4724_v18, %v1117_v38  ;;  %v1138_v3 = vsel %vm1132_vm8, %v1117_v38, %v1119_v41 }
 0x105   :  { %1161 = vst [vmem:[#allocation2 + $0xe0] sm:$0x3] %v1137_v42  ;;  %1162 = vst [vmem:[#allocation2 + $0xe8] sm:$0x3] %v1138_v3 }
 0x106   :  { %3457 = vmatmul.mubr.msk.bf16.gmra.mrb[24].mxu1 %vm1261_vm9, %v4863_v34 }
 0x107   :  { %v4884_v12 = vpop.permute.xlu1 %1122  ;;  %v1121_v44 = vpop.permute.xlu0 %1120  ;;  %1501 = vmatprep.mubr.bf16.mxu1 %v4342_v29 }
 0x108   :  { %v1139_v31 = vsel %vm1132_vm8, %v1119_v41, %v1121_v44  ;;  %v1140_v18 = vsel %vm1132_vm8, %v1121_v44, %v4884_v12  ;;  %v1204_v46 = vld [vmem:[#allocation2 + $0x98] sm:$0xff]  ;;  %v1203_v47 = vld [vmem:[#allocation2 + $0x90] sm:$0xff] }
 0x109   :  { %1163 = vst [vmem:[#allocation2 + $0xf0] sm:$0x3] %v1139_v31  ;;  %1164 = vst [vmem:[#allocation2 + $0xf8] sm:$0x3] %v1140_v18  ;;  %1627 = vmatprep.subr.bf16.mxu1 %v1204_v46 }
 0x10a   :  { %3450 = vmatmul.mubr.msk.bf16.gmra.mrb[28].mxu0 %vm1261_vm9, %v4882_v43  ;;  %1628 = vmatpush1.bf16.msra.mxu1 %v1203_v47 }
 0x10b   :  { %v217_v48 = vpop.permute.xlu1 %216  ;;  %v215_v49 = vpop.permute.xlu0 %214  ;;  %1544 = vmatprep.mubr.bf16.mxu0 %v4342_v29 }
 0x10c   :  { %v231_v50 = vsel %vm222_vm3, %v4768_v27, %v215_v49  ;;  %v232_v53 = vsel %vm222_vm3, %v215_v49, %v217_v48  ;;  %v1214_v54 = vld [vmem:[#allocation2 + $0xe8] sm:$0xff]  ;;  %v1213_v56 = vld [vmem:[#allocation2 + $0xe0] sm:$0xff] }
 0x10d   :  { %255 = vst [vmem:[#allocation2 + $0x40] sm:$0xc] %v231_v50  ;;  %256 = vst [vmem:[#allocation2 + $0x48] sm:$0xc] %v232_v53  ;;  %1516 = vmatprep.subr.bf16.mxu0 %v1214_v54 }
 0x10e   :  { %3458 = vmatmul.mubr.msk.bf16.gmra.mrb[28].mxu1 %vm1261_vm9, %v4882_v43  ;;  %1517 = vmatpush1.bf16.msra.mxu0 %v1213_v56 }
 0x10f   :  { %v347_v57 = vpop.permute.xlu1 %346  ;;  %v345_v58 = vpop.permute.xlu0 %344  ;;  %1657 = vmatprep.mubr.bf16.mxu1 %v4342_v29 }
 0x110   :  { %v361_v61 = vsel %vm352_vm1, %v4776_v45, %v345_v58  ;;  %v362_v27 = vsel %vm352_vm1, %v345_v58, %v347_v57  ;;  %v1216_v62 = vld [vmem:[#allocation2 + $0xf8] sm:$0xff]  ;;  %v1215_v0 = vld [vmem:[#allocation2 + $0xf0] sm:$0xff] }
 0x111   :  { %385 = vst [vmem:[#allocation2 + $0x40] sm:$0x30] %v361_v61  ;;  %386 = vst [vmem:[#allocation2 + $0x48] sm:$0x30] %v362_v27  ;;  %1629 = vmatprep.subr.bf16.mxu1 %v1216_v62 }
 0x112   :  { %3459 = vmatmul.mubr.msk.bf16.vlgmr.msra.gmra.mrb[32].mxu0 %vm1261_vm9, %v4742_v33  ;;  %1630 = vmatpush1.bf16.msra.mxu1 %v1215_v0 }
 0x113   :  { %v478_v2 = vpop.permute.xlu1 %477  ;;  %v476_v4 = vpop.permute.xlu0 %475  ;;  %1554 = vmatprep.mubr.bf16.mxu0 %v4342_v29 }
 0x114   :  { %v492_v55 = vsel %vm483_vm2, %v4789_v52, %v476_v4  ;;  %v493_v45 = vsel %vm483_vm2, %v476_v4, %v478_v2 }
 0x115   :  { %516 = vst [vmem:[#allocation2 + $0x40] sm:$0xc0] %v492_v55  ;;  %517 = vst [vmem:[#allocation2 + $0x48] sm:$0xc0] %v493_v45 }
 0x116   :  { %3467 = vmatmul.mubr.msk.bf16.vlgmr.msra.gmra.mrb[32].mxu1 %vm1261_vm9, %v4742_v33 }
 0x117   :  { %v221_v5 = vpop.permute.xlu1 %220  ;;  %v219_v6 = vpop.permute.xlu0 %218  ;;  %1667 = vmatprep.mubr.bf16.mxu1 %v4342_v29 }
 0x118   :  { %v233_v7 = vsel %vm222_vm3, %v217_v48, %v219_v6  ;;  %v234_v11 = vsel %vm222_vm3, %v219_v6, %v221_v5 }
 0x119   :  { %257 = vst [vmem:[#allocation2 + $0x50] sm:$0xc] %v233_v7  ;;  %258 = vst [vmem:[#allocation2 + $0x58] sm:$0xc] %v234_v11  ;;  %v2172_v7 = vld [vmem:[%s5742_s2 + $0x80] sm:$0xff] }
 0x11a   :  { %3460 = vmatmul.mubr.msk.bf16.gmra.mrb[36].mxu0 %vm1261_vm9, %v4766_v10 }
 0x11b   :  { %v351_v52 = vpop.permute.xlu1 %350  ;;  %v349_v37 = vpop.permute.xlu0 %348  ;;  %1564 = vmatprep.mubr.bf16.mxu0 %v4342_v29 }
 0x11c   :  { %v363_v59 = vsel %vm352_vm1, %v347_v57, %v349_v37  ;;  %v364_v13 = vsel %vm352_vm1, %v349_v37, %v351_v52  ;;  %v1194_v14 = vld [vmem:[#allocation2 + $0x48] sm:$0xff]  ;;  %v1193_v15 = vld [vmem:[#allocation2 + $0x40] sm:$0xff] }
 0x11d   :  { %387 = vst [vmem:[#allocation2 + $0x50] sm:$0x30] %v363_v59  ;;  %388 = vst [vmem:[#allocation2 + $0x58] sm:$0x30] %v364_v13  ;;  %1738 = vmatprep.subr.bf16.mxu0 %v1194_v14  ;;  %v2173_v59 = vld [vmem:[%s5742_s2 + $0x88] sm:$0xff]  ;;  %v2156_v14 = vld [vmem:[%s5742_s2] sm:$0xff] }
 0x11e   :  { %3468 = vmatmul.mubr.msk.bf16.gmra.mrb[36].mxu1 %vm1261_vm9, %v4766_v10  ;;  %1739 = vmatpush1.bf16.msra.mxu0 %v1193_v15  ;;  %v4031_v13 = vpack.c.bf16 %v2173_v59, %v2172_v7  ;;  %v2157_v15 = vld [vmem:[%s5742_s2 + $0x8] sm:$0xff]  ;;  %v2194_v7 = vld [vmem:[%s5742_s2 + $0x130] sm:$0xff] }
 0x11f   :  { %v482_v1 = vpop.permute.xlu1 %481  ;;  %v480_v17 = vpop.permute.xlu0 %479  ;;  %1677 = vmatprep.mubr.bf16.mxu1 %v4342_v29  ;;  %v2213_v59 = vld [vmem:[%s5742_s2 + $0x1c8] sm:$0xff] }
 0x120   :  { %v494_v19 = vsel %vm483_vm2, %v478_v2, %v480_v17  ;;  %v495_v20 = vsel %vm483_vm2, %v480_v17, %v482_v1 }
 0x121   :  { %518 = vst [vmem:[#allocation2 + $0x50] sm:$0xc0] %v494_v19  ;;  %519 = vst [vmem:[#allocation2 + $0x58] sm:$0xc0] %v495_v20  ;;  %v2204_v19 = vld [vmem:[%s5742_s2 + $0x180] sm:$0xff]  ;;  %v2205_v20 = vld [vmem:[%s5742_s2 + $0x188] sm:$0xff] }
 0x122   :  { %3461 = vmatmul.mubr.msk.bf16.gmra.mrb[40].mxu0 %vm1261_vm9, %v4787_v51 }
 0x123   :  { %v607_v22 = vpop.permute.xlu1 %606  ;;  %v605_v23 = vpop.permute.xlu0 %604  ;;  %1574 = vmatprep.mubr.bf16.mxu0 %v4342_v29 }
 0x124   :  { %v621_v9 = vsel %vm612_vm4, %v4831_v16, %v605_v23  ;;  %v622_v24 = vsel %vm612_vm4, %v605_v23, %v607_v22  ;;  %v2175_v23 = vld [vmem:[%s5742_s2 + $0x98] sm:$0xff] }
 0x125   :  { %645 = vst [vmem:[#allocation2 + $0xa0] sm:$0x3] %v621_v9  ;;  %646 = vst [vmem:[#allocation2 + $0xa8] sm:$0x3] %v622_v24  ;;  %v4033_v9 = vpack.c.bf16 %v2157_v15, %v2156_v14  ;;  %v2188_v24 = vld [vmem:[%s5742_s2 + $0x100] sm:$0xff]  ;;  %v2183_v14 = vld [vmem:[%s5742_s2 + $0xd8] sm:$0xff] }
 0x126   :  { %3469 = vmatmul.mubr.msk.bf16.gmra.mrb[40].mxu1 %vm1261_vm9, %v4787_v51 }
 0x127   :  { %v737_v25 = vpop.permute.xlu1 %736  ;;  %v735_v28 = vpop.permute.xlu0 %734  ;;  %1687 = vmatprep.mubr.bf16.mxu1 %v4342_v29 }
 0x128   :  { %v751_v30 = vsel %vm742_vm5, %v4844_v21, %v735_v28  ;;  %v752_v32 = vsel %vm742_vm5, %v735_v28, %v737_v25  ;;  %v1196_v35 = vld [vmem:[#allocation2 + $0x58] sm:$0xff]  ;;  %v1195_v36 = vld [vmem:[#allocation2 + $0x50] sm:$0xff] }
 0x129   :  { %775 = vst [vmem:[#allocation2 + $0xa0] sm:$0xc] %v751_v30  ;;  %776 = vst [vmem:[#allocation2 + $0xa8] sm:$0xc] %v752_v32  ;;  %1851 = vmatprep.subr.bf16.mxu1 %v1196_v35  ;;  %v4063_v32 = vpack.c.bf16 %v2205_v20, %v2204_v19  ;;  %v2196_v19 = vld [vmem:[%s5742_s2 + $0x140] sm:$0xff]  ;;  %v2197_v20 = vld [vmem:[%s5742_s2 + $0x148] sm:$0xff] }
 0x12a   :  { %3462 = vmatmul.mubr.msk.bf16.gmra.mrb[44].mxu0 %vm1261_vm9, %v4806_v63  ;;  %1852 = vmatpush1.bf16.msra.mxu1 %v1195_v36  ;;  %v2158_v36 = vld [vmem:[%s5742_s2 + $0x10] sm:$0xff] }
 0x12b   :  { %v867_v16 = vpop.permute.xlu1 %866  ;;  %v865_v40 = vpop.permute.xlu0 %864  ;;  %1584 = vmatprep.mubr.bf16.mxu0 %v4342_v29 }
 0x12c   :  { %v881_v41 = vsel %vm872_vm6, %v4852_v26, %v865_v40  ;;  %v882_v21 = vsel %vm872_vm6, %v865_v40, %v867_v16  ;;  %v2206_v40 = vld [vmem:[%s5742_s2 + $0x190] sm:$0xff] }
 0x12d   :  { %905 = vst [vmem:[#allocation2 + $0xa0] sm:$0x30] %v881_v41  ;;  %906 = vst [vmem:[#allocation2 + $0xa8] sm:$0x30] %v882_v21  ;;  %v2207_v41 = vld [vmem:[%s5742_s2 + $0x198] sm:$0xff]  ;;  %v2176_v21 = vld [vmem:[%s5742_s2 + $0xa0] sm:$0xff] }
 0x12e   :  { %3470 = vmatmul.mubr.msk.bf16.gmra.mrb[44].mxu1 %vm1261_vm9, %v4806_v63 }
 0x12f   :  { %v998_v38 = vpop.permute.xlu1 %997  ;;  %v996_v42 = vpop.permute.xlu0 %995  ;;  %1697 = vmatprep.mubr.bf16.mxu1 %v4342_v29 }
 0x130   :  { %v1012_v3 = vsel %vm1003_vm7, %v4865_v60, %v996_v42  ;;  %v1013_v44 = vsel %vm1003_vm7, %v996_v42, %v998_v38 }
 0x131   :  { %1036 = vst [vmem:[#allocation2 + $0xa0] sm:$0xc0] %v1012_v3  ;;  %1037 = vst [vmem:[#allocation2 + $0xa8] sm:$0xc0] %v1013_v44  ;;  %v4067_v44 = vpack.c.bf16 %v2207_v41, %v2206_v40  ;;  %v2199_v40 = vld [vmem:[%s5742_s2 + $0x158] sm:$0xff] }
 0x132   :  { %3463 = vmatmul.mubr.msk.bf16.gmra.mrb[48].mxu0 %vm1261_vm9, %v4823_v39 }
 0x133   :  { %v611_v26 = vpop.permute.xlu1 %610  ;;  %v609_v31 = vpop.permute.xlu0 %608  ;;  %1594 = vmatprep.mubr.bf16.mxu0 %v4342_v29 }
 0x134   :  { %v623_v18 = vsel %vm612_vm4, %v607_v22, %v609_v31  ;;  %v624_v46 = vsel %vm612_vm4, %v609_v31, %v611_v26  ;;  %v2174_v22 = vld [vmem:[%s5742_s2 + $0x90] sm:$0xff]  ;;  %v2160_v26 = vld [vmem:[%s5742_s2 + $0x20] sm:$0xff] }
 0x135   :  { %647 = vst [vmem:[#allocation2 + $0xb0] sm:$0x3] %v623_v18  ;;  %648 = vst [vmem:[#allocation2 + $0xb8] sm:$0x3] %v624_v46  ;;  %v4035_v35 = vpack.c.bf16 %v2175_v23, %v2174_v22  ;;  %v2190_v31 = vld [vmem:[%s5742_s2 + $0x110] sm:$0xff]  ;;  %v2191_v18 = vld [vmem:[%s5742_s2 + $0x118] sm:$0xff] }
 0x136   :  { %3471 = vmatmul.mubr.msk.bf16.gmra.mrb[48].mxu1 %vm1261_vm9, %v4823_v39  ;;  %v2167_v23 = vld [vmem:[%s5742_s2 + $0x58] sm:$0xff] }
 0x137   :  { %v741_v60 = vpop.permute.xlu1 %740  ;;  %v739_v47 = vpop.permute.xlu0 %738  ;;  %1707 = vmatprep.mubr.bf16.mxu1 %v4342_v29 }
 0x138   :  { %v753_v48 = vsel %vm742_vm5, %v737_v25, %v739_v47  ;;  %v754_v49 = vsel %vm742_vm5, %v739_v47, %v741_v60  ;;  %v1206_v50 = vld [vmem:[#allocation2 + $0xa8] sm:$0xff]  ;;  %v1205_v53 = vld [vmem:[#allocation2 + $0xa0] sm:$0xff] }
 0x139   :  { %777 = vst [vmem:[#allocation2 + $0xb0] sm:$0xc] %v753_v48  ;;  %778 = vst [vmem:[#allocation2 + $0xb8] sm:$0xc] %v754_v49  ;;  %1740 = vmatprep.subr.bf16.mxu0 %v1206_v50  ;;  %v2189_v25 = vld [vmem:[%s5742_s2 + $0x108] sm:$0xff]  ;;  %v2208_v47 = vld [vmem:[%s5742_s2 + $0x1a0] sm:$0xff] }
 0x13a   :  { %3464 = vmatmul.mubr.msk.bf16.gmra.mrb[52].mxu0 %vm1261_vm9, %v4842_v8  ;;  %v4065_v42 = vpack.c.bf16 %v2189_v25, %v2188_v24  ;;  %v2161_v60 = vld [vmem:[%s5742_s2 + $0x28] sm:$0xff]  ;;  %v2178_v49 = vld [vmem:[%s5742_s2 + $0xb0] sm:$0xff]  ;;  %v2179_v50 = vld [vmem:[%s5742_s2 + $0xb8] sm:$0xff] }
 0x13b   :  { %1741 = vmatpush1.bf16.msra.mxu0 %v1205_v53  ;;  %v871_v54 = vpop.permute.xlu1 %870  ;;  %v869_v56 = vpop.permute.xlu0 %868  ;;  %1604 = vmatprep.mubr.bf16.mxu0 %v4342_v29  ;;  %v2209_v48 = vld [vmem:[%s5742_s2 + $0x1a8] sm:$0xff]  ;;  %v4069_v53 = vpack.c.bf16 %v2191_v18, %v2190_v31  ;;  %v2215_v24 = vld [vmem:[%s5742_s2 + $0x1d8] sm:$0xff]  ;;  %v2184_v25 = vld [vmem:[%s5742_s2 + $0xe0] sm:$0xff] }
 0x13c   :  { %v883_v57 = vsel %vm872_vm6, %v867_v16, %v869_v56  ;;  %v884_v58 = vsel %vm872_vm6, %v869_v56, %v871_v54  ;;  %v2159_v16 = vld [vmem:[%s5742_s2 + $0x18] sm:$0xff]  ;;  %v4041_v54 = vpack.c.bf16 %v2161_v60, %v2160_v26  ;;  %v4071_v56 = vpack.c.bf16 %v2209_v48, %v2208_v47  ;;  %v2201_v60 = vld [vmem:[%s5742_s2 + $0x168] sm:$0xff] }
 0x13d   :  { %907 = vst [vmem:[#allocation2 + $0xb0] sm:$0x30] %v883_v57  ;;  %908 = vst [vmem:[#allocation2 + $0xb8] sm:$0x30] %v884_v58  ;;  %v4037_v3 = vpack.c.bf16 %v2159_v16, %v2158_v36  ;;  %v2192_v57 = vld [vmem:[%s5742_s2 + $0x120] sm:$0xff]  ;;  %v2193_v58 = vld [vmem:[%s5742_s2 + $0x128] sm:$0xff] }
 0x13e   :  { %3472 = vmatmul.mubr.msk.bf16.gmra.mrb[52].mxu1 %vm1261_vm9, %v4842_v8  ;;  %v2168_v36 = vld [vmem:[%s5742_s2 + $0x60] sm:$0xff]  ;;  %v2198_v16 = vld [vmem:[%s5742_s2 + $0x150] sm:$0xff]  ;;  %v2171_v48 = vld [vmem:[%s5742_s2 + $0x78] sm:$0xff] }
 0x13f   :  { %v1002_v61 = vpop.permute.xlu1 %1001  ;;  %v1000_v27 = vpop.permute.xlu0 %999  ;;  %1717 = vmatprep.mubr.bf16.mxu1 %v4342_v29  ;;  %v4085_v26 = vpack.c.bf16 %v2199_v40, %v2198_v16 }
 0x140   :  { %v1014_v62 = vsel %vm1003_vm7, %v998_v38, %v1000_v27  ;;  %v1015_v0 = vsel %vm1003_vm7, %v1000_v27, %v1002_v61  ;;  %v2177_v38 = vld [vmem:[%s5742_s2 + $0xa8] sm:$0xff]  ;;  %v4043_v61 = vpack.c.bf16 %v2179_v50, %v2178_v49  ;;  %v2163_v27 = vld [vmem:[%s5742_s2 + $0x38] sm:$0xff]  ;;  %v2218_v49 = vld [vmem:[%s5742_s2 + $0x1f0] sm:$0xff] }
 0x141   :  { %1038 = vst [vmem:[#allocation2 + $0xb0] sm:$0xc0] %v1014_v62  ;;  %1039 = vst [vmem:[#allocation2 + $0xb8] sm:$0xc0] %v1015_v0  ;;  %v4039_v46 = vpack.c.bf16 %v2177_v38, %v2176_v21  ;;  %v2210_v62 = vld [vmem:[%s5742_s2 + $0x1b0] sm:$0xff]  ;;  %v2211_v0 = vld [vmem:[%s5742_s2 + $0x1b8] sm:$0xff] }
 0x142   :  { %3465 = vmatmul.mubr.msk.bf16.gmra.mrb[56].mxu0 %vm1261_vm9, %v4863_v34  ;;  %v2169_v21 = vld [vmem:[%s5742_s2 + $0x68] sm:$0xff]  ;;  %v2216_v38 = vld [vmem:[%s5742_s2 + $0x1e0] sm:$0xff]  ;;  %v2219_v50 = vld [vmem:[%s5742_s2 + $0x1f8] sm:$0xff] }
 0x143   :  { %v1127_v2 = vpop.permute.xlu1 %1126  ;;  %v1125_v4 = vpop.permute.xlu0 %1124  ;;  %1614 = vmatprep.mubr.bf16.mxu0 %v4342_v29  ;;  %v4057_v31 = vpack.c.bf16 %v2169_v21, %v2168_v36  ;;  %v2255_v36 = vld [vmem:[%s5742_s2 + $0x318] sm:$0xff]  ;;  %v2225_v21 = vld [vmem:[%s5742_s2 + $0x228] sm:$0xff] }
 0x144   :  { %v1141_v55 = vsel %vm1132_vm8, %v4884_v12, %v1125_v4  ;;  %v1142_v45 = vsel %vm1132_vm8, %v1125_v4, %v1127_v2  ;;  %v2181_v4 = vld [vmem:[%s5742_s2 + $0xc8] sm:$0xff] }
 0x145   :  { %1165 = vst [vmem:[#allocation2 + $0x100] sm:$0x3] %v1141_v55  ;;  %1166 = vst [vmem:[#allocation2 + $0x108] sm:$0x3] %v1142_v45  ;;  %v4073_v55 = vpack.c.bf16 %v2193_v58, %v2192_v57  ;;  %v4091_v57 = vpack.c.bf16 %v2219_v50, %v2218_v49  ;;  %v2202_v58 = vld [vmem:[%s5742_s2 + $0x170] sm:$0xff] }
 0x146   :  { %3473 = vmatmul.mubr.msk.bf16.gmra.mrb[56].mxu1 %vm1261_vm9, %v4863_v34  ;;  %v2226_v50 = vld [vmem:[%s5742_s2 + $0x230] sm:$0xff] }
 0x147   :  { %v1131_v5 = vpop.permute.xlu1 %1130  ;;  %v1129_v6 = vpop.permute.xlu0 %1128  ;;  %1727 = vmatprep.mubr.bf16.mxu1 %v4342_v29 }
 0x148   :  { %v1143_v11 = vsel %vm1132_vm8, %v1127_v2, %v1129_v6  ;;  %v1144_v52 = vsel %vm1132_vm8, %v1129_v6, %v1131_v5  ;;  %v1208_v12 = vld [vmem:[#allocation2 + $0xb8] sm:$0xff]  ;;  %v1207_v37 = vld [vmem:[#allocation2 + $0xb0] sm:$0xff]  ;;  %v2180_v2 = vld [vmem:[%s5742_s2 + $0xc0] sm:$0xff]  ;;  %v4075_v5 = vpack.c.bf16 %v2211_v0, %v2210_v62 }
 0x149   :  { %1167 = vst [vmem:[#allocation2 + $0x110] sm:$0x3] %v1143_v11  ;;  %1168 = vst [vmem:[#allocation2 + $0x118] sm:$0x3] %v1144_v52  ;;  %1853 = vmatprep.subr.bf16.mxu1 %v1208_v12  ;;  %v2164_v6 = vld [vmem:[%s5742_s2 + $0x40] sm:$0xff]  ;;  %v2195_v11 = vld [vmem:[%s5742_s2 + $0x138] sm:$0xff]  ;;  %v4047_v52 = vpack.c.bf16 %v2181_v4, %v2180_v2 }
 0x14a   :  { %3466 = vmatmul.mubr.msk.bf16.gmra.mrb[60].mxu0 %vm1261_vm9, %v4882_v43  ;;  %1854 = vmatpush1.bf16.msra.mxu1 %v1207_v37  ;;  %v2165_v12 = vld [vmem:[%s5742_s2 + $0x48] sm:$0xff]  ;;  %v2212_v37 = vld [vmem:[%s5742_s2 + $0x1c0] sm:$0xff]  ;;  %v4077_v15 = vpack.c.bf16 %v2195_v11, %v2194_v7 }
 0x14b   :  { %1770 = vmatprep.mubr.bf16.mxu0 %v4342_v29  ;;  %v2268_v62 = vld [vmem:[%s5742_s2 + $0x380] sm:$0xff]  ;;  %v2269_v0 = vld [vmem:[%s5742_s2 + $0x388] sm:$0xff] }
 0x14c   :  { %v1218_v1 = vld [vmem:[#allocation2 + $0x108] sm:$0xff]  ;;  %v1217_v17 = vld [vmem:[#allocation2 + $0x100] sm:$0xff]  ;;  %v4127_v4 = vpack.c.bf16 %v2269_v0, %v2268_v62 }
 0x14d   :  { %1742 = vmatprep.subr.bf16.mxu0 %v1218_v1  ;;  %v4049_v1 = vpack.c.bf16 %v2165_v12, %v2164_v6  ;;  %v2252_v11 = vld [vmem:[%s5742_s2 + $0x300] sm:$0xff] }
 0x14e   :  { %3474 = vmatmul.mubr.msk.bf16.gmra.mrb[60].mxu1 %vm1261_vm9, %v4882_v43  ;;  %1743 = vmatpush1.bf16.msra.mxu0 %v1217_v17  ;;  %v4079_v17 = vpack.c.bf16 %v2213_v59, %v2212_v37  ;;  %v2222_v37 = vld [vmem:[%s5742_s2 + $0x210] sm:$0xff]  ;;  %v2244_v0 = vld [vmem:[%s5742_s2 + $0x2c0] sm:$0xff] }
 0x14f   :  { %1883 = vmatprep.mubr.bf16.mxu1 %v4342_v29  ;;  %4032 = vmatprep.subr.bf16.mxu0 %v4031_v13  ;;  %v2182_v13 = vld [vmem:[%s5742_s2 + $0xd0] sm:$0xff] }
 0x150   :  { %v1220_v28 = vld [vmem:[#allocation2 + $0x118] sm:$0xff]  ;;  %v1219_v30 = vld [vmem:[#allocation2 + $0x110] sm:$0xff]  ;;  %v4051_v22 = vpack.c.bf16 %v2183_v14, %v2182_v13 }
 0x151   :  { %1855 = vmatprep.subr.bf16.mxu1 %v1220_v28  ;;  %v2185_v28 = vld [vmem:[%s5742_s2 + $0xe8] sm:$0xff]  ;;  %v2223_v14 = vld [vmem:[%s5742_s2 + $0x218] sm:$0xff] }
 0x152   :  { %3475 = vmatmul.mubr.msk.bf16.vlgmr.msra.gmra.mrb[64].mxu0 %vm1261_vm9, %v4742_v33  ;;  %1856 = vmatpush1.bf16.msra.mxu1 %v1219_v30  ;;  %v4081_v30 = vpack.c.bf16 %v2197_v20, %v2196_v19  ;;  %v4055_v41 = vpack.c.bf16 %v2185_v28, %v2184_v25  ;;  %v2241_v19 = vld [vmem:[%s5742_s2 + $0x2a8] sm:$0xff]  ;;  %v4101_v28 = vpack.c.bf16 %v2223_v14, %v2222_v37  ;;  %v2276_v37 = vld [vmem:[%s5742_s2 + $0x3c0] sm:$0xff] }
 0x153   :  { %1780 = vmatprep.mubr.bf16.mxu0 %v4342_v29  ;;  %4034 = vmatpush3.bf16.msra.mxu0 %v4033_v9  ;;  %v2214_v9 = vld [vmem:[%s5742_s2 + $0x1d0] sm:$0xff] }
 0x154   :  { %4064 = vmatprep.subr.bf16.mxu1 %v4063_v32  ;;  %4036 = vmatprep.subr.bf16.mxu0 %v4035_v35  ;;  %v4083_v35 = vpack.c.bf16 %v2215_v24, %v2214_v9 }
 0x156   :  { %3483 = vmatmul.mubr.msk.bf16.vlgmr.msra.gmra.mrb[64].mxu1 %vm1261_vm9, %v4742_v33  ;;  %v2162_v33 = vld [vmem:[%s5742_s2 + $0x30] sm:$0xff] }
 0x157   :  { %1893 = vmatprep.mubr.bf16.mxu1 %v4342_v29  ;;  %4066 = vmatpush3.bf16.msra.mxu1 %v4065_v42  ;;  %v4045_v45 = vpack.c.bf16 %v2163_v27, %v2162_v33  ;;  %v2217_v42 = vld [vmem:[%s5742_s2 + $0x1e8] sm:$0xff] }
 0x158   :  { %4038 = vmatpush3.bf16.msra.mxu0 %v4037_v3  ;;  %4068 = vmatprep.subr.bf16.mxu1 %v4067_v44  ;;  %v2186_v3 = vld [vmem:[%s5742_s2 + $0xf0] sm:$0xff]  ;;  %v2187_v44 = vld [vmem:[%s5742_s2 + $0xf8] sm:$0xff]  ;;  %v4087_v18 = vpack.c.bf16 %v2217_v42, %v2216_v38  ;;  %v2272_v38 = vld [vmem:[%s5742_s2 + $0x3a0] sm:$0xff] }
 0x159   :  { %4040 = vmatprep.subr.bf16.mxu0 %v4039_v46  ;;  %v2200_v46 = vld [vmem:[%s5742_s2 + $0x160] sm:$0xff]  ;;  %v4059_v47 = vpack.c.bf16 %v2187_v44, %v2186_v3  ;;  %v2273_v42 = vld [vmem:[%s5742_s2 + $0x3a8] sm:$0xff] }
 0x15a   :  { %3476 = vmatmul.mubr.msk.bf16.gmra.mrb[68].mxu0 %vm1261_vm9, %v4766_v10  ;;  %v4135_v49 = vpack.c.bf16 %v2273_v42, %v2272_v38  ;;  %v2249_v38 = vld [vmem:[%s5742_s2 + $0x2e8] sm:$0xff] }
 0x15b   :  { %1790 = vmatprep.mubr.bf16.mxu0 %v4342_v29  ;;  %4070 = vmatpush3.bf16.msra.mxu1 %v4069_v53  ;;  %v2236_v53 = vld [vmem:[%s5742_s2 + $0x280] sm:$0xff] }
 0x15c   :  { %4042 = vmatpush3.bf16.msra.mxu0 %v4041_v54  ;;  %4072 = vmatprep.subr.bf16.mxu1 %v4071_v56  ;;  %v2237_v54 = vld [vmem:[%s5742_s2 + $0x288] sm:$0xff]  ;;  %v4089_v56 = vpack.c.bf16 %v2201_v60, %v2200_v46 }
 0x15d   :  { %4044 = vmatprep.subr.bf16.mxu0 %v4043_v61  ;;  %v2203_v61 = vld [vmem:[%s5742_s2 + $0x178] sm:$0xff]  ;;  %v4095_v27 = vpack.c.bf16 %v2237_v54, %v2236_v53  ;;  %v2256_v53 = vld [vmem:[%s5742_s2 + $0x320] sm:$0xff]  ;;  %v2257_v54 = vld [vmem:[%s5742_s2 + $0x328] sm:$0xff] }
 0x15e   :  { %3484 = vmatmul.mubr.msk.bf16.gmra.mrb[68].mxu1 %vm1261_vm9, %v4766_v10  ;;  %v2166_v10 = vld [vmem:[%s5742_s2 + $0x50] sm:$0xff]  ;;  %v4093_v2 = vpack.c.bf16 %v2203_v61, %v2202_v58  ;;  %v2227_v58 = vld [vmem:[%s5742_s2 + $0x238] sm:$0xff] }
 0x15f   :  { %1903 = vmatprep.mubr.bf16.mxu1 %v4342_v29  ;;  %4074 = vmatpush3.bf16.msra.mxu1 %v4073_v55  ;;  %v4053_v32 = vpack.c.bf16 %v2167_v23, %v2166_v10  ;;  %v2240_v10 = vld [vmem:[%s5742_s2 + $0x2a0] sm:$0xff]  ;;  %v2274_v61 = vld [vmem:[%s5742_s2 + $0x3b0] sm:$0xff] }
 0x160   :  { %4046 = vmatpush3.bf16.msra.mxu0 %v4045_v45  ;;  %4076 = vmatprep.subr.bf16.mxu1 %v4075_v5 }
 0x161   :  { %4048 = vmatprep.subr.bf16.mxu0 %v4047_v52  ;;  %v2253_v52 = vld [vmem:[%s5742_s2 + $0x308] sm:$0xff] }
 0x162   :  { %3477 = vmatmul.mubr.msk.bf16.gmra.mrb[72].mxu0 %vm1261_vm9, %v4787_v51  ;;  %v4129_v23 = vpack.c.bf16 %v2253_v52, %v2252_v11 }
 0x163   :  { %1800 = vmatprep.mubr.bf16.mxu0 %v4342_v29  ;;  %4078 = vmatpush3.bf16.msra.mxu1 %v4077_v15  ;;  %v2270_v15 = vld [vmem:[%s5742_s2 + $0x390] sm:$0xff] }
 0x164   :  { %4050 = vmatpush3.bf16.msra.mxu0 %v4049_v1  ;;  %4080 = vmatprep.subr.bf16.mxu1 %v4079_v17  ;;  %v2271_v1 = vld [vmem:[%s5742_s2 + $0x398] sm:$0xff] }
 0x165   :  { %4052 = vmatprep.subr.bf16.mxu0 %v4051_v22 }
 0x166   :  { %3485 = vmatmul.mubr.msk.bf16.gmra.mrb[72].mxu1 %vm1261_vm9, %v4787_v51  ;;  %v2170_v51 = vld [vmem:[%s5742_s2 + $0x70] sm:$0xff] }
 0x167   :  { %1913 = vmatprep.mubr.bf16.mxu1 %v4342_v29  ;;  %4082 = vmatpush3.bf16.msra.mxu1 %v4081_v30  ;;  %v4061_v33 = vpack.c.bf16 %v2171_v48, %v2170_v51  ;;  %v4131_v30 = vpack.c.bf16 %v2271_v1, %v2270_v15  ;;  %v2246_v15 = vld [vmem:[%s5742_s2 + $0x2d0] sm:$0xff]  ;;  %v2247_v1 = vld [vmem:[%s5742_s2 + $0x2d8] sm:$0xff] }
 0x168   :  { %4054 = vmatpush3.bf16.msra.mxu0 %v4053_v32  ;;  %4084 = vmatprep.subr.bf16.mxu1 %v4083_v35  ;;  %v2224_v32 = vld [vmem:[%s5742_s2 + $0x220] sm:$0xff]  ;;  %v2254_v35 = vld [vmem:[%s5742_s2 + $0x310] sm:$0xff] }
 0x169   :  { %4056 = vmatprep.subr.bf16.mxu0 %v4055_v41  ;;  %v4103_v41 = vpack.c.bf16 %v2241_v19, %v2240_v10  ;;  %v4133_v46 = vpack.c.bf16 %v2255_v36, %v2254_v35  ;;  %v4105_v48 = vpack.c.bf16 %v2225_v21, %v2224_v32  ;;  %v4115_v35 = vpack.c.bf16 %v2247_v1, %v2246_v15  ;;  %v2231_v36 = vld [vmem:[%s5742_s2 + $0x258] sm:$0xff]  ;;  %v2248_v21 = vld [vmem:[%s5742_s2 + $0x2e0] sm:$0xff] }
 0x16a   :  { %3478 = vmatmul.mubr.msk.bf16.gmra.mrb[76].mxu0 %vm1261_vm9, %v4806_v63 }
 0x16b   :  { %1810 = vmatprep.mubr.bf16.mxu0 %v4342_v29  ;;  %4086 = vmatpush3.bf16.msra.mxu1 %v4085_v26  ;;  %v2242_v26 = vld [vmem:[%s5742_s2 + $0x2b0] sm:$0xff] }
 0x16c   :  { %4058 = vmatpush3.bf16.msra.mxu0 %v4057_v31  ;;  %4088 = vmatprep.subr.bf16.mxu1 %v4087_v18  ;;  %v2243_v31 = vld [vmem:[%s5742_s2 + $0x2b8] sm:$0xff] }
 0x16d   :  { %4060 = vmatprep.subr.bf16.mxu0 %v4059_v47 }
 0x16e   :  { %3486 = vmatmul.mubr.msk.bf16.gmra.mrb[76].mxu1 %vm1261_vm9, %v4806_v63  ;;  %v2220_v63 = vld [vmem:[%s5742_s2 + $0x200] sm:$0xff] }
 0x16f   :  { %1923 = vmatprep.mubr.bf16.mxu1 %v4342_v29  ;;  %4090 = vmatpush3.bf16.msra.mxu1 %v4089_v56 }
 0x170   :  { %4062 = vmatpush3.bf16.msra.mxu0 %v4061_v33  ;;  %4092 = vmatprep.subr.bf16.mxu1 %v4091_v57  ;;  %v4107_v57 = vpack.c.bf16 %v2243_v31, %v2242_v26 }
 0x171   :  { %4096 = vmatprep.subr.bf16.mxu0 %v4095_v27  ;;  %v2275_v27 = vld [vmem:[%s5742_s2 + $0x3b8] sm:$0xff] }
 0x172   :  { %3479 = vmatmul.mubr.msk.bf16.gmra.mrb[80].mxu0 %vm1261_vm9, %v4823_v39 }
 0x173   :  { %1820 = vmatprep.mubr.bf16.mxu0 %v4342_v29  ;;  %4094 = vmatpush3.bf16.msra.mxu1 %v4093_v2  ;;  %v2245_v2 = vld [vmem:[%s5742_s2 + $0x2c8] sm:$0xff] }
 0x174   :  { %4128 = vmatprep.subr.bf16.mxu1 %v4127_v4  ;;  %v4111_v52 = vpack.c.bf16 %v2245_v2, %v2244_v0 }
 0x176   :  { %3487 = vmatmul.mubr.msk.bf16.gmra.mrb[80].mxu1 %vm1261_vm9, %v4823_v39  ;;  %v2221_v39 = vld [vmem:[%s5742_s2 + $0x208] sm:$0xff] }
 0x177   :  { %1933 = vmatprep.mubr.bf16.mxu1 %v4342_v29  ;;  %v4097_v6 = vpack.c.bf16 %v2221_v39, %v2220_v63  ;;  %v4137_v39 = vpack.c.bf16 %v2257_v54, %v2256_v53  ;;  %v4119_v53 = vpack.c.bf16 %v2249_v38, %v2248_v21  ;;  %v2233_v54 = vld [vmem:[%s5742_s2 + $0x268] sm:$0xff] }
 0x17a   :  { %3480 = vmatmul.mubr.msk.bf16.gmra.mrb[84].mxu0 %vm1261_vm9, %v4842_v8 }
 0x17b   :  { %1830 = vmatprep.mubr.bf16.mxu0 %v4342_v29 }
 0x17e   :  { %3488 = vmatmul.mubr.msk.bf16.gmra.mrb[84].mxu1 %vm1261_vm9, %v4842_v8 }
 0x17f   :  { %1943 = vmatprep.mubr.bf16.mxu1 %v4342_v29 }
 0x182   :  { %3481 = vmatmul.mubr.msk.bf16.gmra.mrb[88].mxu0 %vm1261_vm9, %v4863_v34 }
 0x183   :  { %1840 = vmatprep.mubr.bf16.mxu0 %v4342_v29 }
 0x186   :  { %3489 = vmatmul.mubr.msk.bf16.gmra.mrb[88].mxu1 %vm1261_vm9, %v4863_v34  ;;  %v2238_v34 = vld [vmem:[%s5742_s2 + $0x290] sm:$0xff] }
 0x187   :  { %1953 = vmatprep.mubr.bf16.mxu1 %v4342_v29  ;;  %v2239_v29 = vld [vmem:[%s5742_s2 + $0x298] sm:$0xff] }
 0x188   :  { %v4099_v12 = vpack.c.bf16 %v2239_v29, %v2238_v34 }
 0x18a   :  { %3482 = vmatmul.mubr.msk.bf16.gmra.mrb[92].mxu0 %vm1261_vm9, %v4882_v43 }
 0x18e   :  { %3490 = vmatmul.mubr.msk.bf16.gmra.mrb[92].mxu1 %vm1261_vm9, %v4882_v43 }
 0x1a5   :  { %v1320_v8 = vpop.f32.mrb[0].mxu0 }
 0x1a6   :  { %v1964_v55 = vmax.f32 %v1320_v8, 0.0  ;;  %v1322_v45 = vpop.f32.mrb[1].mxu0 }
 0x1a7   :  { %v1965_v43 = vmax.f32 %v1322_v45, 0.0  ;;  %v1324_v5 = vpop.f32.mrb[2].mxu0  ;;  %v4139_v45 = vpack.c.bf16 %v2275_v27, %v2274_v61  ;;  %v2250_v61 = vld [vmem:[%s5742_s2 + $0x2f0] sm:$0xff]  ;;  %v2251_v27 = vld [vmem:[%s5742_s2 + $0x2f8] sm:$0xff] }
 0x1a8   :  { %v1326_v7 = vpop.f32.mrb[3].mxu0  ;;  %v1976_v9 = vmax.f32 %v1324_v5, 0.0  ;;  %v2258_v5 = vld [vmem:[%s5742_s2 + $0x330] sm:$0xff] }
 0x1a9   :  { %v1433_v59 = vpop.f32.mrb[0].mxu1  ;;  %2412 = vmatprep.mubr.f32.mxu0 %v1965_v43  ;;  %v1977_v13 = vmax.f32 %v1326_v7, 0.0  ;;  %v2228_v43 = vld [vmem:[%s5742_s2 + $0x240] sm:$0xff] }
 0x1aa   :  { %v1435_v17 = vpop.f32.mrb[1].mxu1  ;;  %2413 = vmatmul.mubr.f32.vlgmr.msra.gmra.mrb[96].mxu0 %v1964_v55  ;;  %v1966_v24 = vmax.f32 %v1433_v59, 0.0  ;;  %v4109_v55 = vpack.c.bf16 %v2227_v58, %v2226_v50  ;;  %v2277_v59 = vld [vmem:[%s5742_s2 + $0x3c8] sm:$0xff] }
 0x1ab   :  { %v1967_v20 = vmax.f32 %v1435_v17, 0.0  ;;  %v1437_v22 = vpop.f32.mrb[2].mxu1  ;;  %2417 = vmatprep.mubr.f32.mxu0 %v1977_v13  ;;  %4098 = vmatpush3.bf16.msra.mxu0 %v4097_v6  ;;  %v2259_v6 = vld [vmem:[%s5742_s2 + $0x338] sm:$0xff] }
 0x1ac   :  { %v1439_v25 = vpop.f32.mrb[3].mxu1  ;;  %4100 = vmatprep.subr.bf16.mxu0 %v4099_v12  ;;  %v1978_v60 = vmax.f32 %v1437_v22, 0.0  ;;  %v2229_v12 = vld [vmem:[%s5742_s2 + $0x248] sm:$0xff]  ;;  %v4141_v19 = vpack.c.bf16 %v2259_v6, %v2258_v5  ;;  %v4123_v5 = vpack.c.bf16 %v2251_v27, %v2250_v61  ;;  %v2235_v6 = vld [vmem:[%s5742_s2 + $0x278] sm:$0xff] }
 0x1ad   :  { %v1330_v16 = vpop.f32.mrb[4].mxu0  ;;  %2557 = vmatprep.mubr.f32.mxu1 %v1967_v20  ;;  %v1979_v40 = vmax.f32 %v1439_v25, 0.0  ;;  %v2260_v25 = vld [vmem:[%s5742_s2 + $0x340] sm:$0xff] }
 0x1ae   :  { %v1988_v3 = vmax.f32 %v1330_v16, 0.0  ;;  %v1332_v44 = vpop.f32.mrb[5].mxu0  ;;  %2418 = vmatmul.mubr.f32.gmra.mrb[98].mxu0 %v1976_v9  ;;  %2558 = vmatmul.mubr.f32.vlgmr.msra.gmra.mrb[96].mxu1 %v1966_v24  ;;  %v4143_v9 = vpack.c.bf16 %v2277_v59, %v2276_v37  ;;  %v2230_v24 = vld [vmem:[%s5742_s2 + $0x250] sm:$0xff]  ;;  %v2301_v37 = vld [vmem:[%s5742_s2 + $0x488] sm:$0xff] }
 0x1af   :  { %v1989_v18 = vmax.f32 %v1332_v44, 0.0  ;;  %v1334_v51 = vpop.f32.mrb[6].mxu0  ;;  %2562 = vmatprep.mubr.f32.mxu1 %v1979_v40  ;;  %4130 = vmatpush3.bf16.msra.mxu1 %v4129_v23  ;;  %v4113_v23 = vpack.c.bf16 %v2229_v12, %v2228_v43  ;;  %v2278_v16 = vld [vmem:[%s5742_s2 + $0x3d0] sm:$0xff]  ;;  %v2279_v40 = vld [vmem:[%s5742_s2 + $0x3d8] sm:$0xff]  ;;  %v2300_v12 = vld [vmem:[%s5742_s2 + $0x480] sm:$0xff] }
 0x1b0   :  { %v1336_v47 = vpop.f32.mrb[7].mxu0  ;;  %4102 = vmatpush3.bf16.msra.mxu0 %v4101_v28  ;;  %4132 = vmatprep.subr.bf16.mxu1 %v4131_v30  ;;  %v2000_v8 = vmax.f32 %v1334_v51, 0.0  ;;  %v2261_v28 = vld [vmem:[%s5742_s2 + $0x348] sm:$0xff]  ;;  %v4117_v51 = vpack.c.bf16 %v2231_v36, %v2230_v24  ;;  %v4159_v24 = vpack.c.bf16 %v2301_v37, %v2300_v12 }
 0x1b1   :  { %v1443_v56 = vpop.f32.mrb[4].mxu1  ;;  %2422 = vmatprep.mubr.f32.mxu0 %v1989_v18  ;;  %v2001_v33 = vmax.f32 %v1336_v47, 0.0  ;;  %4104 = vmatprep.subr.bf16.mxu0 %v4103_v41  ;;  %v4145_v44 = vpack.c.bf16 %v2261_v28, %v2260_v25  ;;  %v2262_v47 = vld [vmem:[%s5742_s2 + $0x350] sm:$0xff]  ;;  %v2332_v25 = vld [vmem:[%s5742_s2 + $0x580] sm:$0xff]  ;;  %v2333_v28 = vld [vmem:[%s5742_s2 + $0x588] sm:$0xff] }
 0x1b2   :  { %v1445_v62 = vpop.f32.mrb[5].mxu1  ;;  %2423 = vmatmul.mubr.f32.gmra.mrb[100].mxu0 %v1988_v3  ;;  %2563 = vmatmul.mubr.f32.gmra.mrb[98].mxu1 %v1978_v60  ;;  %v1990_v34 = vmax.f32 %v1443_v56, 0.0  ;;  %v2232_v60 = vld [vmem:[%s5742_s2 + $0x260] sm:$0xff]  ;;  %v4191_v21 = vpack.c.bf16 %v2333_v28, %v2332_v25 }
 0x1b3   :  { %v1991_v4 = vmax.f32 %v1445_v62, 0.0  ;;  %v1447_v63 = vpop.f32.mrb[6].mxu1  ;;  %2427 = vmatprep.mubr.f32.mxu0 %v2001_v33  ;;  %4134 = vmatpush3.bf16.msra.mxu1 %v4133_v46  ;;  %v4147_v46 = vpack.c.bf16 %v2279_v40, %v2278_v16  ;;  %v2280_v56 = vld [vmem:[%s5742_s2 + $0x3e0] sm:$0xff]  ;;  %v2281_v33 = vld [vmem:[%s5742_s2 + $0x3e8] sm:$0xff] }
 0x1b4   :  { %v1449_v29 = vpop.f32.mrb[7].mxu1  ;;  %4106 = vmatpush3.bf16.msra.mxu0 %v4105_v48  ;;  %4136 = vmatprep.subr.bf16.mxu1 %v4135_v49  ;;  %v2002_v20 = vmax.f32 %v1447_v63, 0.0  ;;  %v2263_v48 = vld [vmem:[%s5742_s2 + $0x358] sm:$0xff] }
 0x1b5   :  { %v1340_v7 = vpop.f32.mrb[8].mxu0  ;;  %2567 = vmatprep.mubr.f32.mxu1 %v1991_v4  ;;  %v2003_v11 = vmax.f32 %v1449_v29, 0.0  ;;  %4108 = vmatprep.subr.bf16.mxu0 %v4107_v57  ;;  %v4149_v2 = vpack.c.bf16 %v2263_v48, %v2262_v47  ;;  %v2264_v29 = vld [vmem:[%s5742_s2 + $0x360] sm:$0xff] }
 0x1b6   :  { %v2012_v13 = vmax.f32 %v1340_v7, 0.0  ;;  %v1342_v14 = vpop.f32.mrb[9].mxu0  ;;  %2428 = vmatmul.mubr.f32.gmra.mrb[102].mxu0 %v2000_v8  ;;  %2568 = vmatmul.mubr.f32.gmra.mrb[100].mxu1 %v1990_v34  ;;  %v4151_v8 = vpack.c.bf16 %v2281_v33, %v2280_v56  ;;  %v2234_v34 = vld [vmem:[%s5742_s2 + $0x270] sm:$0xff] }
 0x1b7   :  { %v2013_v17 = vmax.f32 %v1342_v14, 0.0  ;;  %v1344_v10 = vpop.f32.mrb[10].mxu0  ;;  %2572 = vmatprep.mubr.f32.mxu1 %v2003_v11  ;;  %4138 = vmatpush3.bf16.msra.mxu1 %v4137_v39  ;;  %v4121_v39 = vpack.c.bf16 %v2233_v54, %v2232_v60  ;;  %v2282_v7 = vld [vmem:[%s5742_s2 + $0x3f0] sm:$0xff]  ;;  %v2283_v11 = vld [vmem:[%s5742_s2 + $0x3f8] sm:$0xff] }
 0x1b8   :  { %v1346_v22 = vpop.f32.mrb[11].mxu0  ;;  %4110 = vmatpush3.bf16.msra.mxu0 %v4109_v55  ;;  %4140 = vmatprep.subr.bf16.mxu1 %v4139_v45  ;;  %v2024_v26 = vmax.f32 %v1344_v10, 0.0  ;;  %v2265_v55 = vld [vmem:[%s5742_s2 + $0x368] sm:$0xff]  ;;  %v4125_v10 = vpack.c.bf16 %v2235_v6, %v2234_v34 }
 0x1b9   :  { %v1453_v30 = vpop.f32.mrb[8].mxu1  ;;  %2432 = vmatprep.mubr.f32.mxu0 %v2013_v17  ;;  %v2025_v32 = vmax.f32 %v1346_v22, 0.0  ;;  %4112 = vmatprep.subr.bf16.mxu0 %v4111_v52  ;;  %v4153_v14 = vpack.c.bf16 %v2265_v55, %v2264_v29  ;;  %v2267_v22 = vld [vmem:[%s5742_s2 + $0x378] sm:$0xff] }
 0x1ba   :  { %v1455_v41 = vpop.f32.mrb[9].mxu1  ;;  %2433 = vmatmul.mubr.f32.gmra.mrb[104].mxu0 %v2012_v13  ;;  %2573 = vmatmul.mubr.f32.gmra.mrb[102].mxu1 %v2002_v20  ;;  %v2014_v31 = vmax.f32 %v1453_v30, 0.0  ;;  %v2266_v20 = vld [vmem:[%s5742_s2 + $0x370] sm:$0xff] }
 0x1bb   :  { %v2015_v42 = vmax.f32 %v1455_v41, 0.0  ;;  %v1457_v3 = vpop.f32.mrb[10].mxu1  ;;  %2437 = vmatprep.mubr.f32.mxu0 %v2025_v32  ;;  %4142 = vmatpush3.bf16.msra.mxu1 %v4141_v19  ;;  %v4155_v19 = vpack.c.bf16 %v2283_v11, %v2282_v7  ;;  %v4157_v16 = vpack.c.bf16 %v2267_v22, %v2266_v20 }
 0x1bc   :  { %v1459_v18 = vpop.f32.mrb[11].mxu1  ;;  %4114 = vmatpush3.bf16.msra.mxu0 %v4113_v23  ;;  %4144 = vmatprep.subr.bf16.mxu1 %v4143_v9  ;;  %v2026_v4 = vmax.f32 %v1457_v3, 0.0 }
 0x1bd   :  { %v1350_v49 = vpop.f32.mrb[12].mxu0  ;;  %2577 = vmatprep.mubr.f32.mxu1 %v2015_v42  ;;  %v2027_v50 = vmax.f32 %v1459_v18, 0.0  ;;  %4116 = vmatprep.subr.bf16.mxu0 %v4115_v35 }
 0x1be   :  { %v2036_v57 = vmax.f32 %v1350_v49, 0.0  ;;  %v1352_v58 = vpop.f32.mrb[13].mxu0  ;;  %2438 = vmatmul.mubr.f32.gmra.mrb[106].mxu0 %v2024_v26  ;;  %2578 = vmatmul.mubr.f32.gmra.mrb[104].mxu1 %v2014_v31 }
 0x1bf   :  { %v2037_v62 = vmax.f32 %v1352_v58, 0.0  ;;  %v1354_v0 = vpop.f32.mrb[14].mxu0  ;;  %2582 = vmatprep.mubr.f32.mxu1 %v2027_v50  ;;  %4146 = vmatpush3.bf16.msra.mxu1 %v4145_v44 }
 0x1c0   :  { %v1356_v63 = vpop.f32.mrb[15].mxu0  ;;  %4118 = vmatpush3.bf16.msra.mxu0 %v4117_v51  ;;  %4148 = vmatprep.subr.bf16.mxu1 %v4147_v46  ;;  %v2048_v15 = vmax.f32 %v1354_v0, 0.0 }
 0x1c1   :  { %v1463_v45 = vpop.f32.mrb[12].mxu1  ;;  %2442 = vmatprep.mubr.f32.mxu0 %v2037_v62  ;;  %v2049_v43 = vmax.f32 %v1356_v63, 0.0  ;;  %4120 = vmatprep.subr.bf16.mxu0 %v4119_v53 }
 0x1c2   :  { %v1465_v52 = vpop.f32.mrb[13].mxu1  ;;  %2443 = vmatmul.mubr.f32.gmra.mrb[108].mxu0 %v2036_v57  ;;  %2583 = vmatmul.mubr.f32.gmra.mrb[106].mxu1 %v2026_v4  ;;  %v2038_v1 = vmax.f32 %v1463_v45, 0.0 }
 0x1c3   :  { %v2039_v59 = vmax.f32 %v1465_v52, 0.0  ;;  %v1467_v13 = vpop.f32.mrb[14].mxu1  ;;  %2447 = vmatprep.mubr.f32.mxu0 %v2049_v43  ;;  %4150 = vmatpush3.bf16.msra.mxu1 %v4149_v2 }
 0x1c4   :  { %v1469_v17 = vpop.f32.mrb[15].mxu1  ;;  %4122 = vmatpush3.bf16.msra.mxu0 %v4121_v39  ;;  %4152 = vmatprep.subr.bf16.mxu1 %v4151_v8  ;;  %v2050_v40 = vmax.f32 %v1467_v13, 0.0 }
 0x1c5   :  { %v1360_v23 = vpop.f32.mrb[16].mxu0  ;;  %2587 = vmatprep.mubr.f32.mxu1 %v2039_v59  ;;  %v2051_v9 = vmax.f32 %v1469_v17, 0.0  ;;  %4124 = vmatprep.subr.bf16.mxu0 %v4123_v5 }
 0x1c6   :  { %v2060_v30 = vmax.f32 %v1360_v23, 0.0  ;;  %v1362_v32 = vpop.f32.mrb[17].mxu0  ;;  %2448 = vmatmul.mubr.f32.gmra.mrb[110].mxu0 %v2048_v15  ;;  %2588 = vmatmul.mubr.f32.gmra.mrb[108].mxu1 %v2038_v1 }
 0x1c7   :  { %v2061_v35 = vmax.f32 %v1362_v32, 0.0  ;;  %v1364_v36 = vpop.f32.mrb[18].mxu0  ;;  %2592 = vmatprep.mubr.f32.mxu1 %v2051_v9  ;;  %4154 = vmatpush3.bf16.msra.mxu1 %v4153_v14  ;;  %v2285_v32 = vld [vmem:[%s5742_s2 + $0x408] sm:$0xff] }
 0x1c8   :  { %v1366_v41 = vpop.f32.mrb[19].mxu0  ;;  %4126 = vmatpush3.bf16.msra.mxu0 %v4125_v10  ;;  %4156 = vmatprep.subr.bf16.mxu1 %v4155_v19  ;;  %v2072_v31 = vmax.f32 %v1364_v36, 0.0 }
 0x1c9   :  { %v1473_v38 = vpop.f32.mrb[16].mxu1  ;;  %2452 = vmatprep.mubr.f32.mxu0 %v2061_v35  ;;  %v2073_v42 = vmax.f32 %v1366_v41, 0.0  ;;  %4160 = vmatprep.subr.bf16.mxu0 %v4159_v24 }
 0x1ca   :  { %v1475_v3 = vpop.f32.mrb[17].mxu1  ;;  %2453 = vmatmul.mubr.f32.gmra.mrb[112].mxu0 %v2060_v30  ;;  %2593 = vmatmul.mubr.f32.gmra.mrb[110].mxu1 %v2050_v40  ;;  %v2062_v18 = vmax.f32 %v1473_v38, 0.0  ;;  %v2284_v30 = vld [vmem:[%s5742_s2 + $0x400] sm:$0xff]  ;;  %v2303_v40 = vld [vmem:[%s5742_s2 + $0x498] sm:$0xff] }
 0x1cb   :  { %v2063_v44 = vmax.f32 %v1475_v3, 0.0  ;;  %v1477_v26 = vpop.f32.mrb[18].mxu1  ;;  %2457 = vmatprep.mubr.f32.mxu0 %v2073_v42  ;;  %4158 = vmatpush3.bf16.msra.mxu1 %v4157_v16  ;;  %v2302_v16 = vld [vmem:[%s5742_s2 + $0x490] sm:$0xff]  ;;  %v4161_v3 = vpack.c.bf16 %v2285_v32, %v2284_v30  ;;  %v2309_v30 = vld [vmem:[%s5742_s2 + $0x4c8] sm:$0xff] }
 0x1cc   :  { %v1479_v51 = vpop.f32.mrb[19].mxu1  ;;  %4192 = vmatprep.subr.bf16.mxu1 %v4191_v21  ;;  %v2074_v53 = vmax.f32 %v1477_v26, 0.0 }
 0x1cd   :  { %v1370_v46 = vpop.f32.mrb[20].mxu0  ;;  %2597 = vmatprep.mubr.f32.mxu1 %v2063_v44  ;;  %v2075_v60 = vmax.f32 %v1479_v51, 0.0  ;;  %v4163_v51 = vpack.c.bf16 %v2303_v40, %v2302_v16 }
 0x1ce   :  { %v2084_v47 = vmax.f32 %v1370_v46, 0.0  ;;  %v1372_v48 = vpop.f32.mrb[21].mxu0  ;;  %2458 = vmatmul.mubr.f32.gmra.mrb[114].mxu0 %v2072_v31  ;;  %2598 = vmatmul.mubr.f32.gmra.mrb[112].mxu1 %v2062_v18  ;;  %v2316_v31 = vld [vmem:[%s5742_s2 + $0x500] sm:$0xff]  ;;  %v2317_v18 = vld [vmem:[%s5742_s2 + $0x508] sm:$0xff]  ;;  %v2286_v46 = vld [vmem:[%s5742_s2 + $0x410] sm:$0xff] }
 0x1cf   :  { %v2085_v49 = vmax.f32 %v1372_v48, 0.0  ;;  %v1374_v50 = vpop.f32.mrb[22].mxu0  ;;  %2602 = vmatprep.mubr.f32.mxu1 %v2075_v60  ;;  %v2287_v48 = vld [vmem:[%s5742_s2 + $0x418] sm:$0xff] }
 0x1d0   :  { %v1376_v54 = vpop.f32.mrb[23].mxu0  ;;  %v2096_v27 = vmax.f32 %v1374_v50, 0.0  ;;  %v2335_v50 = vld [vmem:[%s5742_s2 + $0x598] sm:$0xff] }
 0x1d1   :  { %v1483_v56 = vpop.f32.mrb[20].mxu1  ;;  %2462 = vmatprep.mubr.f32.mxu0 %v2085_v49  ;;  %v2097_v33 = vmax.f32 %v1376_v54, 0.0  ;;  %v2334_v49 = vld [vmem:[%s5742_s2 + $0x590] sm:$0xff]  ;;  %v2304_v54 = vld [vmem:[%s5742_s2 + $0x4a0] sm:$0xff] }
 0x1d2   :  { %v1485_v57 = vpop.f32.mrb[21].mxu1  ;;  %2463 = vmatmul.mubr.f32.gmra.mrb[116].mxu0 %v2084_v47  ;;  %2603 = vmatmul.mubr.f32.gmra.mrb[114].mxu1 %v2074_v53  ;;  %v2086_v62 = vmax.f32 %v1483_v56, 0.0  ;;  %v2305_v56 = vld [vmem:[%s5742_s2 + $0x4a8] sm:$0xff] }
 0x1d3   :  { %v2087_v58 = vmax.f32 %v1485_v57, 0.0  ;;  %v1487_v61 = vpop.f32.mrb[22].mxu1  ;;  %2467 = vmatprep.mubr.f32.mxu0 %v2097_v33 }
 0x1d4   :  { %v1489_v0 = vpop.f32.mrb[23].mxu1  ;;  %v2098_v29 = vmax.f32 %v1487_v61, 0.0 }
 0x1d5   :  { %v1380_v2 = vpop.f32.mrb[24].mxu0  ;;  %2607 = vmatprep.mubr.f32.mxu1 %v2087_v58  ;;  %v2099_v4 = vmax.f32 %v1489_v0, 0.0  ;;  %v4193_v58 = vpack.c.bf16 %v2317_v18, %v2316_v31  ;;  %v4165_v0 = vpack.c.bf16 %v2287_v48, %v2286_v46  ;;  %v2340_v46 = vld [vmem:[%s5742_s2 + $0x5c0] sm:$0xff] }
 0x1d6   :  { %v2108_v63 = vmax.f32 %v1380_v2, 0.0  ;;  %v1382_v39 = vpop.f32.mrb[25].mxu0  ;;  %2468 = vmatmul.mubr.f32.gmra.mrb[118].mxu0 %v2096_v27  ;;  %2608 = vmatmul.mubr.f32.gmra.mrb[116].mxu1 %v2086_v62  ;;  %v4195_v2 = vpack.c.bf16 %v2335_v50, %v2334_v49  ;;  %v2310_v49 = vld [vmem:[%s5742_s2 + $0x4d0] sm:$0xff]  ;;  %v2311_v50 = vld [vmem:[%s5742_s2 + $0x4d8] sm:$0xff] }
 0x1d7   :  { %v2109_v8 = vmax.f32 %v1382_v39, 0.0  ;;  %v1384_v34 = vpop.f32.mrb[26].mxu0  ;;  %2612 = vmatprep.mubr.f32.mxu1 %v2099_v4  ;;  %v2288_v4 = vld [vmem:[%s5742_s2 + $0x420] sm:$0xff]  ;;  %v2319_v39 = vld [vmem:[%s5742_s2 + $0x518] sm:$0xff] }
 0x1d8   :  { %v1386_v55 = vpop.f32.mrb[27].mxu0  ;;  %v2120_v11 = vmax.f32 %v1384_v34, 0.0 }
 0x1d9   :  { %v1493_v45 = vpop.f32.mrb[24].mxu1  ;;  %2472 = vmatprep.mubr.f32.mxu0 %v2109_v8  ;;  %v2121_v43 = vmax.f32 %v1386_v55, 0.0  ;;  %v2289_v55 = vld [vmem:[%s5742_s2 + $0x428] sm:$0xff] }
 0x1da   :  { %v1495_v5 = vpop.f32.mrb[25].mxu1  ;;  %2473 = vmatmul.mubr.f32.gmra.mrb[120].mxu0 %v2108_v63  ;;  %2613 = vmatmul.mubr.f32.gmra.mrb[118].mxu1 %v2098_v29  ;;  %v2110_v52 = vmax.f32 %v1493_v45, 0.0  ;;  %v2318_v63 = vld [vmem:[%s5742_s2 + $0x510] sm:$0xff]  ;;  %v4167_v29 = vpack.c.bf16 %v2305_v56, %v2304_v54  ;;  %v2336_v45 = vld [vmem:[%s5742_s2 + $0x5a0] sm:$0xff] }
 0x1db   :  { %v2111_v6 = vmax.f32 %v1495_v5, 0.0  ;;  %v1497_v7 = vpop.f32.mrb[26].mxu1  ;;  %2477 = vmatprep.mubr.f32.mxu0 %v2121_v43  ;;  %v2337_v43 = vld [vmem:[%s5742_s2 + $0x5a8] sm:$0xff] }
 0x1dc   :  { %v1499_v12 = vpop.f32.mrb[27].mxu1  ;;  %v2122_v17 = vmax.f32 %v1497_v7, 0.0  ;;  %v2306_v7 = vld [vmem:[%s5742_s2 + $0x4b0] sm:$0xff] }
 0x1dd   :  { %v1390_v37 = vpop.f32.mrb[28].mxu0  ;;  %2617 = vmatprep.mubr.f32.mxu1 %v2111_v6  ;;  %v2123_v59 = vmax.f32 %v1499_v12, 0.0 }
 0x1de   :  { %v2132_v13 = vmax.f32 %v1390_v37, 0.0  ;;  %v1392_v14 = vpop.f32.mrb[29].mxu0  ;;  %2478 = vmatmul.mubr.f32.gmra.mrb[122].mxu0 %v2120_v11  ;;  %2618 = vmatmul.mubr.f32.gmra.mrb[120].mxu1 %v2110_v52  ;;  %v2307_v11 = vld [vmem:[%s5742_s2 + $0x4b8] sm:$0xff]  ;;  %v4197_v37 = vpack.c.bf16 %v2319_v39, %v2318_v63  ;;  %v4179_v63 = vpack.c.bf16 %v2311_v50, %v2310_v49 }
 0x1df   :  { %v2133_v15 = vmax.f32 %v1392_v14, 0.0  ;;  %v1394_v1 = vpop.f32.mrb[30].mxu0  ;;  %2622 = vmatprep.mubr.f32.mxu1 %v2123_v59  ;;  %v4169_v14 = vpack.c.bf16 %v2289_v55, %v2288_v4  ;;  %v2295_v39 = vld [vmem:[%s5742_s2 + $0x458] sm:$0xff]  ;;  %v2312_v55 = vld [vmem:[%s5742_s2 + $0x4e0] sm:$0xff] }
 0x1e0   :  { %v1396_v10 = vpop.f32.mrb[31].mxu0  ;;  %v2144_v24 = vmax.f32 %v1394_v1, 0.0  ;;  %v2290_v1 = vld [vmem:[%s5742_s2 + $0x430] sm:$0xff] }
 0x1e1   :  { %v1503_v19 = vpop.f32.mrb[28].mxu1  ;;  %2482 = vmatprep.mubr.f32.mxu0 %v2133_v15  ;;  %v2145_v20 = vmax.f32 %v1396_v10, 0.0  ;;  %v4199_v15 = vpack.c.bf16 %v2337_v43, %v2336_v45  ;;  %v2321_v10 = vld [vmem:[%s5742_s2 + $0x528] sm:$0xff] }
 0x1e2   :  { %v1505_v22 = vpop.f32.mrb[29].mxu1  ;;  %2483 = vmatmul.mubr.f32.gmra.mrb[124].mxu0 %v2132_v13  ;;  %2623 = vmatmul.mubr.f32.gmra.mrb[122].mxu1 %v2122_v17  ;;  %v2134_v25 = vmax.f32 %v1503_v19, 0.0  ;;  %v2320_v17 = vld [vmem:[%s5742_s2 + $0x520] sm:$0xff]  ;;  %v2313_v45 = vld [vmem:[%s5742_s2 + $0x4e8] sm:$0xff] }
 0x1e3   :  { %v2135_v23 = vmax.f32 %v1505_v22, 0.0  ;;  %v1507_v9 = vpop.f32.mrb[30].mxu1  ;;  %2487 = vmatprep.mubr.f32.mxu0 %v2145_v20  ;;  %v4171_v22 = vpack.c.bf16 %v2307_v11, %v2306_v7 }
 0x1e4   :  { %v1509_v28 = vpop.f32.mrb[31].mxu1  ;;  %v2146_v44 = vmax.f32 %v1507_v9, 0.0  ;;  %v2338_v9 = vld [vmem:[%s5742_s2 + $0x5b0] sm:$0xff] }
 0x1e5   :  { %v1546_v35 = vpop.f32.mrb[32].mxu0  ;;  %2627 = vmatprep.mubr.f32.mxu1 %v2135_v23  ;;  %v2147_v36 = vmax.f32 %v1509_v28, 0.0  ;;  %v2291_v23 = vld [vmem:[%s5742_s2 + $0x438] sm:$0xff]  ;;  %v2308_v28 = vld [vmem:[%s5742_s2 + $0x4c0] sm:$0xff] }
 0x1e6   :  { %v1968_v41 = vmax.f32 %v1546_v35, 0.0  ;;  %v1548_v21 = vpop.f32.mrb[33].mxu0  ;;  %2488 = vmatmul.mubr.f32.gmra.mrb[126].mxu0 %v2144_v24  ;;  %2628 = vmatmul.mubr.f32.gmra.mrb[124].mxu1 %v2134_v25  ;;  %v2339_v24 = vld [vmem:[%s5742_s2 + $0x5b8] sm:$0xff]  ;;  %v4175_v18 = vpack.c.bf16 %v2309_v30, %v2308_v28 }
 0x1e7   :  { %v1969_v38 = vmax.f32 %v1548_v21, 0.0  ;;  %v1550_v42 = vpop.f32.mrb[34].mxu0  ;;  %2632 = vmatprep.mubr.f32.mxu1 %v2147_v36  ;;  %v4201_v36 = vpack.c.bf16 %v2321_v10, %v2320_v17  ;;  %v4173_v21 = vpack.c.bf16 %v2291_v23, %v2290_v1  ;;  %v4183_v17 = vpack.c.bf16 %v2313_v45, %v2312_v55  ;;  %v2297_v10 = vld [vmem:[%s5742_s2 + $0x468] sm:$0xff] }
 0x1e8   :  { %v1552_v26 = vpop.f32.mrb[35].mxu0  ;;  %v1980_v61 = vmax.f32 %v1550_v42, 0.0  ;;  %v2292_v42 = vld [vmem:[%s5742_s2 + $0x440] sm:$0xff] }
 0x1e9   :  { %v1659_v60 = vpop.f32.mrb[32].mxu1  ;;  %2702 = vmatprep.mubr.f32.mxu0 %v1969_v38  ;;  %v1981_v47 = vmax.f32 %v1552_v26, 0.0  ;;  %v4203_v38 = vpack.c.bf16 %v2339_v24, %v2338_v9  ;;  %v2314_v9 = vld [vmem:[%s5742_s2 + $0x4f0] sm:$0xff]  ;;  %v2315_v24 = vld [vmem:[%s5742_s2 + $0x4f8] sm:$0xff] }
 0x1ea   :  { %v1661_v53 = vpop.f32.mrb[33].mxu1  ;;  %2633 = vmatmul.mubr.f32.gmra.mrb[126].mxu1 %v2146_v44  ;;  %2703 = vmatmul.mubr.f32.vlgmr.msra.gmra.mrb[128].mxu0 %v1968_v41  ;;  %v1970_v27 = vmax.f32 %v1659_v60, 0.0  ;;  %v2323_v44 = vld [vmem:[%s5742_s2 + $0x538] sm:$0xff]  ;;  %v2341_v60 = vld [vmem:[%s5742_s2 + $0x5c8] sm:$0xff] }
 0x1eb   :  { %v1971_v33 = vmax.f32 %v1661_v53, 0.0  ;;  %v1663_v57 = vpop.f32.mrb[34].mxu1  ;;  %2707 = vmatprep.mubr.f32.mxu0 %v1981_v47  ;;  %4162 = vmatpush3.bf16.msra.mxu0 %v4161_v3  ;;  %v2322_v3 = vld [vmem:[%s5742_s2 + $0x530] sm:$0xff] }
 0x1ec   :  { %v1665_v62 = vpop.f32.mrb[35].mxu1  ;;  %4164 = vmatprep.subr.bf16.mxu0 %v4163_v51  ;;  %v1982_v59 = vmax.f32 %v1663_v57, 0.0  ;;  %v2293_v51 = vld [vmem:[%s5742_s2 + $0x448] sm:$0xff]  ;;  %v4205_v56 = vpack.c.bf16 %v2323_v44, %v2322_v3  ;;  %v4187_v3 = vpack.c.bf16 %v2315_v24, %v2314_v9  ;;  %v2299_v44 = vld [vmem:[%s5742_s2 + $0x478] sm:$0xff] }
 0x1ed   :  { %v1556_v8 = vpop.f32.mrb[36].mxu0  ;;  %2847 = vmatprep.mubr.f32.mxu1 %v1971_v33  ;;  %v1983_v34 = vmax.f32 %v1665_v62, 0.0  ;;  %v2324_v62 = vld [vmem:[%s5742_s2 + $0x540] sm:$0xff] }
 0x1ee   :  { %v1992_v5 = vmax.f32 %v1556_v8, 0.0  ;;  %v1558_v6 = vpop.f32.mrb[37].mxu0  ;;  %2708 = vmatmul.mubr.f32.gmra.mrb[130].mxu0 %v1980_v61  ;;  %2848 = vmatmul.mubr.f32.vlgmr.msra.gmra.mrb[128].mxu1 %v1970_v27  ;;  %v4207_v61 = vpack.c.bf16 %v2341_v60, %v2340_v46  ;;  %v2294_v27 = vld [vmem:[%s5742_s2 + $0x450] sm:$0xff] }
 0x1ef   :  { %v1993_v52 = vmax.f32 %v1558_v6, 0.0  ;;  %v1560_v12 = vpop.f32.mrb[38].mxu0  ;;  %2852 = vmatprep.mubr.f32.mxu1 %v1983_v34  ;;  %4194 = vmatpush3.bf16.msra.mxu1 %v4193_v58  ;;  %v4177_v58 = vpack.c.bf16 %v2293_v51, %v2292_v42  ;;  %v2342_v8 = vld [vmem:[%s5742_s2 + $0x5d0] sm:$0xff]  ;;  %v2343_v34 = vld [vmem:[%s5742_s2 + $0x5d8] sm:$0xff] }
 0x1f0   :  { %v1562_v13 = vpop.f32.mrb[39].mxu0  ;;  %4166 = vmatpush3.bf16.msra.mxu0 %v4165_v0  ;;  %4196 = vmatprep.subr.bf16.mxu1 %v4195_v2  ;;  %v2004_v16 = vmax.f32 %v1560_v12, 0.0  ;;  %v2325_v0 = vld [vmem:[%s5742_s2 + $0x548] sm:$0xff]  ;;  %v4181_v12 = vpack.c.bf16 %v2295_v39, %v2294_v27 }
 0x1f1   :  { %v1669_v19 = vpop.f32.mrb[36].mxu1  ;;  %2712 = vmatprep.mubr.f32.mxu0 %v1993_v52  ;;  %v2005_v20 = vmax.f32 %v1562_v13, 0.0  ;;  %4168 = vmatprep.subr.bf16.mxu0 %v4167_v29  ;;  %v4209_v6 = vpack.c.bf16 %v2325_v0, %v2324_v62  ;;  %v2326_v13 = vld [vmem:[%s5742_s2 + $0x550] sm:$0xff] }
 0x1f2   :  { %v1671_v25 = vpop.f32.mrb[37].mxu1  ;;  %2713 = vmatmul.mubr.f32.gmra.mrb[132].mxu0 %v1992_v5  ;;  %2853 = vmatmul.mubr.f32.gmra.mrb[130].mxu1 %v1982_v59  ;;  %v1994_v40 = vmax.f32 %v1669_v19, 0.0  ;;  %v2296_v59 = vld [vmem:[%s5742_s2 + $0x460] sm:$0xff] }
 0x1f3   :  { %v1995_v32 = vmax.f32 %v1671_v25, 0.0  ;;  %v1673_v35 = vpop.f32.mrb[38].mxu1  ;;  %2717 = vmatprep.mubr.f32.mxu0 %v2005_v20  ;;  %4198 = vmatpush3.bf16.msra.mxu1 %v4197_v37  ;;  %v4211_v37 = vpack.c.bf16 %v2343_v34, %v2342_v8  ;;  %v2344_v19 = vld [vmem:[%s5742_s2 + $0x5e0] sm:$0xff]  ;;  %v2345_v20 = vld [vmem:[%s5742_s2 + $0x5e8] sm:$0xff] }
 0x1f4   :  { %v1675_v41 = vpop.f32.mrb[39].mxu1  ;;  %4170 = vmatpush3.bf16.msra.mxu0 %v4169_v14  ;;  %4200 = vmatprep.subr.bf16.mxu1 %v4199_v15  ;;  %v2006_v33 = vmax.f32 %v1673_v35, 0.0  ;;  %v2327_v14 = vld [vmem:[%s5742_s2 + $0x558] sm:$0xff] }
 0x1f5   :  { %v1566_v26 = vpop.f32.mrb[40].mxu0  ;;  %2857 = vmatprep.mubr.f32.mxu1 %v1995_v32  ;;  %v2007_v31 = vmax.f32 %v1675_v41, 0.0  ;;  %4172 = vmatprep.subr.bf16.mxu0 %v4171_v22  ;;  %v4213_v30 = vpack.c.bf16 %v2327_v14, %v2326_v13  ;;  %v2328_v41 = vld [vmem:[%s5742_s2 + $0x560] sm:$0xff] }
 0x1f6   :  { %v2016_v47 = vmax.f32 %v1566_v26, 0.0  ;;  %v1568_v48 = vpop.f32.mrb[41].mxu0  ;;  %2718 = vmatmul.mubr.f32.gmra.mrb[134].mxu0 %v2004_v16  ;;  %2858 = vmatmul.mubr.f32.gmra.mrb[132].mxu1 %v1994_v40  ;;  %v4215_v16 = vpack.c.bf16 %v2345_v20, %v2344_v19  ;;  %v2298_v40 = vld [vmem:[%s5742_s2 + $0x470] sm:$0xff] }
 0x1f7   :  { %v2017_v53 = vmax.f32 %v1568_v48, 0.0  ;;  %v1570_v54 = vpop.f32.mrb[42].mxu0  ;;  %2862 = vmatprep.mubr.f32.mxu1 %v2007_v31  ;;  %4202 = vmatpush3.bf16.msra.mxu1 %v4201_v36  ;;  %v4185_v36 = vpack.c.bf16 %v2297_v10, %v2296_v59  ;;  %v2346_v26 = vld [vmem:[%s5742_s2 + $0x5f0] sm:$0xff]  ;;  %v2347_v31 = vld [vmem:[%s5742_s2 + $0x5f8] sm:$0xff]  ;;  %v4189_v50 = vpack.c.bf16 %v2299_v44, %v2298_v40 }
 0x1f8   :  { %v1572_v57 = vpop.f32.mrb[43].mxu0  ;;  %4174 = vmatpush3.bf16.msra.mxu0 %v4173_v21  ;;  %4204 = vmatprep.subr.bf16.mxu1 %v4203_v38  ;;  %v2028_v7 = vmax.f32 %v1570_v54, 0.0  ;;  %v2329_v21 = vld [vmem:[%s5742_s2 + $0x568] sm:$0xff]  ;;  %v2330_v54 = vld [vmem:[%s5742_s2 + $0x570] sm:$0xff] }
 0x1f9   :  { %v1679_v2 = vpop.f32.mrb[40].mxu1  ;;  %2722 = vmatprep.mubr.f32.mxu0 %v2017_v53  ;;  %v2029_v4 = vmax.f32 %v1572_v57, 0.0  ;;  %4176 = vmatprep.subr.bf16.mxu0 %v4175_v18  ;;  %v4217_v60 = vpack.c.bf16 %v2329_v21, %v2328_v41  ;;  %v4219_v53 = vpack.c.bf16 %v2347_v31, %v2346_v26 }
 0x1fa   :  { %v1681_v29 = vpop.f32.mrb[41].mxu1  ;;  %2723 = vmatmul.mubr.f32.gmra.mrb[136].mxu0 %v2016_v47  ;;  %2863 = vmatmul.mubr.f32.gmra.mrb[134].mxu1 %v2006_v33  ;;  %v2018_v11 = vmax.f32 %v1679_v2, 0.0 }
 0x1fb   :  { %v2019_v43 = vmax.f32 %v1681_v29, 0.0  ;;  %v1683_v5 = vpop.f32.mrb[42].mxu1  ;;  %2727 = vmatprep.mubr.f32.mxu0 %v2029_v4  ;;  %4206 = vmatpush3.bf16.msra.mxu1 %v4205_v56  ;;  %v2331_v56 = vld [vmem:[%s5742_s2 + $0x578] sm:$0xff] }
 0x1fc   :  { %v1685_v52 = vpop.f32.mrb[43].mxu1  ;;  %4178 = vmatpush3.bf16.msra.mxu0 %v4177_v58  ;;  %4208 = vmatprep.subr.bf16.mxu1 %v4207_v61  ;;  %v2030_v32 = vmax.f32 %v1683_v5, 0.0  ;;  %v4221_v0 = vpack.c.bf16 %v2331_v56, %v2330_v54 }
 0x1fd   :  { %v1576_v15 = vpop.f32.mrb[44].mxu0  ;;  %2867 = vmatprep.mubr.f32.mxu1 %v2019_v43  ;;  %v2031_v1 = vmax.f32 %v1685_v52, 0.0  ;;  %4180 = vmatprep.subr.bf16.mxu0 %v4179_v63 }
 0x1fe   :  { %v2040_v22 = vmax.f32 %v1576_v15, 0.0  ;;  %v1578_v23 = vpop.f32.mrb[45].mxu0  ;;  %2728 = vmatmul.mubr.f32.gmra.mrb[138].mxu0 %v2028_v7  ;;  %2868 = vmatmul.mubr.f32.gmra.mrb[136].mxu1 %v2018_v11 }
 0x1ff   :  { %v2041_v25 = vmax.f32 %v1578_v23, 0.0  ;;  %v1580_v28 = vpop.f32.mrb[46].mxu0  ;;  %2872 = vmatprep.mubr.f32.mxu1 %v2031_v1  ;;  %4210 = vmatpush3.bf16.msra.mxu1 %v4209_v6 }
 0x200   :  { %v1582_v35 = vpop.f32.mrb[47].mxu0  ;;  %4182 = vmatpush3.bf16.msra.mxu0 %v4181_v12  ;;  %4212 = vmatprep.subr.bf16.mxu1 %v4211_v37  ;;  %v2052_v47 = vmax.f32 %v1580_v28, 0.0 }
 0x201   :  { %v1689_v38 = vpop.f32.mrb[44].mxu1  ;;  %2732 = vmatprep.mubr.f32.mxu0 %v2041_v25  ;;  %v2053_v42 = vmax.f32 %v1582_v35, 0.0  ;;  %4184 = vmatprep.subr.bf16.mxu0 %v4183_v17 }
 0x202   :  { %v1691_v18 = vpop.f32.mrb[45].mxu1  ;;  %2733 = vmatmul.mubr.f32.gmra.mrb[140].mxu0 %v2040_v22  ;;  %2873 = vmatmul.mubr.f32.gmra.mrb[138].mxu1 %v2030_v32  ;;  %v2042_v48 = vmax.f32 %v1689_v38, 0.0 }
 0x203   :  { %v2043_v51 = vmax.f32 %v1691_v18, 0.0  ;;  %v1693_v46 = vpop.f32.mrb[46].mxu1  ;;  %2737 = vmatprep.mubr.f32.mxu0 %v2053_v42  ;;  %4214 = vmatpush3.bf16.msra.mxu1 %v4213_v30 }
 0x204   :  { %v1695_v49 = vpop.f32.mrb[47].mxu1  ;;  %4186 = vmatpush3.bf16.msra.mxu0 %v4185_v36  ;;  %4216 = vmatprep.subr.bf16.mxu1 %v4215_v16  ;;  %v2054_v2 = vmax.f32 %v1693_v46, 0.0 }
 0x205   :  { %v1586_v33 = vpop.f32.mrb[48].mxu0  ;;  %2877 = vmatprep.mubr.f32.mxu1 %v2043_v51  ;;  %v2055_v57 = vmax.f32 %v1695_v49, 0.0  ;;  %4188 = vmatprep.subr.bf16.mxu0 %v4187_v3 }
 0x206   :  { %v2064_v58 = vmax.f32 %v1586_v33, 0.0  ;;  %v1588_v61 = vpop.f32.mrb[49].mxu0  ;;  %2738 = vmatmul.mubr.f32.gmra.mrb[142].mxu0 %v2052_v47  ;;  %2878 = vmatmul.mubr.f32.gmra.mrb[140].mxu1 %v2042_v48 }
 0x207   :  { %v2065_v27 = vmax.f32 %v1588_v61, 0.0  ;;  %v1590_v62 = vpop.f32.mrb[50].mxu0  ;;  %2882 = vmatprep.mubr.f32.mxu1 %v2055_v57  ;;  %4218 = vmatpush3.bf16.msra.mxu1 %v4217_v60 }
 0x208   :  { %v1592_v4 = vpop.f32.mrb[51].mxu0  ;;  %4190 = vmatpush3.bf16.msra.mxu0 %v4189_v50  ;;  %4220 = vmatprep.subr.bf16.mxu1 %v4219_v53  ;;  %v2076_v55 = vmax.f32 %v1590_v62, 0.0 }
 0x209   :  { %v1699_v63 = vpop.f32.mrb[48].mxu1  ;;  %2742 = vmatprep.mubr.f32.mxu0 %v2065_v27  ;;  %v2077_v39 = vmax.f32 %v1592_v4, 0.0 }
 0x20a   :  { %v1701_v8 = vpop.f32.mrb[49].mxu1  ;;  %2743 = vmatmul.mubr.f32.gmra.mrb[144].mxu0 %v2064_v58  ;;  %2883 = vmatmul.mubr.f32.gmra.mrb[142].mxu1 %v2054_v2  ;;  %v2066_v45 = vmax.f32 %v1699_v63, 0.0 }
 0x20b   :  { %v2067_v34 = vmax.f32 %v1701_v8, 0.0  ;;  %v1703_v29 = vpop.f32.mrb[50].mxu1  ;;  %2747 = vmatprep.mubr.f32.mxu0 %v2077_v39  ;;  %4222 = vmatpush3.bf16.msra.mxu1 %v4221_v0 }
 0x20c   :  { %v1705_v43 = vpop.f32.mrb[51].mxu1  ;;  %v2078_v37 = vmax.f32 %v1703_v29, 0.0 }
 0x20d   :  { %v1596_v5 = vpop.f32.mrb[52].mxu0  ;;  %2887 = vmatprep.mubr.f32.mxu1 %v2067_v34  ;;  %v2079_v6 = vmax.f32 %v1705_v43, 0.0 }
 0x20e   :  { %v2088_v7 = vmax.f32 %v1596_v5, 0.0  ;;  %v1598_v11 = vpop.f32.mrb[53].mxu0  ;;  %2748 = vmatmul.mubr.f32.gmra.mrb[146].mxu0 %v2076_v55  ;;  %2888 = vmatmul.mubr.f32.gmra.mrb[144].mxu1 %v2066_v45 }
 0x20f   :  { %v2089_v52 = vmax.f32 %v1598_v11, 0.0  ;;  %v1600_v12 = vpop.f32.mrb[54].mxu0  ;;  %2892 = vmatprep.mubr.f32.mxu1 %v2079_v6 }
 0x210   :  { %v1602_v59 = vpop.f32.mrb[55].mxu0  ;;  %v2100_v10 = vmax.f32 %v1600_v12, 0.0 }
 0x211   :  { %v1709_v13 = vpop.f32.mrb[52].mxu1  ;;  %2752 = vmatprep.mubr.f32.mxu0 %v2089_v52  ;;  %v2101_v14 = vmax.f32 %v1602_v59, 0.0 }
 0x212   :  { %v1711_v15 = vpop.f32.mrb[53].mxu1  ;;  %2753 = vmatmul.mubr.f32.gmra.mrb[148].mxu0 %v2088_v7  ;;  %2893 = vmatmul.mubr.f32.gmra.mrb[146].mxu1 %v2078_v37  ;;  %v2090_v19 = vmax.f32 %v1709_v13, 0.0 }
 0x213   :  { %v2091_v1 = vmax.f32 %v1711_v15, 0.0  ;;  %v1713_v17 = vpop.f32.mrb[54].mxu1  ;;  %2757 = vmatprep.mubr.f32.mxu0 %v2101_v14 }
 0x214   :  { %v1715_v20 = vpop.f32.mrb[55].mxu1  ;;  %v2102_v30 = vmax.f32 %v1713_v17, 0.0 }
 0x215   :  { %v1606_v22 = vpop.f32.mrb[56].mxu0  ;;  %2897 = vmatprep.mubr.f32.mxu1 %v2091_v1  ;;  %v2103_v23 = vmax.f32 %v1715_v20, 0.0 }
 0x216   :  { %v2112_v9 = vmax.f32 %v1606_v22, 0.0  ;;  %v1608_v24 = vpop.f32.mrb[57].mxu0  ;;  %2758 = vmatmul.mubr.f32.gmra.mrb[150].mxu0 %v2100_v10  ;;  %2898 = vmatmul.mubr.f32.gmra.mrb[148].mxu1 %v2090_v19 }
 0x217   :  { %v2113_v25 = vmax.f32 %v1608_v24, 0.0  ;;  %v1610_v28 = vpop.f32.mrb[58].mxu0  ;;  %2902 = vmatprep.mubr.f32.mxu1 %v2103_v23 }
 0x218   :  { %v1612_v32 = vpop.f32.mrb[59].mxu0  ;;  %v2124_v21 = vmax.f32 %v1610_v28, 0.0 }
 0x219   :  { %v1719_v35 = vpop.f32.mrb[56].mxu1  ;;  %2762 = vmatprep.mubr.f32.mxu0 %v2113_v25  ;;  %v2125_v36 = vmax.f32 %v1612_v32, 0.0 }
 0x21a   :  { %v1721_v16 = vpop.f32.mrb[57].mxu1  ;;  %2763 = vmatmul.mubr.f32.gmra.mrb[152].mxu0 %v2112_v9  ;;  %2903 = vmatmul.mubr.f32.gmra.mrb[150].mxu1 %v2102_v30  ;;  %v2114_v38 = vmax.f32 %v1719_v35, 0.0 }
 0x21b   :  { %v2115_v40 = vmax.f32 %v1721_v16, 0.0  ;;  %v1723_v41 = vpop.f32.mrb[58].mxu1  ;;  %2767 = vmatprep.mubr.f32.mxu0 %v2125_v36 }
 0x21c   :  { %v1725_v42 = vpop.f32.mrb[59].mxu1  ;;  %v2126_v46 = vmax.f32 %v1723_v41, 0.0 }
 0x21d   :  { %v1616_v3 = vpop.f32.mrb[60].mxu0  ;;  %2907 = vmatprep.mubr.f32.mxu1 %v2115_v40  ;;  %v2127_v44 = vmax.f32 %v1725_v42, 0.0 }
 0x21e   :  { %v2136_v26 = vmax.f32 %v1616_v3, 0.0  ;;  %v1618_v31 = vpop.f32.mrb[61].mxu0  ;;  %2768 = vmatmul.mubr.f32.gmra.mrb[154].mxu0 %v2124_v21  ;;  %2908 = vmatmul.mubr.f32.gmra.mrb[152].mxu1 %v2114_v38 }
 0x21f   :  { %v2137_v18 = vmax.f32 %v1618_v31, 0.0  ;;  %v1620_v51 = vpop.f32.mrb[62].mxu0  ;;  %2912 = vmatprep.mubr.f32.mxu1 %v2127_v44 }
 0x220   :  { %v1622_v60 = vpop.f32.mrb[63].mxu0  ;;  %v2148_v54 = vmax.f32 %v1620_v51, 0.0 }
 0x221   :  { %v1729_v47 = vpop.f32.mrb[60].mxu1  ;;  %2772 = vmatprep.mubr.f32.mxu0 %v2137_v18  ;;  %v2149_v48 = vmax.f32 %v1622_v60, 0.0 }
 0x222   :  { %v1731_v49 = vpop.f32.mrb[61].mxu1  ;;  %2773 = vmatmul.mubr.f32.gmra.mrb[156].mxu0 %v2136_v26  ;;  %2913 = vmatmul.mubr.f32.gmra.mrb[154].mxu1 %v2126_v46  ;;  %v2138_v56 = vmax.f32 %v1729_v47, 0.0 }
 0x223   :  { %v2139_v50 = vmax.f32 %v1731_v49, 0.0  ;;  %v1733_v53 = vpop.f32.mrb[62].mxu1  ;;  %2777 = vmatprep.mubr.f32.mxu0 %v2149_v48 }
 0x224   :  { %v1735_v33 = vpop.f32.mrb[63].mxu1  ;;  %v2150_v2 = vmax.f32 %v1733_v53, 0.0 }
 0x225   :  { %v1772_v57 = vpop.f32.mrb[64].mxu0  ;;  %2917 = vmatprep.mubr.f32.mxu1 %v2139_v50  ;;  %v2151_v58 = vmax.f32 %v1735_v33, 0.0 }
 0x226   :  { %v1972_v61 = vmax.f32 %v1772_v57, 0.0  ;;  %v1774_v27 = vpop.f32.mrb[65].mxu0  ;;  %2778 = vmatmul.mubr.f32.gmra.mrb[158].mxu0 %v2148_v54  ;;  %2918 = vmatmul.mubr.f32.gmra.mrb[156].mxu1 %v2138_v56 }
 0x227   :  { %v1973_v62 = vmax.f32 %v1774_v27, 0.0  ;;  %v1776_v0 = vpop.f32.mrb[66].mxu0  ;;  %2922 = vmatprep.mubr.f32.mxu1 %v2151_v58 }
 0x228   :  { %v1778_v4 = vpop.f32.mrb[67].mxu0  ;;  %v1984_v55 = vmax.f32 %v1776_v0, 0.0 }
 0x229   :  { %v1885_v63 = vpop.f32.mrb[64].mxu1  ;;  %2992 = vmatprep.mubr.f32.mxu0 %v1973_v62  ;;  %v1985_v39 = vmax.f32 %v1778_v4, 0.0 }
 0x22a   :  { %v1887_v8 = vpop.f32.mrb[65].mxu1  ;;  %2923 = vmatmul.mubr.f32.gmra.mrb[158].mxu1 %v2150_v2  ;;  %2993 = vmatmul.mubr.f32.vlgmr.msra.gmra.mrb[160].mxu0 %v1972_v61  ;;  %v1974_v45 = vmax.f32 %v1885_v63, 0.0 }
 0x22b   :  { %v1975_v34 = vmax.f32 %v1887_v8, 0.0  ;;  %v1889_v29 = vpop.f32.mrb[66].mxu1  ;;  %2997 = vmatprep.mubr.f32.mxu0 %v1985_v39 }
 0x22c   :  { %v1891_v43 = vpop.f32.mrb[67].mxu1  ;;  %v1986_v37 = vmax.f32 %v1889_v29, 0.0 }
 0x22d   :  { %v1782_v5 = vpop.f32.mrb[68].mxu0  ;;  %3137 = vmatprep.mubr.f32.mxu1 %v1975_v34  ;;  %v1987_v6 = vmax.f32 %v1891_v43, 0.0 }
 0x22e   :  { %v1996_v7 = vmax.f32 %v1782_v5, 0.0  ;;  %v1784_v11 = vpop.f32.mrb[69].mxu0  ;;  %2998 = vmatmul.mubr.f32.gmra.mrb[162].mxu0 %v1984_v55  ;;  %3138 = vmatmul.mubr.f32.vlgmr.msra.gmra.mrb[160].mxu1 %v1974_v45 }
 0x22f   :  { %v1997_v52 = vmax.f32 %v1784_v11, 0.0  ;;  %v1786_v12 = vpop.f32.mrb[70].mxu0  ;;  %3142 = vmatprep.mubr.f32.mxu1 %v1987_v6 }
 0x230   :  { %v1788_v59 = vpop.f32.mrb[71].mxu0  ;;  %v2008_v10 = vmax.f32 %v1786_v12, 0.0 }
 0x231   :  { %v1895_v13 = vpop.f32.mrb[68].mxu1  ;;  %3002 = vmatprep.mubr.f32.mxu0 %v1997_v52  ;;  %v2009_v14 = vmax.f32 %v1788_v59, 0.0 }
 0x232   :  { %v1897_v15 = vpop.f32.mrb[69].mxu1  ;;  %3003 = vmatmul.mubr.f32.gmra.mrb[164].mxu0 %v1996_v7  ;;  %3143 = vmatmul.mubr.f32.gmra.mrb[162].mxu1 %v1986_v37  ;;  %v1998_v19 = vmax.f32 %v1895_v13, 0.0 }
 0x233   :  { %v1999_v1 = vmax.f32 %v1897_v15, 0.0  ;;  %v1899_v17 = vpop.f32.mrb[70].mxu1  ;;  %3007 = vmatprep.mubr.f32.mxu0 %v2009_v14 }
 0x234   :  { %v1901_v20 = vpop.f32.mrb[71].mxu1  ;;  %v2010_v30 = vmax.f32 %v1899_v17, 0.0 }
 0x235   :  { %v1792_v22 = vpop.f32.mrb[72].mxu0  ;;  %3147 = vmatprep.mubr.f32.mxu1 %v1999_v1  ;;  %v2011_v23 = vmax.f32 %v1901_v20, 0.0 }
 0x236   :  { %v2020_v9 = vmax.f32 %v1792_v22, 0.0  ;;  %v1794_v24 = vpop.f32.mrb[73].mxu0  ;;  %3008 = vmatmul.mubr.f32.gmra.mrb[166].mxu0 %v2008_v10  ;;  %3148 = vmatmul.mubr.f32.gmra.mrb[164].mxu1 %v1998_v19 }
 0x237   :  { %v2021_v25 = vmax.f32 %v1794_v24, 0.0  ;;  %v1796_v28 = vpop.f32.mrb[74].mxu0  ;;  %3152 = vmatprep.mubr.f32.mxu1 %v2011_v23 }
 0x238   :  { %v1798_v32 = vpop.f32.mrb[75].mxu0  ;;  %v2032_v21 = vmax.f32 %v1796_v28, 0.0 }
 0x239   :  { %v1905_v35 = vpop.f32.mrb[72].mxu1  ;;  %3012 = vmatprep.mubr.f32.mxu0 %v2021_v25  ;;  %v2033_v36 = vmax.f32 %v1798_v32, 0.0 }
 0x23a   :  { %v1907_v16 = vpop.f32.mrb[73].mxu1  ;;  %3013 = vmatmul.mubr.f32.gmra.mrb[168].mxu0 %v2020_v9  ;;  %3153 = vmatmul.mubr.f32.gmra.mrb[166].mxu1 %v2010_v30  ;;  %v2022_v38 = vmax.f32 %v1905_v35, 0.0 }
 0x23b   :  { %v2023_v40 = vmax.f32 %v1907_v16, 0.0  ;;  %v1909_v41 = vpop.f32.mrb[74].mxu1  ;;  %3017 = vmatprep.mubr.f32.mxu0 %v2033_v36 }
 0x23c   :  { %v1911_v42 = vpop.f32.mrb[75].mxu1  ;;  %v2034_v46 = vmax.f32 %v1909_v41, 0.0 }
 0x23d   :  { %v1802_v3 = vpop.f32.mrb[76].mxu0  ;;  %3157 = vmatprep.mubr.f32.mxu1 %v2023_v40  ;;  %v2035_v44 = vmax.f32 %v1911_v42, 0.0 }
 0x23e   :  { %v2044_v26 = vmax.f32 %v1802_v3, 0.0  ;;  %v1804_v31 = vpop.f32.mrb[77].mxu0  ;;  %3018 = vmatmul.mubr.f32.gmra.mrb[170].mxu0 %v2032_v21  ;;  %3158 = vmatmul.mubr.f32.gmra.mrb[168].mxu1 %v2022_v38 }
 0x23f   :  { %v2045_v18 = vmax.f32 %v1804_v31, 0.0  ;;  %v1806_v51 = vpop.f32.mrb[78].mxu0  ;;  %3162 = vmatprep.mubr.f32.mxu1 %v2035_v44 }
 0x240   :  { %v1808_v60 = vpop.f32.mrb[79].mxu0  ;;  %v2056_v54 = vmax.f32 %v1806_v51, 0.0 }
 0x241   :  { %v1915_v47 = vpop.f32.mrb[76].mxu1  ;;  %3022 = vmatprep.mubr.f32.mxu0 %v2045_v18  ;;  %v2057_v48 = vmax.f32 %v1808_v60, 0.0 }
 0x242   :  { %v1917_v49 = vpop.f32.mrb[77].mxu1  ;;  %3023 = vmatmul.mubr.f32.gmra.mrb[172].mxu0 %v2044_v26  ;;  %3163 = vmatmul.mubr.f32.gmra.mrb[170].mxu1 %v2034_v46  ;;  %v2046_v56 = vmax.f32 %v1915_v47, 0.0 }
 0x243   :  { %v2047_v50 = vmax.f32 %v1917_v49, 0.0  ;;  %v1919_v53 = vpop.f32.mrb[78].mxu1  ;;  %3027 = vmatprep.mubr.f32.mxu0 %v2057_v48 }
 0x244   :  { %v1921_v33 = vpop.f32.mrb[79].mxu1  ;;  %v2058_v2 = vmax.f32 %v1919_v53, 0.0 }
 0x245   :  { %v1812_v57 = vpop.f32.mrb[80].mxu0  ;;  %3167 = vmatprep.mubr.f32.mxu1 %v2047_v50  ;;  %v2059_v58 = vmax.f32 %v1921_v33, 0.0 }
 0x246   :  { %v2068_v61 = vmax.f32 %v1812_v57, 0.0  ;;  %v1814_v27 = vpop.f32.mrb[81].mxu0  ;;  %3028 = vmatmul.mubr.f32.gmra.mrb[174].mxu0 %v2056_v54  ;;  %3168 = vmatmul.mubr.f32.gmra.mrb[172].mxu1 %v2046_v56 }
 0x247   :  { %v2069_v62 = vmax.f32 %v1814_v27, 0.0  ;;  %v1816_v0 = vpop.f32.mrb[82].mxu0  ;;  %3172 = vmatprep.mubr.f32.mxu1 %v2059_v58 }
 0x248   :  { %v1818_v4 = vpop.f32.mrb[83].mxu0  ;;  %v2080_v55 = vmax.f32 %v1816_v0, 0.0 }
 0x249   :  { %v1925_v63 = vpop.f32.mrb[80].mxu1  ;;  %3032 = vmatprep.mubr.f32.mxu0 %v2069_v62  ;;  %v2081_v39 = vmax.f32 %v1818_v4, 0.0 }
 0x24a   :  { %v1927_v8 = vpop.f32.mrb[81].mxu1  ;;  %3033 = vmatmul.mubr.f32.gmra.mrb[176].mxu0 %v2068_v61  ;;  %3173 = vmatmul.mubr.f32.gmra.mrb[174].mxu1 %v2058_v2  ;;  %v2070_v45 = vmax.f32 %v1925_v63, 0.0 }
 0x24b   :  { %v2071_v34 = vmax.f32 %v1927_v8, 0.0  ;;  %v1929_v29 = vpop.f32.mrb[82].mxu1  ;;  %3037 = vmatprep.mubr.f32.mxu0 %v2081_v39 }
 0x24c   :  { %v1931_v43 = vpop.f32.mrb[83].mxu1  ;;  %v2082_v37 = vmax.f32 %v1929_v29, 0.0 }
 0x24d   :  { %v1822_v5 = vpop.f32.mrb[84].mxu0  ;;  %3177 = vmatprep.mubr.f32.mxu1 %v2071_v34  ;;  %v2083_v6 = vmax.f32 %v1931_v43, 0.0 }
 0x24e   :  { %v2092_v7 = vmax.f32 %v1822_v5, 0.0  ;;  %v1824_v11 = vpop.f32.mrb[85].mxu0  ;;  %3038 = vmatmul.mubr.f32.gmra.mrb[178].mxu0 %v2080_v55  ;;  %3178 = vmatmul.mubr.f32.gmra.mrb[176].mxu1 %v2070_v45 }
 0x24f   :  { %v2093_v52 = vmax.f32 %v1824_v11, 0.0  ;;  %v1826_v12 = vpop.f32.mrb[86].mxu0  ;;  %3182 = vmatprep.mubr.f32.mxu1 %v2083_v6 }
 0x250   :  { %v1828_v59 = vpop.f32.mrb[87].mxu0  ;;  %v2104_v10 = vmax.f32 %v1826_v12, 0.0 }
 0x251   :  { %v1935_v13 = vpop.f32.mrb[84].mxu1  ;;  %3042 = vmatprep.mubr.f32.mxu0 %v2093_v52  ;;  %v2105_v14 = vmax.f32 %v1828_v59, 0.0 }
 0x252   :  { %v1937_v15 = vpop.f32.mrb[85].mxu1  ;;  %3043 = vmatmul.mubr.f32.gmra.mrb[180].mxu0 %v2092_v7  ;;  %3183 = vmatmul.mubr.f32.gmra.mrb[178].mxu1 %v2082_v37  ;;  %v2094_v19 = vmax.f32 %v1935_v13, 0.0 }
 0x253   :  { %v2095_v1 = vmax.f32 %v1937_v15, 0.0  ;;  %v1939_v17 = vpop.f32.mrb[86].mxu1  ;;  %3047 = vmatprep.mubr.f32.mxu0 %v2105_v14 }
 0x254   :  { %v1941_v20 = vpop.f32.mrb[87].mxu1  ;;  %v2106_v30 = vmax.f32 %v1939_v17, 0.0 }
 0x255   :  { %v1832_v22 = vpop.f32.mrb[88].mxu0  ;;  %3187 = vmatprep.mubr.f32.mxu1 %v2095_v1  ;;  %v2107_v23 = vmax.f32 %v1941_v20, 0.0 }
 0x256   :  { %v2116_v9 = vmax.f32 %v1832_v22, 0.0  ;;  %v1834_v24 = vpop.f32.mrb[89].mxu0  ;;  %3048 = vmatmul.mubr.f32.gmra.mrb[182].mxu0 %v2104_v10  ;;  %3188 = vmatmul.mubr.f32.gmra.mrb[180].mxu1 %v2094_v19 }
 0x257   :  { %v2117_v25 = vmax.f32 %v1834_v24, 0.0  ;;  %v1836_v28 = vpop.f32.mrb[90].mxu0  ;;  %3192 = vmatprep.mubr.f32.mxu1 %v2107_v23 }
 0x258   :  { %v1838_v32 = vpop.f32.mrb[91].mxu0  ;;  %v2128_v21 = vmax.f32 %v1836_v28, 0.0 }
 0x259   :  { %v1945_v35 = vpop.f32.mrb[88].mxu1  ;;  %3052 = vmatprep.mubr.f32.mxu0 %v2117_v25  ;;  %v2129_v36 = vmax.f32 %v1838_v32, 0.0 }
 0x25a   :  { %v1947_v16 = vpop.f32.mrb[89].mxu1  ;;  %3053 = vmatmul.mubr.f32.gmra.mrb[184].mxu0 %v2116_v9  ;;  %3193 = vmatmul.mubr.f32.gmra.mrb[182].mxu1 %v2106_v30  ;;  %v2118_v38 = vmax.f32 %v1945_v35, 0.0 }
 0x25b   :  { %v2119_v40 = vmax.f32 %v1947_v16, 0.0  ;;  %v1949_v41 = vpop.f32.mrb[90].mxu1  ;;  %3057 = vmatprep.mubr.f32.mxu0 %v2129_v36 }
 0x25c   :  { %v1951_v42 = vpop.f32.mrb[91].mxu1  ;;  %v2130_v46 = vmax.f32 %v1949_v41, 0.0 }
 0x25d   :  { %v1842_v3 = vpop.f32.mrb[92].mxu0  ;;  %3197 = vmatprep.mubr.f32.mxu1 %v2119_v40  ;;  %v2131_v44 = vmax.f32 %v1951_v42, 0.0 }
 0x25e   :  { %v2140_v26 = vmax.f32 %v1842_v3, 0.0  ;;  %v1844_v31 = vpop.f32.mrb[93].mxu0  ;;  %3058 = vmatmul.mubr.f32.gmra.mrb[186].mxu0 %v2128_v21  ;;  %3198 = vmatmul.mubr.f32.gmra.mrb[184].mxu1 %v2118_v38 }
 0x25f   :  { %v2141_v18 = vmax.f32 %v1844_v31, 0.0  ;;  %v1846_v51 = vpop.f32.mrb[94].mxu0  ;;  %3202 = vmatprep.mubr.f32.mxu1 %v2131_v44 }
 0x260   :  { %v1848_v60 = vpop.f32.mrb[95].mxu0  ;;  %v2152_v54 = vmax.f32 %v1846_v51, 0.0 }
 0x261   :  { %v1955_v47 = vpop.f32.mrb[92].mxu1  ;;  %3062 = vmatprep.mubr.f32.mxu0 %v2141_v18  ;;  %v2153_v48 = vmax.f32 %v1848_v60, 0.0 }
 0x262   :  { %v1957_v49 = vpop.f32.mrb[93].mxu1  ;;  %3063 = vmatmul.mubr.f32.gmra.mrb[188].mxu0 %v2140_v26  ;;  %3203 = vmatmul.mubr.f32.gmra.mrb[186].mxu1 %v2130_v46  ;;  %v2142_v56 = vmax.f32 %v1955_v47, 0.0 }
 0x263   :  { %v2143_v50 = vmax.f32 %v1957_v49, 0.0  ;;  %v1959_v53 = vpop.f32.mrb[94].mxu1  ;;  %3067 = vmatprep.mubr.f32.mxu0 %v2153_v48 }
 0x264   :  { %v1961_v33 = vpop.f32.mrb[95].mxu1  ;;  %v2154_v58 = vmax.f32 %v1959_v53, 0.0 }
 0x265   :  { %3207 = vmatprep.mubr.f32.mxu1 %v2143_v50  ;;  %v2155_v57 = vmax.f32 %v1961_v33, 0.0 }
 0x266   :  { %3068 = vmatmul.mubr.f32.gmra.mrb[190].mxu0 %v2152_v54  ;;  %3208 = vmatmul.mubr.f32.gmra.mrb[188].mxu1 %v2142_v56 }
 0x267   :  { %3212 = vmatprep.mubr.f32.mxu1 %v2155_v57 }
 0x26a   :  { %3213 = vmatmul.mubr.f32.gmra.mrb[190].mxu1 %v2154_v58 }
 0x27d   :  { %v3525_v61 = vpop.f32.mrb[96].mxu0 }
 0x27e   :  { %v3526_v27 = vpop.f32.mrb[97].mxu0 }
 0x27f   :  { %v3527_v62 = vadd.f32 %v3526_v27, %v3525_v61 }
 0x281   :  { %v3605_v0 = vpop.f32.mrb[96].mxu1  ;;  %v3528_v2 = vpop.f32.mrb[98].mxu0 }
 0x282   :  { %v3606_v4 = vpop.f32.mrb[97].mxu1  ;;  %v3529_v63 = vpop.f32.mrb[99].mxu0 }
 0x283   :  { %v3607_v39 = vadd.f32 %v3606_v4, %v3605_v0  ;;  %v3530_v8 = vadd.f32 %v3529_v63, %v3528_v2 }
 0x285   :  { %v5606_v34 = vadd.f32 %v3607_v39, %v3527_v62  ;;  %v3608_v29 = vpop.f32.mrb[98].mxu1  ;;  %v3531_v55 = vpop.f32.mrb[100].mxu0 }
 0x286   :  { %v3609_v45 = vpop.f32.mrb[99].mxu1  ;;  %v3532_v43 = vpop.f32.mrb[101].mxu0 }
 0x287   :  { %v3610_v5 = vadd.f32 %v3609_v45, %v3608_v29  ;;  %v3533_v6 = vadd.f32 %v3532_v43, %v3531_v55 }
 0x289   :  { %v5608_v7 = vadd.f32 %v3610_v5, %v3530_v8  ;;  %v3611_v11 = vpop.f32.mrb[100].mxu1  ;;  %v3534_v52 = vpop.f32.mrb[102].mxu0 }
 0x28a   :  { %v3612_v12 = vpop.f32.mrb[101].mxu1  ;;  %v3535_v37 = vpop.f32.mrb[103].mxu0 }
 0x28b   :  { %v3613_v59 = vadd.f32 %v3612_v12, %v3611_v11  ;;  %v3536_v13 = vadd.f32 %v3535_v37, %v3534_v52 }
 0x28d   :  { %v5610_v14 = vadd.f32 %v3613_v59, %v3533_v6  ;;  %v3614_v15 = vpop.f32.mrb[102].mxu1  ;;  %v3537_v1 = vpop.f32.mrb[104].mxu0 }
 0x28e   :  { %v3615_v17 = vpop.f32.mrb[103].mxu1  ;;  %v3538_v10 = vpop.f32.mrb[105].mxu0 }
 0x28f   :  { %v3616_v19 = vadd.f32 %v3615_v17, %v3614_v15  ;;  %v3539_v20 = vadd.f32 %v3538_v10, %v3537_v1 }
 0x291   :  { %v5612_v22 = vadd.f32 %v3616_v19, %v3536_v13  ;;  %v3617_v23 = vpop.f32.mrb[104].mxu1  ;;  %v3540_v9 = vpop.f32.mrb[106].mxu0 }
 0x292   :  { %v3618_v24 = vpop.f32.mrb[105].mxu1  ;;  %v3541_v25 = vpop.f32.mrb[107].mxu0 }
 0x293   :  { %v3619_v28 = vadd.f32 %v3618_v24, %v3617_v23  ;;  %v3542_v30 = vadd.f32 %v3541_v25, %v3540_v9 }
 0x295   :  { %v5614_v32 = vadd.f32 %v3619_v28, %v3539_v20  ;;  %v3620_v35 = vpop.f32.mrb[106].mxu1  ;;  %v3543_v36 = vpop.f32.mrb[108].mxu0 }
 0x296   :  { %v3621_v16 = vpop.f32.mrb[107].mxu1  ;;  %v3544_v40 = vpop.f32.mrb[109].mxu0 }
 0x297   :  { %v3622_v41 = vadd.f32 %v3621_v16, %v3620_v35  ;;  %v3545_v21 = vadd.f32 %v3544_v40, %v3543_v36 }
 0x299   :  { %v5616_v38 = vadd.f32 %v3622_v41, %v3542_v30  ;;  %v3546_v42 = vpop.f32.mrb[110].mxu0  ;;  %v3623_v3 = vpop.f32.mrb[108].mxu1 }
 0x29a   :  { %v3547_v44 = vpop.f32.mrb[111].mxu0  ;;  %v3624_v26 = vpop.f32.mrb[109].mxu1 }
 0x29b   :  { %v3548_v31 = vadd.f32 %v3547_v44, %v3546_v42  ;;  %v3625_v18 = vadd.f32 %v3624_v26, %v3623_v3 }
 0x29d   :  { %v3549_v51 = vpop.f32.mrb[112].mxu0  ;;  %v5618_v46 = vadd.f32 %v3625_v18, %v3545_v21  ;;  %v3626_v60 = vpop.f32.mrb[110].mxu1 }
 0x29e   :  { %v3550_v47 = vpop.f32.mrb[113].mxu0  ;;  %v3627_v48 = vpop.f32.mrb[111].mxu1 }
 0x29f   :  { %v3551_v49 = vadd.f32 %v3550_v47, %v3549_v51  ;;  %v3628_v50 = vadd.f32 %v3627_v48, %v3626_v60 }
 0x2a1   :  { %v3552_v53 = vpop.f32.mrb[114].mxu0  ;;  %v5620_v54 = vadd.f32 %v3628_v50, %v3548_v31  ;;  %v3629_v56 = vpop.f32.mrb[112].mxu1 }
 0x2a2   :  { %v3553_v33 = vpop.f32.mrb[115].mxu0  ;;  %v3630_v57 = vpop.f32.mrb[113].mxu1 }
 0x2a3   :  { %v3554_v58 = vadd.f32 %v3553_v33, %v3552_v53  ;;  %v3631_v61 = vadd.f32 %v3630_v57, %v3629_v56 }
 0x2a5   :  { %v3555_v27 = vpop.f32.mrb[116].mxu0  ;;  %v5622_v62 = vadd.f32 %v3631_v61, %v3551_v49  ;;  %v3632_v0 = vpop.f32.mrb[114].mxu1 }
 0x2a6   :  { %v3556_v2 = vpop.f32.mrb[117].mxu0  ;;  %v3633_v4 = vpop.f32.mrb[115].mxu1 }
 0x2a7   :  { %v3557_v63 = vadd.f32 %v3556_v2, %v3555_v27  ;;  %v3634_v39 = vadd.f32 %v3633_v4, %v3632_v0 }
 0x2a9   :  { %v3558_v8 = vpop.f32.mrb[118].mxu0  ;;  %v5624_v29 = vadd.f32 %v3634_v39, %v3554_v58  ;;  %v3635_v55 = vpop.f32.mrb[116].mxu1 }
 0x2aa   :  { %v3559_v45 = vpop.f32.mrb[119].mxu0  ;;  %v3636_v43 = vpop.f32.mrb[117].mxu1 }
 0x2ab   :  { %v3560_v5 = vadd.f32 %v3559_v45, %v3558_v8  ;;  %v3637_v6 = vadd.f32 %v3636_v43, %v3635_v55 }
 0x2ad   :  { %v3561_v11 = vpop.f32.mrb[120].mxu0  ;;  %v5626_v52 = vadd.f32 %v3637_v6, %v3557_v63  ;;  %v3638_v12 = vpop.f32.mrb[118].mxu1 }
 0x2ae   :  { %v3562_v37 = vpop.f32.mrb[121].mxu0  ;;  %v3639_v59 = vpop.f32.mrb[119].mxu1 }
 0x2af   :  { %v3563_v13 = vadd.f32 %v3562_v37, %v3561_v11  ;;  %v3640_v15 = vadd.f32 %v3639_v59, %v3638_v12 }
 0x2b1   :  { %v3564_v1 = vpop.f32.mrb[122].mxu0  ;;  %v5628_v17 = vadd.f32 %v3640_v15, %v3560_v5  ;;  %v3641_v10 = vpop.f32.mrb[120].mxu1 }
 0x2b2   :  { %v3565_v19 = vpop.f32.mrb[123].mxu0  ;;  %v3642_v20 = vpop.f32.mrb[121].mxu1 }
 0x2b3   :  { %v3566_v23 = vadd.f32 %v3565_v19, %v3564_v1  ;;  %v3643_v9 = vadd.f32 %v3642_v20, %v3641_v10 }
 0x2b5   :  { %v3567_v24 = vpop.f32.mrb[124].mxu0  ;;  %v5630_v25 = vadd.f32 %v3643_v9, %v3563_v13  ;;  %v3644_v28 = vpop.f32.mrb[122].mxu1 }
 0x2b6   :  { %v3568_v30 = vpop.f32.mrb[125].mxu0  ;;  %v3645_v35 = vpop.f32.mrb[123].mxu1 }
 0x2b7   :  { %v3569_v36 = vadd.f32 %v3568_v30, %v3567_v24  ;;  %v3646_v16 = vadd.f32 %v3645_v35, %v3644_v28 }
 0x2b9   :  { %v3570_v40 = vpop.f32.mrb[126].mxu0  ;;  %v5632_v41 = vadd.f32 %v3646_v16, %v3566_v23  ;;  %v3647_v21 = vpop.f32.mrb[124].mxu1 }
 0x2ba   :  { %v3571_v42 = vpop.f32.mrb[127].mxu0  ;;  %v3648_v3 = vpop.f32.mrb[125].mxu1 }
 0x2bb   :  { %v3572_v44 = vadd.f32 %v3571_v42, %v3570_v40  ;;  %v3649_v26 = vadd.f32 %v3648_v3, %v3647_v21 }
 0x2bd   :  { %v3685_v31 = vpop.f32.mrb[128].mxu0  ;;  %v5634_v18 = vadd.f32 %v3649_v26, %v3569_v36  ;;  %v3650_v51 = vpop.f32.mrb[126].mxu1 }
 0x2be   :  { %v3686_v60 = vpop.f32.mrb[129].mxu0  ;;  %v3651_v47 = vpop.f32.mrb[127].mxu1 }
 0x2bf   :  { %v3687_v48 = vadd.f32 %v3686_v60, %v3685_v31  ;;  %v3652_v49 = vadd.f32 %v3651_v47, %v3650_v51 }
 0x2c1   :  { %v2705_v50 = vadd.f32 %v3687_v48, %v5606_v34  ;;  %v5637_v53 = vadd.f32 %v3652_v49, %v3572_v44  ;;  %v3688_v56 = vpop.f32.mrb[130].mxu0  ;;  %v3765_v33 = vpop.f32.mrb[128].mxu1  ;;  %v3218_v34 = vld [vmem:[%s5743_s3] sm:$0xff] }
 0x2c2   :  { %v3689_v57 = vpop.f32.mrb[131].mxu0  ;;  %v3766_v58 = vpop.f32.mrb[129].mxu1  ;;  %4025 = vmatprep.mubr.f32.mxu0 %v3218_v34 }
 0x2c3   :  { %v3690_v61 = vadd.f32 %v3689_v57, %v3688_v56  ;;  %v3767_v27 = vadd.f32 %v3766_v58, %v3765_v33 }
 0x2c5   :  { %v2710_v0 = vadd.f32 %v3690_v61, %v5608_v7  ;;  %v5640_v2 = vadd.f32 %v3767_v27, %v2705_v50  ;;  %v3691_v4 = vpop.f32.mrb[132].mxu0  ;;  %v3768_v63 = vpop.f32.mrb[130].mxu1  ;;  %v3220_v7 = vld [vmem:[%s5743_s3 + $0x10] sm:$0xff] }
 0x2c6   :  { %v3692_v39 = vpop.f32.mrb[133].mxu0  ;;  %v3769_v8 = vpop.f32.mrb[131].mxu1  ;;  %4028 = vmatprep.mubr.f32.mxu1 %v3220_v7 }
 0x2c7   :  { %v3693_v55 = vadd.f32 %v3692_v39, %v3691_v4  ;;  %v3770_v45 = vadd.f32 %v3769_v8, %v3768_v63 }
 0x2c9   :  { %v2715_v43 = vadd.f32 %v3693_v55, %v5610_v14  ;;  %v5646_v5 = vadd.f32 %v3770_v45, %v2710_v0  ;;  %v3694_v6 = vpop.f32.mrb[134].mxu0  ;;  %v3771_v11 = vpop.f32.mrb[132].mxu1 }
 0x2ca   :  { %v3695_v12 = vpop.f32.mrb[135].mxu0  ;;  %v3772_v37 = vpop.f32.mrb[133].mxu1 }
 0x2cb   :  { %v3696_v59 = vadd.f32 %v3695_v12, %v3694_v6  ;;  %v3773_v13 = vadd.f32 %v3772_v37, %v3771_v11 }
 0x2cd   :  { %v2720_v15 = vadd.f32 %v3696_v59, %v5612_v22  ;;  %v5652_v1 = vadd.f32 %v3773_v13, %v2715_v43  ;;  %v3697_v10 = vpop.f32.mrb[136].mxu0  ;;  %v3774_v19 = vpop.f32.mrb[134].mxu1 }
 0x2ce   :  { %v3698_v14 = vpop.f32.mrb[137].mxu0  ;;  %v3775_v20 = vpop.f32.mrb[135].mxu1 }
 0x2cf   :  { %v3699_v23 = vadd.f32 %v3698_v14, %v3697_v10  ;;  %v3776_v9 = vadd.f32 %v3775_v20, %v3774_v19 }
 0x2d1   :  { %v2725_v24 = vadd.f32 %v3699_v23, %v5614_v32  ;;  %v5655_v28 = vadd.f32 %v3776_v9, %v2720_v15  ;;  %v3700_v30 = vpop.f32.mrb[138].mxu0  ;;  %v3777_v35 = vpop.f32.mrb[136].mxu1 }
 0x2d2   :  { %v3701_v36 = vpop.f32.mrb[139].mxu0  ;;  %v3778_v16 = vpop.f32.mrb[137].mxu1 }
 0x2d3   :  { %v3702_v40 = vadd.f32 %v3701_v36, %v3700_v30  ;;  %v3779_v21 = vadd.f32 %v3778_v16, %v3777_v35 }
 0x2d5   :  { %v2730_v22 = vadd.f32 %v3702_v40, %v5616_v38  ;;  %v5658_v42 = vadd.f32 %v3779_v21, %v2725_v24  ;;  %v3703_v3 = vpop.f32.mrb[140].mxu0  ;;  %v3780_v44 = vpop.f32.mrb[138].mxu1 }
 0x2d6   :  { %v3704_v26 = vpop.f32.mrb[141].mxu0  ;;  %v3781_v31 = vpop.f32.mrb[139].mxu1 }
 0x2d7   :  { %v3705_v51 = vadd.f32 %v3704_v26, %v3703_v3  ;;  %v3782_v60 = vadd.f32 %v3781_v31, %v3780_v44 }
 0x2d9   :  { %v2735_v32 = vadd.f32 %v3705_v51, %v5618_v46  ;;  %v5661_v47 = vadd.f32 %v3782_v60, %v2730_v22  ;;  %v3706_v48 = vpop.f32.mrb[142].mxu0  ;;  %v3783_v49 = vpop.f32.mrb[140].mxu1 }
 0x2da   :  { %v3707_v50 = vpop.f32.mrb[143].mxu0  ;;  %v3784_v56 = vpop.f32.mrb[141].mxu1 }
 0x2db   :  { %v3708_v33 = vadd.f32 %v3707_v50, %v3706_v48  ;;  %v3785_v57 = vadd.f32 %v3784_v56, %v3783_v49 }
 0x2dd   :  { %v2740_v38 = vadd.f32 %v3708_v33, %v5620_v54  ;;  %v5664_v58 = vadd.f32 %v3785_v57, %v2735_v32  ;;  %v3709_v61 = vpop.f32.mrb[144].mxu0  ;;  %v3786_v27 = vpop.f32.mrb[142].mxu1 }
 0x2de   :  { %v3710_v0 = vpop.f32.mrb[145].mxu0  ;;  %v3787_v4 = vpop.f32.mrb[143].mxu1 }
 0x2df   :  { %v3711_v63 = vadd.f32 %v3710_v0, %v3709_v61  ;;  %v3788_v39 = vadd.f32 %v3787_v4, %v3786_v27 }
 0x2e1   :  { %v2745_v46 = vadd.f32 %v3711_v63, %v5622_v62  ;;  %v5667_v8 = vadd.f32 %v3788_v39, %v2740_v38  ;;  %v3712_v34 = vpop.f32.mrb[146].mxu0  ;;  %v3789_v55 = vpop.f32.mrb[144].mxu1 }
 0x2e2   :  { %v3713_v45 = vpop.f32.mrb[147].mxu0  ;;  %v3790_v43 = vpop.f32.mrb[145].mxu1 }
 0x2e3   :  { %v3714_v6 = vadd.f32 %v3713_v45, %v3712_v34  ;;  %v3791_v11 = vadd.f32 %v3790_v43, %v3789_v55 }
 0x2e5   :  { %v2750_v54 = vadd.f32 %v3714_v6, %v5624_v29  ;;  %v5670_v7 = vadd.f32 %v3791_v11, %v2745_v46  ;;  %v3715_v12 = vpop.f32.mrb[148].mxu0  ;;  %v3792_v37 = vpop.f32.mrb[146].mxu1 }
 0x2e6   :  { %v3716_v59 = vpop.f32.mrb[149].mxu0  ;;  %v3793_v13 = vpop.f32.mrb[147].mxu1 }
 0x2e7   :  { %v3717_v15 = vadd.f32 %v3716_v59, %v3715_v12  ;;  %v3794_v10 = vadd.f32 %v3793_v13, %v3792_v37 }
 0x2e9   :  { %v2755_v62 = vadd.f32 %v3717_v15, %v5626_v52  ;;  %v5673_v19 = vadd.f32 %v3794_v10, %v2750_v54  ;;  %v3718_v14 = vpop.f32.mrb[150].mxu0  ;;  %v3795_v20 = vpop.f32.mrb[148].mxu1 }
 0x2ea   :  { %v3719_v23 = vpop.f32.mrb[151].mxu0  ;;  %v3796_v9 = vpop.f32.mrb[149].mxu1 }
 0x2eb   :  { %v3720_v24 = vadd.f32 %v3719_v23, %v3718_v14  ;;  %v3797_v30 = vadd.f32 %v3796_v9, %v3795_v20 }
 0x2ed   :  { %v2760_v29 = vadd.f32 %v3720_v24, %v5628_v17  ;;  %v5676_v35 = vadd.f32 %v3797_v30, %v2755_v62  ;;  %v3721_v36 = vpop.f32.mrb[152].mxu0  ;;  %v3798_v16 = vpop.f32.mrb[150].mxu1 }
 0x2ee   :  { %v3722_v40 = vpop.f32.mrb[153].mxu0  ;;  %v3799_v21 = vpop.f32.mrb[151].mxu1 }
 0x2ef   :  { %v3723_v22 = vadd.f32 %v3722_v40, %v3721_v36  ;;  %v3800_v3 = vadd.f32 %v3799_v21, %v3798_v16 }
 0x2f1   :  { %v2765_v52 = vadd.f32 %v3723_v22, %v5630_v25  ;;  %v5679_v44 = vadd.f32 %v3800_v3, %v2760_v29  ;;  %v3724_v26 = vpop.f32.mrb[154].mxu0  ;;  %v3801_v31 = vpop.f32.mrb[152].mxu1 }
 0x2f2   :  { %v3725_v51 = vpop.f32.mrb[155].mxu0  ;;  %v3802_v60 = vpop.f32.mrb[153].mxu1 }
 0x2f3   :  { %v3726_v32 = vadd.f32 %v3725_v51, %v3724_v26  ;;  %v3803_v48 = vadd.f32 %v3802_v60, %v3801_v31 }
 0x2f5   :  { %v2770_v17 = vadd.f32 %v3726_v32, %v5632_v41  ;;  %v5682_v49 = vadd.f32 %v3803_v48, %v2765_v52  ;;  %v3727_v50 = vpop.f32.mrb[156].mxu0  ;;  %v3804_v56 = vpop.f32.mrb[154].mxu1 }
 0x2f6   :  { %v3728_v33 = vpop.f32.mrb[157].mxu0  ;;  %v3805_v57 = vpop.f32.mrb[155].mxu1 }
 0x2f7   :  { %v3729_v38 = vadd.f32 %v3728_v33, %v3727_v50  ;;  %v3806_v61 = vadd.f32 %v3805_v57, %v3804_v56 }
 0x2f9   :  { %v2775_v25 = vadd.f32 %v3729_v38, %v5634_v18  ;;  %v5685_v27 = vadd.f32 %v3806_v61, %v2770_v17  ;;  %v3730_v0 = vpop.f32.mrb[158].mxu0  ;;  %v3807_v4 = vpop.f32.mrb[156].mxu1 }
 0x2fa   :  { %v3731_v63 = vpop.f32.mrb[159].mxu0  ;;  %v3808_v39 = vpop.f32.mrb[157].mxu1 }
 0x2fb   :  { %v3732_v46 = vadd.f32 %v3731_v63, %v3730_v0  ;;  %v3809_v34 = vadd.f32 %v3808_v39, %v3807_v4 }
 0x2fd   :  { %v2780_v41 = vadd.f32 %v3732_v46, %v5637_v53  ;;  %v5688_v55 = vadd.f32 %v3809_v34, %v2775_v25  ;;  %v3810_v45 = vpop.f32.mrb[158].mxu1  ;;  %v3845_v43 = vpop.f32.mrb[160].mxu0 }
 0x2fe   :  { %v3811_v6 = vpop.f32.mrb[159].mxu1  ;;  %v3846_v11 = vpop.f32.mrb[161].mxu0 }
 0x2ff   :  { %v3812_v54 = vadd.f32 %v3811_v6, %v3810_v45  ;;  %v3847_v12 = vadd.f32 %v3846_v11, %v3845_v43 }
 0x301   :  { %v5690_v37 = vadd.f32 %v3812_v54, %v2780_v41  ;;  %v2995_v18 = vadd.f32 %v3847_v12, %v5640_v2  ;;  %v3848_v59 = vpop.f32.mrb[162].mxu0  ;;  %v3925_v13 = vpop.f32.mrb[160].mxu1 }
 0x302   :  { %v3849_v15 = vpop.f32.mrb[163].mxu0  ;;  %v3926_v10 = vpop.f32.mrb[161].mxu1 }
 0x303   :  { %v3850_v62 = vadd.f32 %v3849_v15, %v3848_v59  ;;  %v3927_v14 = vadd.f32 %v3926_v10, %v3925_v13 }
 0x305   :  { %v3000_v53 = vadd.f32 %v3850_v62, %v5646_v5  ;;  %v3140_v20 = vadd.f32 %v3927_v14, %v2995_v18  ;;  %v3851_v23 = vpop.f32.mrb[164].mxu0  ;;  %v3928_v9 = vpop.f32.mrb[162].mxu1 }
 0x306   :  { %v3852_v24 = vpop.f32.mrb[165].mxu0  ;;  %v3929_v30 = vpop.f32.mrb[163].mxu1 }
 0x307   :  { %v3853_v29 = vadd.f32 %v3852_v24, %v3851_v23  ;;  %v3930_v36 = vadd.f32 %v3929_v30, %v3928_v9 }
 0x309   :  { %v3005_v16 = vadd.f32 %v3853_v29, %v5652_v1  ;;  %v3145_v40 = vadd.f32 %v3930_v36, %v3000_v53  ;;  %v3854_v21 = vpop.f32.mrb[166].mxu0  ;;  %v3931_v2 = vpop.f32.mrb[164].mxu1 }
 0x30a   :  { %v3855_v22 = vpop.f32.mrb[167].mxu0  ;;  %v3932_v3 = vpop.f32.mrb[165].mxu1 }
 0x30b   :  { %v4223_v52 = vpack.c.bf16 %v3145_v40, %v3140_v20  ;;  %v3856_v26 = vadd.f32 %v3855_v22, %v3854_v21  ;;  %v3933_v31 = vadd.f32 %v3932_v3, %v3931_v2 }
 0x30d   :  { %v3010_v51 = vadd.f32 %v3856_v26, %v5655_v28  ;;  %v3150_v5 = vadd.f32 %v3933_v31, %v3005_v16  ;;  %v3857_v60 = vpop.f32.mrb[168].mxu0  ;;  %v3934_v32 = vpop.f32.mrb[166].mxu1  ;;  %4224 = vmatprep.subr.bf16.mxu0 %v4223_v52  ;;  %4255 = vmatprep.subr.bf16.mxu1 %v4223_v52 }
 0x30e   :  { %v3858_v48 = vpop.f32.mrb[169].mxu0  ;;  %v3935_v17 = vpop.f32.mrb[167].mxu1  ;;  %4226 = vmatpush3.bf16.msra.mxu0 %v4223_v52  ;;  %4263 = vmatpush3.bf16.msra.mxu1 %v4223_v52 }
 0x30f   :  { %v3859_v1 = vadd.f32 %v3858_v48, %v3857_v60  ;;  %v3936_v50 = vadd.f32 %v3935_v17, %v3934_v32 }
 0x311   :  { %v3015_v56 = vadd.f32 %v3859_v1, %v5658_v42  ;;  %v3155_v33 = vadd.f32 %v3936_v50, %v3010_v51  ;;  %v3860_v57 = vpop.f32.mrb[170].mxu0  ;;  %v3937_v38 = vpop.f32.mrb[168].mxu1 }
 0x312   :  { %v3861_v61 = vpop.f32.mrb[171].mxu0  ;;  %v3938_v25 = vpop.f32.mrb[169].mxu1 }
 0x313   :  { %v4227_v0 = vpack.c.bf16 %v3155_v33, %v3150_v5  ;;  %v3862_v28 = vadd.f32 %v3861_v61, %v3860_v57  ;;  %v3939_v4 = vadd.f32 %v3938_v25, %v3937_v38 }
 0x315   :  { %v3020_v63 = vadd.f32 %v3862_v28, %v5661_v47  ;;  %v3160_v39 = vadd.f32 %v3939_v4, %v3015_v56  ;;  %v3863_v46 = vpop.f32.mrb[172].mxu0  ;;  %v3940_v34 = vpop.f32.mrb[170].mxu1  ;;  %4228 = vmatprep.subr.bf16.mxu0 %v4227_v0  ;;  %4256 = vmatprep.subr.bf16.mxu1 %v4227_v0 }
 0x316   :  { %v3864_v41 = vpop.f32.mrb[173].mxu0  ;;  %v3941_v45 = vpop.f32.mrb[171].mxu1  ;;  %4230 = vmatpush3.bf16.msra.mxu0 %v4227_v0  ;;  %4264 = vmatpush3.bf16.msra.mxu1 %v4227_v0 }
 0x317   :  { %v3865_v42 = vadd.f32 %v3864_v41, %v3863_v46  ;;  %v3942_v43 = vadd.f32 %v3941_v45, %v3940_v34 }
 0x319   :  { %v3025_v6 = vadd.f32 %v3865_v42, %v5664_v58  ;;  %v3165_v11 = vadd.f32 %v3942_v43, %v3020_v63  ;;  %v3866_v54 = vpop.f32.mrb[174].mxu0  ;;  %v3943_v12 = vpop.f32.mrb[172].mxu1 }
 0x31a   :  { %v3867_v18 = vpop.f32.mrb[175].mxu0  ;;  %v3944_v59 = vpop.f32.mrb[173].mxu1 }
 0x31b   :  { %v4231_v13 = vpack.c.bf16 %v3165_v11, %v3160_v39  ;;  %v3868_v47 = vadd.f32 %v3867_v18, %v3866_v54  ;;  %v3945_v15 = vadd.f32 %v3944_v59, %v3943_v12 }
 0x31d   :  { %v3030_v10 = vadd.f32 %v3868_v47, %v5667_v8  ;;  %v3170_v62 = vadd.f32 %v3945_v15, %v3025_v6  ;;  %v3869_v14 = vpop.f32.mrb[176].mxu0  ;;  %v3946_v53 = vpop.f32.mrb[174].mxu1  ;;  %4232 = vmatprep.subr.bf16.mxu0 %v4231_v13  ;;  %4257 = vmatprep.subr.bf16.mxu1 %v4231_v13 }
 0x31e   :  { %v3870_v20 = vpop.f32.mrb[177].mxu0  ;;  %v3947_v23 = vpop.f32.mrb[175].mxu1  ;;  %4234 = vmatpush3.bf16.msra.mxu0 %v4231_v13  ;;  %4265 = vmatpush3.bf16.msra.mxu1 %v4231_v13 }
 0x31f   :  { %v3871_v58 = vadd.f32 %v3870_v20, %v3869_v14  ;;  %v3948_v9 = vadd.f32 %v3947_v23, %v3946_v53 }
 0x321   :  { %v3035_v24 = vadd.f32 %v3871_v58, %v5670_v7  ;;  %v3175_v30 = vadd.f32 %v3948_v9, %v3030_v10  ;;  %v3872_v29 = vpop.f32.mrb[178].mxu0  ;;  %v3949_v36 = vpop.f32.mrb[176].mxu1 }
 0x322   :  { %v3873_v16 = vpop.f32.mrb[179].mxu0  ;;  %v3950_v40 = vpop.f32.mrb[177].mxu1 }
 0x323   :  { %v4235_v21 = vpack.c.bf16 %v3175_v30, %v3170_v62  ;;  %v3874_v8 = vadd.f32 %v3873_v16, %v3872_v29  ;;  %v3951_v2 = vadd.f32 %v3950_v40, %v3949_v36  ;;  %v3219_v16 = vld [vmem:[%s5743_s3 + $0x8] sm:$0xff] }
 0x325   :  { %v3040_v22 = vadd.f32 %v3874_v8, %v5673_v19  ;;  %v3180_v3 = vadd.f32 %v3951_v2, %v3035_v24  ;;  %v3875_v52 = vpop.f32.mrb[180].mxu0  ;;  %v3952_v26 = vpop.f32.mrb[178].mxu1  ;;  %4236 = vmatprep.subr.bf16.mxu0 %v4235_v21  ;;  %4258 = vmatprep.subr.bf16.mxu1 %v4235_v21 }
 0x326   :  { %v3876_v31 = vpop.f32.mrb[181].mxu0  ;;  %v3953_v51 = vpop.f32.mrb[179].mxu1  ;;  %4238 = vmatpush3.bf16.msra.mxu0 %v4235_v21  ;;  %4266 = vmatpush3.bf16.msra.mxu1 %v4235_v21 }
 0x327   :  { %v3877_v7 = vadd.f32 %v3876_v31, %v3875_v52  ;;  %v3954_v5 = vadd.f32 %v3953_v51, %v3952_v26 }
 0x329   :  { %v3045_v60 = vadd.f32 %v3877_v7, %v5676_v35  ;;  %v3185_v32 = vadd.f32 %v3954_v5, %v3040_v22  ;;  %v3878_v48 = vpop.f32.mrb[182].mxu0  ;;  %v3955_v17 = vpop.f32.mrb[180].mxu1 }
 0x32a   :  { %v3879_v1 = vpop.f32.mrb[183].mxu0  ;;  %v3956_v50 = vpop.f32.mrb[181].mxu1 }
 0x32b   :  { %v4239_v56 = vpack.c.bf16 %v3185_v32, %v3180_v3  ;;  %v3880_v19 = vadd.f32 %v3879_v1, %v3878_v48  ;;  %v3957_v33 = vadd.f32 %v3956_v50, %v3955_v17 }
 0x32d   :  { %v3050_v57 = vadd.f32 %v3880_v19, %v5679_v44  ;;  %v3190_v38 = vadd.f32 %v3957_v33, %v3045_v60  ;;  %v3881_v61 = vpop.f32.mrb[184].mxu0  ;;  %v3958_v25 = vpop.f32.mrb[182].mxu1  ;;  %4240 = vmatprep.subr.bf16.mxu0 %v4239_v56  ;;  %4259 = vmatprep.subr.bf16.mxu1 %v4239_v56 }
 0x32e   :  { %v3882_v0 = vpop.f32.mrb[185].mxu0  ;;  %v3959_v28 = vpop.f32.mrb[183].mxu1  ;;  %4242 = vmatpush3.bf16.msra.mxu0 %v4239_v56  ;;  %4267 = vmatpush3.bf16.msra.mxu1 %v4239_v56 }
 0x32f   :  { %v3883_v35 = vadd.f32 %v3882_v0, %v3881_v61  ;;  %v3960_v4 = vadd.f32 %v3959_v28, %v3958_v25 }
 0x331   :  { %v3055_v63 = vadd.f32 %v3883_v35, %v5682_v49  ;;  %v3195_v39 = vadd.f32 %v3960_v4, %v3050_v57  ;;  %v3884_v46 = vpop.f32.mrb[186].mxu0  ;;  %v3961_v34 = vpop.f32.mrb[184].mxu1 }
 0x332   :  { %v3885_v41 = vpop.f32.mrb[187].mxu0  ;;  %v3962_v45 = vpop.f32.mrb[185].mxu1 }
 0x333   :  { %v4243_v42 = vpack.c.bf16 %v3195_v39, %v3190_v38  ;;  %v3886_v44 = vadd.f32 %v3885_v41, %v3884_v46  ;;  %v3963_v43 = vadd.f32 %v3962_v45, %v3961_v34 }
 0x335   :  { %v3060_v6 = vadd.f32 %v3886_v44, %v5685_v27  ;;  %v3200_v11 = vadd.f32 %v3963_v43, %v3055_v63  ;;  %v3887_v54 = vpop.f32.mrb[188].mxu0  ;;  %v3964_v12 = vpop.f32.mrb[186].mxu1  ;;  %4244 = vmatprep.subr.bf16.mxu0 %v4243_v42  ;;  %4260 = vmatprep.subr.bf16.mxu1 %v4243_v42 }
 0x336   :  { %v3888_v18 = vpop.f32.mrb[189].mxu0  ;;  %v3965_v59 = vpop.f32.mrb[187].mxu1  ;;  %4246 = vmatpush3.bf16.msra.mxu0 %v4243_v42  ;;  %4268 = vmatpush3.bf16.msra.mxu1 %v4243_v42 }
 0x337   :  { %v3889_v49 = vadd.f32 %v3888_v18, %v3887_v54  ;;  %v3966_v13 = vadd.f32 %v3965_v59, %v3964_v12 }
 0x339   :  { %v3065_v47 = vadd.f32 %v3889_v49, %v5688_v55  ;;  %v3205_v15 = vadd.f32 %v3966_v13, %v3060_v6  ;;  %v3890_v10 = vpop.f32.mrb[190].mxu0  ;;  %v3967_v62 = vpop.f32.mrb[188].mxu1 }
 0x33a   :  { %v3891_v14 = vpop.f32.mrb[191].mxu0  ;;  %v3968_v53 = vpop.f32.mrb[189].mxu1 }
 0x33b   :  { %v4247_v20 = vpack.c.bf16 %v3205_v15, %v3200_v11  ;;  %v3892_v27 = vadd.f32 %v3891_v14, %v3890_v10  ;;  %v3969_v23 = vadd.f32 %v3968_v53, %v3967_v62  ;;  %v3491_v10 = vld [vmem:[%s5744_s4] ss:$0 sm:$0xff] }
 0x33c   :  { %v3492_v62 = vld [vmem:[%s5745_s5] ss:$0 sm:$0xff] }
 0x33d   :  { %v3070_v58 = vadd.f32 %v3892_v27, %v5690_v37  ;;  %v3210_v9 = vadd.f32 %v3969_v23, %v3065_v47  ;;  %v3970_v24 = vpop.f32.mrb[190].mxu1  ;;  %4248 = vmatprep.subr.bf16.mxu0 %v4247_v20  ;;  %4261 = vmatprep.subr.bf16.mxu1 %v4247_v20  ;;  %v3221_v37 = vld [vmem:[%s5743_s3 + $0x18] sm:$0xff] }
 0x33e   :  { %v3971_v30 = vpop.f32.mrb[191].mxu1  ;;  %4250 = vmatpush3.bf16.msra.mxu0 %v4247_v20  ;;  %4269 = vmatpush3.bf16.msra.mxu1 %v4247_v20 }
 0x33f   :  { %v3972_v29 = vadd.f32 %v3971_v30, %v3970_v24 }
 0x341   :  { %v3215_v36 = vadd.f32 %v3972_v29, %v3070_v58 }
 0x343   :  { %v4251_v55 = vpack.c.bf16 %v3215_v36, %v3210_v9 }
 0x345   :  { %4252 = vmatprep.subr.bf16.mxu0 %v4251_v55  ;;  %4262 = vmatprep.subr.bf16.mxu1 %v4251_v55 }
 0x346   :  { %4254 = vmatpush3.bf16.msra.mxu0 %v4251_v55  ;;  %4270 = vmatpush3.bf16.msra.mxu1 %v4251_v55 }
 0x349   :  { %4026 = vmatmul.mubr.f32.vlgmr.msra.gmra.mrb[192].mxu0 %v3219_v16  ;;  %4029 = vmatmul.mubr.f32.vlgmr.msra.gmra.mrb[192].mxu1 %v3221_v37 }
 0x41c   :  { %v4027_v40 = vpop.f32.mrb[192].mxu0  ;;  %v4030_v21 = vpop.f32.mrb[192].mxu1 }
 0x41d   :  { %v3288_v8 = vpop.f32.mrb[193].mxu0  ;;  %v3311_v2 = vsel %vm3307_vm10, %v4027_v40, 0.0  ;;  %v3298_v22 = vpop.f32.mrb[193].mxu1  ;;  %v3317_v26 = vsel %vm3307_vm10, %v4030_v21, 0.0 }
 0x41e   :  { %v3308_v3 = vsel %vm3307_vm10, %v3288_v8, 0.0  ;;  %3312 = vadd.xlane.f32.xlu1 %v3311_v2  ;;  %v3314_v52 = vsel %vm3307_vm10, %v3298_v22, 0.0 }
 0x41f   :  { %3309 = vadd.xlane.f32.xlu0 %v3308_v3 }
 0x423   :  { %3315 = vadd.xlane.f32.xlu0 %v3314_v52 }
 0x427   :  { %3318 = vadd.xlane.f32.xlu0 %v3317_v26 }
 0x4ab   :  { %v3313_v31 = vpop.xlane.xlu1 %3312 }
 0x4ac   :  { %v3322_v51 = vmul.f32 0.25, %v3313_v31  ;;  %v3310_v7 = vpop.xlane.xlu0 %3309 }
 0x4ad   :  { %v3321_v5 = vmul.f32 0.25, %v3310_v7 }
 0x4ae   :  { %v3326_v60 = vsub.f32 %v4027_v40, %v3322_v51 }
 0x4af   :  { %v3325_v32 = vsub.f32 %v3288_v8, %v3321_v5 }
 0x4b0   :  { %v3316_v48 = vpop.xlane.xlu0 %3315  ;;  %v3330_v17 = vmul.f32 %v3326_v60, %v3326_v60 }
 0x4b1   :  { %v3323_v1 = vmul.f32 0.25, %v3316_v48  ;;  %v3329_v50 = vmul.f32 %v3325_v32, %v3325_v32 }
 0x4b2   :  { %v3336_v56 = vsel %vm3307_vm10, %v3330_v17, 0.0 }
 0x4b3   :  { %v3327_v19 = vsub.f32 %v3298_v22, %v3323_v1  ;;  %3337 = vadd.xlane.f32.xlu0 %v3336_v56  ;;  %v3333_v33 = vsel %vm3307_vm10, %v3329_v50, 0.0 }
 0x4b4   :  { %3334 = vadd.xlane.f32.xlu1 %v3333_v33  ;;  %v3319_v57 = vpop.xlane.xlu0 %3318 }
 0x4b5   :  { %v3324_v38 = vmul.f32 0.25, %v3319_v57  ;;  %v3331_v61 = vmul.f32 %v3327_v19, %v3327_v19 }
 0x4b7   :  { %v3328_v25 = vsub.f32 %v4030_v21, %v3324_v38  ;;  %v3339_v0 = vsel %vm3307_vm10, %v3331_v61, 0.0 }
 0x4b8   :  { %3340 = vadd.xlane.f32.xlu1 %v3339_v0 }
 0x4b9   :  { %v3332_v28 = vmul.f32 %v3328_v25, %v3328_v25 }
 0x4bb   :  { %v3342_v35 = vsel %vm3307_vm10, %v3332_v28, 0.0 }
 0x4bc   :  { %3343 = vadd.xlane.f32.xlu0 %v3342_v35 }
 0x540   :  { %v3338_v4 = vpop.xlane.xlu0 %3337 }
 0x541   :  { %v3346_v63 = vmul.f32 0.25, %v3338_v4  ;;  %v3335_v39 = vpop.xlane.xlu1 %3334 }
 0x542   :  { %v3345_v46 = vmul.f32 0.25, %v3335_v39 }
 0x543   :  { %v3350_v34 = vadd.f32 1e-05, %v3346_v63 }
 0x544   :  { %v3349_v41 = vadd.f32 1e-05, %v3345_v46 }
 0x545   :  { %v3341_v45 = vpop.xlane.xlu1 %3340 }
 0x546   :  { %4300 = vrsqrt.f32 %v3349_v41  ;;  %v3347_v42 = vmul.f32 0.25, %v3341_v45 }
 0x547   :  { %4302 = vrsqrt.f32 %v3350_v34 }
 0x548   :  { %v3351_v44 = vadd.f32 1e-05, %v3347_v42 }
 0x549   :  { %v3344_v43 = vpop.xlane.xlu0 %3343 }
 0x54a   :  { %v3348_v6 = vmul.f32 0.25, %v3344_v43  ;;  %4304 = vrsqrt.f32 %v3351_v44 }
 0x54c   :  { %v3352_v11 = vadd.f32 1e-05, %v3348_v6 }
 0x54e   :  { %4306 = vrsqrt.f32 %v3352_v11 }
 0x550   :  { %v4301_v54 = vpop.eup %4300 }
 0x551   :  { %v3357_v12 = vmul.f32 %v4301_v54, %v3325_v32  ;;  %v4303_v18 = vpop.eup %4302 }
 0x552   :  { %v3358_v59 = vmul.f32 %v4303_v18, %v3326_v60 }
 0x553   :  { %3361 = vxpose.xlu1.b32.start [1/4] (short) (narrow) %v3357_v12, 8 }
 0x554   :  { %v4305_v49 = vpop.eup %4304 }
 0x555   :  { %v3359_v13 = vmul.f32 %v4305_v49, %v3327_v19 }
 0x557   :  { %3362 = vxpose.xlu1.b32.cont [2/4] (short) (narrow) %v3358_v59, 8 }
 0x558   :  { %v4307_v47 = vpop.eup %4306 }
 0x559   :  { %v3360_v15 = vmul.f32 %v4307_v47, %v3328_v25 }
 0x55b   :  { %3363 = vxpose.xlu1.b32.cont [3/4] (short) (narrow) %v3359_v13, 8 }
 0x55f   :  { %3364 = vxpose.xlu1.b32.end [4/4] (short) (narrow) %v3360_v15, 8 }
 0x5d3   :  { %v3377_v14 = vpop.trf.xlu1 }
 0x5d4   :  { %v3400_v53 = vmul.f32 %v3491_v10, %v3377_v14 }
 0x5d6   :  { %v3408_v20 = vadd.f32 %v3492_v62, %v3400_v53 }
 0x5d8   :  { %3410 = vst.msk [vmem:[#allocation3] sm:$0xf] %vm3409_vm11, %v3408_v20 }
 0x5d9   :  { %4319 = shalt.err (!%p4316_p4)
}
 0x5da   :  { %s4320_s21 = scalar_lea.hbm %s5746_s6, 64 }
 0x5db   :  { %p4321_p5 = scmp.ne.s32.totalorder %s5746_s6, %s4320_s21  ;;  %p4324_p6 = scmp.lt.u32.totalorder %s4320_s21, %s5746_s6 }
 0x5dd   :  { %p4326_p7 = pnand %p4324_p6, %p4321_p5 }
 0x5df   :  { %4329 = shalt.err (!%p4326_p7)
}
 0x5e0   :  { %3420 = dma.vmem_to_hbm [thread:$0]  %s3418_s18, 64, %s5746_s6, [#allocation4]  }
 0x5e1   :  { %4330 = dma.done.wait [#allocation4], 64  }
 0x5e2   :  { %4331 = vsyncadd [#allocation4], 4294967232 }
 0x5e3   :  { %3424 = vsyncpa [#allocation4], 1 }

</bundles_post_ra>
